<compile_context>
chip_gen: v7x
topology: tpu7x:2x2x1
jax: 0.10.0
libtpu: 0.0.40
codegen_flags: <defaults>
</compile_context>

<pallas_src>
import jax
import jax.numpy as jnp
from jax.experimental import pallas as pl
from jax.experimental.pallas import tpu as pltpu


# ----------------------------------------------------------------------------
# Parameter initialization (deterministic; eval-mode BatchNorm folded).
# ----------------------------------------------------------------------------
def _bn_fold(c, eps=1e-5):
    # Freshly-initialized BatchNorm1d, eval mode: gamma=1, beta=0, mean=0, var=1.
    gamma = jnp.ones((c,), jnp.float32)
    beta = jnp.zeros((c,), jnp.float32)
    mean = jnp.zeros((c,), jnp.float32)
    var = jnp.ones((c,), jnp.float32)
    scale = gamma / jnp.sqrt(var + eps)
    shift = beta - mean * scale
    return scale, shift


def _merged_conv_stage(key, cin, n_out, kernel_size_set, ks_max):
    """Multi-kernel-size dilated conv stage merged into one (ks_max, cin, n_out)
    weight: branch i -> output columns [i*nb, (i+1)*nb); its taps are centered
    in the ks_max frame (outer taps zero).  Eval-mode BN folded into w/b."""
    num_k = len(kernel_size_set)
    assert n_out % num_k == 0
    nb = n_out // num_k
    w_all = jnp.zeros((ks_max, cin, n_out), jnp.float32)
    biases = []
    for i, (ks, bkey) in enumerate(zip(kernel_size_set, jax.random.split(key, num_k))):
        kw, kb = jax.random.split(bkey)
        w = jax.random.normal(kw, (nb, cin, ks), jnp.float32) * 0.05   # torch layout
        b = jax.random.normal(kb, (nb,), jnp.float32) * 0.05
        start = (ks_max - ks) // 2                                     # odd ks, centered
        w_all = w_all.at[start:start + ks, :, i * nb:(i + 1) * nb].set(
            jnp.transpose(w, (2, 1, 0)))
        biases.append(b)
    bias = jnp.concatenate(biases)
    scale, shift = _bn_fold(n_out)           # fold BatchNorm1d(n_out), eval mode
    w_all = w_all * scale[None, None, :]
    bias = bias * scale + shift
    alpha = jnp.full((n_out,), 0.25, jnp.float32)      # PReLU init
    return dict(w=w_all.astype(jnp.bfloat16), b=bias.reshape(1, -1),
                alpha=alpha.reshape(1, -1))


def _init_dense_layer(key, cin, growth, kernel_size_set, ks_max):
    k0, k1, kd = jax.random.split(key, 3)
    layer = dict(
        s0=_merged_conv_stage(k0, cin, growth, kernel_size_set, ks_max),
        s1=_merged_conv_stage(k1, growth, growth, kernel_size_set, ks_max),
        alpha_out=jnp.full((1, growth), 0.25, jnp.float32),
    )
    if cin != growth:   # 1x1 conv residual downsample
        kw, kb = jax.random.split(kd)
        dw = jax.random.normal(kw, (growth, cin, 1), jnp.float32) * 0.05
        db = jax.random.normal(kb, (growth,), jnp.float32) * 0.05
        layer['ds_w'] = jnp.transpose(dw[:, :, 0]).astype(jnp.bfloat16)  # (cin, growth)
        layer['ds_b'] = db.reshape(1, -1)
    return layer


def _init_transition(key, cin, cout):
    # 1x1 Conv1d (no bias) + BN + PReLU, BN folded into w / bias.
    w = jax.random.normal(key, (cout, cin, 1), jnp.float32) * 0.05
    w2 = jnp.transpose(w[:, :, 0])                         # (cin, cout)
    scale, shift = _bn_fold(cout)
    return dict(w=(w2 * scale[None, :]).astype(jnp.bfloat16),
                b=shift.reshape(1, -1),
                alpha=jnp.full((1, cout), 0.25, jnp.float32))


def _init_heads(key, num_features, num_tokens, input_size):
    # Final BatchNorm1d folded into the two (merged) Linear heads:
    # columns [0:num_tokens] = encoder_output, [num_tokens:] = hidden_proj.
    scale, shift = _bn_fold(num_features)
    k1, k2, k3, k4 = jax.random.split(key, 4)
    wl = jax.random.normal(k1, (num_tokens, num_features), jnp.float32) * 0.05
    bl = jax.random.normal(k2, (num_tokens,), jnp.float32) * 0.05
    wh = jax.random.normal(k3, (input_size, num_features), jnp.float32) * 0.05
    bh = jax.random.normal(k4, (input_size,), jnp.float32) * 0.05
    w = jnp.concatenate([wl.T, wh.T], axis=1)              # (F, num_tokens+input_size)
    b = jnp.concatenate([bl, bh])
    b = b + shift @ w
    w = w * scale[:, None]
    return w.astype(jnp.bfloat16), b.reshape(1, -1)


def init_dense_tcn(key, block_config, growth_rate_set, input_size, reduced_size,
                   num_tokens, kernel_size_set, dilation_size_set):
    ks_max = max(kernel_size_set)
    keys = iter(jax.random.split(key, 4 + sum(block_config) + len(block_config)))
    params = dict(blocks=[], transitions=[])
    plan = dict(input_size=input_size, reduced_size=reduced_size,
                num_tokens=num_tokens, ks_max=ks_max,
                dilation_size_set=list(dilation_size_set), layers=[])
    params['transition0'] = _init_transition(next(keys), input_size, reduced_size)
    num_features = reduced_size
    for bi, n_layers in enumerate(block_config):
        g = growth_rate_set[bi]
        blk_p, blk_s = [], []
        for li in range(n_layers):
            cin = num_features + li * g
            d = dilation_size_set[li % len(dilation_size_set)]
            blk_p.append(_init_dense_layer(next(keys), cin, g, kernel_size_set, ks_max))
            blk_s.append(dict(cin=cin, g=g, d=d))
        params['blocks'].append(blk_p)
        plan['layers'].append(blk_s)
        num_features = num_features + n_layers * g
        if bi != len(block_config) - 1:
            params['transitions'].append(
                _init_transition(next(keys), num_features, reduced_size))
            num_features = reduced_size
    params['head_w'], params['head_b'] = _init_heads(
        next(keys), num_features, num_tokens, input_size)
    plan['num_features'] = num_features
    return params, plan


# ----------------------------------------------------------------------------
# Fused forward pass: one pallas_call for the whole trunk + heads.
# ----------------------------------------------------------------------------
def build_forward(plan):
    ks_max = plan['ks_max']
    half = (ks_max - 1) // 2
    max_pad = half * max(plan['dilation_size_set'])
    pad_rows = ((max_pad + 7) // 8) * 8         # sublane-aligned zero-pad region
    f_max = max(blk[-1]['cin'] + blk[-1]['g'] for blk in plan['layers'])
    g_max = max(blk[0]['g'] for blk in plan['layers'])
    r = plan['reduced_size']
    num_tokens = plan['num_tokens']
    n_out = num_tokens + plan['input_size']

    @jax.jit
    def _fwd(params, x):
        flat, treedef = jax.tree_util.tree_flatten(params)
        n_flat = len(flat)
        bsz, t, cin_x = x.shape

        def kernel(*refs):
            x_ref = refs[0]
            p = jax.tree_util.tree_unflatten(treedef, refs[1:1 + n_flat])
            out_ref = refs[1 + n_flat]
            feat = refs[2 + n_flat]          # (pad + T + pad, f_max) f32 scratch
            mid = refs[3 + n_flat]           # (pad + T + pad, g_max) f32 scratch

            def mm(a, w):                    # bf16 MXU matmul, f32 accumulate
                return jnp.dot(a.astype(jnp.bfloat16), w,
                               preferred_element_type=jnp.float32)

            def prelu(y, alpha_ref):
                a = alpha_ref[...]
                return jnp.where(y > 0.0, y, a * y)

            def conv_stage(buf, cin, d, s):
                # Merged multi-kernel dilated "same" conv (+ folded BN) + PReLU:
                # ks_max shifted matmuls against the zero-padded VMEM buffer.
                acc = jnp.zeros((t, s['b'].shape[-1]), jnp.float32)
                for j in range(ks_max):
                    off = pad_rows + (j - half) * d
                    acc = acc + mm(buf[off:off + t, 0:cin], s['w'][j])
                return prelu(acc + s['b'][...], s['alpha'])

            # Zero scratch so padding rows read as zeros on every grid step.
            feat[...] = jnp.zeros(feat.shape, feat.dtype)
            mid[...] = jnp.zeros(mid.shape, mid.dtype)

            # transition 0: 1x1 conv (BN folded into w/b) + PReLU
            t0 = p['transition0']
            feat[pad_rows:pad_rows + t, 0:r] = prelu(
                mm(x_ref[...], t0['w'][...]) + t0['b'][...], t0['alpha'])

            for bi, blk in enumerate(plan['layers']):
                for li, lp in enumerate(blk):
                    cin, g, d = lp['cin'], lp['g'], lp['d']
                    lpar = p['blocks'][bi][li]
                    h0 = conv_stage(feat, cin, d, lpar['s0'])
                    mid[pad_rows:pad_rows + t, 0:g] = h0
                    h1 = conv_stage(mid, g, d, lpar['s1'])
                    if 'ds_w' in lpar:       # 1x1 residual projection
                        res = mm(feat[pad_rows:pad_rows + t, 0:cin],
                                 lpar['ds_w'][...]) + lpar['ds_b'][...]
                    else:
                        res = feat[pad_rows:pad_rows + t, 0:cin]
                    # residual add + final PReLU, written at the layer's channel
                    # offset (dense-block growth without concat copies).
                    feat[pad_rows:pad_rows + t, cin:cin + g] = prelu(
                        h1 + res, lpar['alpha_out'])
                f_blk = blk[-1]['cin'] + blk[-1]['g']
                if bi != len(plan['layers']) - 1:
                    tp = p['transitions'][bi]
                    feat[pad_rows:pad_rows + t, 0:r] = prelu(
                        mm(feat[pad_rows:pad_rows + t, 0:f_blk], tp['w'][...])
                        + tp['b'][...], tp['alpha'])

            # final BatchNorm1d (folded) + both Linear heads as one matmul.
            f_total = plan['num_features']
            out_ref[...] = (mm(feat[pad_rows:pad_rows + t, 0:f_total],
                               p['head_w'][...]) + p['head_b'][...]
                            ).astype(out_ref.dtype)

        in_specs = [pl.BlockSpec((None, t, cin_x), lambda b: (b, 0, 0))]
        for arr in flat:
            in_specs.append(
                pl.BlockSpec(arr.shape, lambda b, _nd=arr.ndim: (0,) * _nd))

        out = pl.pallas_call(
            kernel,
            out_shape=jax.ShapeDtypeStruct((bsz, t, n_out), jnp.float32),
            grid=(bsz,),
            in_specs=in_specs,
            out_specs=pl.BlockSpec((None, t, n_out), lambda b: (b, 0, 0)),
            scratch_shapes=[
                pltpu.VMEM((2 * pad_rows + t, f_max), jnp.float32),
                pltpu.VMEM((2 * pad_rows + t, g_max), jnp.float32),
            ],
            compiler_params=pltpu.CompilerParams(
                dimension_semantics=("parallel",)),
        )(x.astype(jnp.float32), *flat)
        return out[..., num_tokens:], out[..., :num_tokens]   # (hidden, logits)

    def forward(params, x, lengths=None, B=None):
        # consensus_func (_sequence_batch) is identity; lengths/B are unused.
        del lengths, B
        return _fwd(params, x)

    return forward


# ----------------------------------------------------------------------------
# Pure-JAX reference (same folded parameters) for a numerical cross-check.
# ----------------------------------------------------------------------------
def dense_tcn_reference(params, plan, x):
    ks_max = plan['ks_max']
    half = (ks_max - 1) // 2

    def mm(a, w):
        return jnp.dot(a.astype(jnp.bfloat16), w, preferred_element_type=jnp.float32)

    def prelu(y, a):
        a = a.reshape((1,) * (y.ndim - 1) + (-1,))
        return jnp.where(y > 0.0, y, a * y)

    def conv_stage(xin, d, s):
        b_, t_, c_ = xin.shape
        pad = half * d
        xp = jnp.pad(xin, ((0, 0), (pad, pad), (0, 0)))
        acc = jnp.zeros((b_, t_, s['b'].shape[-1]), jnp.float32)
        for j in range(ks_max):
            xs = xp[:, j * d:j * d + t_, :].reshape(b_ * t_, c_)
            acc = acc + mm(xs, s['w'][j]).reshape(b_, t_, -1)
        return prelu(acc + s['b'].reshape(1, 1, -1), s['alpha'])

    bsz, t, _ = x.shape
    t0 = params['transition0']
    feats = prelu(mm(x.reshape(bsz * t, -1), t0['w']).reshape(bsz, t, -1)
                  + t0['b'].reshape(1, 1, -1), t0['alpha'])
    for bi, blk in enumerate(plan['layers']):
        for li, lp in enumerate(blk):
            lpar = params['blocks'][bi][li]
            h0 = conv_stage(feats, lp['d'], lpar['s0'])
            h1 = conv_stage(h0, lp['d'], lpar['s1'])
            if 'ds_w' in lpar:
                res = (mm(feats.reshape(bsz * t, -1), lpar['ds_w'])
                       + lpar['ds_b']).reshape(bsz, t, -1)
            else:
                res = feats
            new = prelu(h1 + res, lpar['alpha_out'])
            feats = jnp.concatenate([feats, new], axis=-1)
        if bi != len(plan['layers']) - 1:
            tp = params['transitions'][bi]
            feats = prelu(mm(feats.reshape(bsz * t, -1), tp['w']).reshape(bsz, t, -1)
                          + tp['b'].reshape(1, 1, -1), tp['alpha'])
    out = (mm(feats.reshape(bsz * t, -1), params['head_w'])
           + params['head_b']).reshape(bsz, t, -1)
    return out[..., plan['num_tokens']:], out[..., :plan['num_tokens']]


# ----------------------------------------------------------------------------
if __name__ == "__main__":
    block_config = [2, 2]
    growth_rate_set = [8, 8]
    input_size = 16
    reduced_size = 16
    num_tokens = 10
    kernel_size_set = [3, 5]
    dilation_size_set = [1, 2]

    key = jax.random.PRNGKey(0)
    pkey, xkey = jax.random.split(key)
    params, plan = init_dense_tcn(pkey, block_config, growth_rate_set, input_size,
                                  reduced_size, num_tokens, kernel_size_set,
                                  dilation_size_set)
    forward = build_forward(plan)

    Bsz, T = 2, 16
    x = jax.random.normal(xkey, (Bsz, T, input_size), jnp.float32)
    lengths = jnp.full((Bsz,), T, jnp.int32)

    hidden, logits = forward(params, x, lengths, Bsz)
    jax.block_until_ready((hidden, logits))

    num_features = reduced_size + block_config[-1] * growth_rate_set[-1]
    assert plan['num_features'] == num_features
    assert hidden.shape == (Bsz, T, input_size)
    assert logits.shape == (Bsz, T, num_tokens)
    assert bool(jnp.all(jnp.isfinite(hidden))) and bool(jnp.all(jnp.isfinite(logits)))

    ref_hidden, ref_logits = dense_tcn_reference(params, plan, x)
    err = max(float(jnp.max(jnp.abs(hidden - ref_hidden))),
              float(jnp.max(jnp.abs(logits - ref_logits))))
    assert err < 2e-2, f"kernel/reference mismatch: max abs err = {err}"

    print("KERNEL_OK")
</pallas_src>

<mosaic_0001>
module attributes {stable_mosaic.version = 11 : i64} {
  func.func @kernel(%arg0: i32, %arg1: memref<1x16x16xf32, #tpu.memory_space<vmem>>, %arg2: memref<1x8xf32, #tpu.memory_space<vmem>>, %arg3: memref<1x8xf32, #tpu.memory_space<vmem>>, %arg4: memref<16x8xbf16, #tpu.memory_space<vmem>>, %arg5: memref<1x8xf32, #tpu.memory_space<vmem>>, %arg6: memref<1x8xf32, #tpu.memory_space<vmem>>, %arg7: memref<5x16x8xbf16, #tpu.memory_space<vmem>>, %arg8: memref<1x8xf32, #tpu.memory_space<vmem>>, %arg9: memref<1x8xf32, #tpu.memory_space<vmem>>, %arg10: memref<5x8x8xbf16, #tpu.memory_space<vmem>>, %arg11: memref<1x8xf32, #tpu.memory_space<vmem>>, %arg12: memref<1x8xf32, #tpu.memory_space<vmem>>, %arg13: memref<24x8xbf16, #tpu.memory_space<vmem>>, %arg14: memref<1x8xf32, #tpu.memory_space<vmem>>, %arg15: memref<1x8xf32, #tpu.memory_space<vmem>>, %arg16: memref<5x24x8xbf16, #tpu.memory_space<vmem>>, %arg17: memref<1x8xf32, #tpu.memory_space<vmem>>, %arg18: memref<1x8xf32, #tpu.memory_space<vmem>>, %arg19: memref<5x8x8xbf16, #tpu.memory_space<vmem>>, %arg20: memref<1x8xf32, #tpu.memory_space<vmem>>, %arg21: memref<1x8xf32, #tpu.memory_space<vmem>>, %arg22: memref<16x8xbf16, #tpu.memory_space<vmem>>, %arg23: memref<1x8xf32, #tpu.memory_space<vmem>>, %arg24: memref<1x8xf32, #tpu.memory_space<vmem>>, %arg25: memref<5x16x8xbf16, #tpu.memory_space<vmem>>, %arg26: memref<1x8xf32, #tpu.memory_space<vmem>>, %arg27: memref<1x8xf32, #tpu.memory_space<vmem>>, %arg28: memref<5x8x8xbf16, #tpu.memory_space<vmem>>, %arg29: memref<1x8xf32, #tpu.memory_space<vmem>>, %arg30: memref<1x8xf32, #tpu.memory_space<vmem>>, %arg31: memref<24x8xbf16, #tpu.memory_space<vmem>>, %arg32: memref<1x8xf32, #tpu.memory_space<vmem>>, %arg33: memref<1x8xf32, #tpu.memory_space<vmem>>, %arg34: memref<5x24x8xbf16, #tpu.memory_space<vmem>>, %arg35: memref<1x8xf32, #tpu.memory_space<vmem>>, %arg36: memref<1x8xf32, #tpu.memory_space<vmem>>, %arg37: memref<5x8x8xbf16, #tpu.memory_space<vmem>>, %arg38: memref<1x26xf32, #tpu.memory_space<vmem>>, %arg39: memref<32x26xbf16, #tpu.memory_space<vmem>>, %arg40: memref<1x16xf32, #tpu.memory_space<vmem>>, %arg41: memref<1x16xf32, #tpu.memory_space<vmem>>, %arg42: memref<16x16xbf16, #tpu.memory_space<vmem>>, %arg43: memref<1x16xf32, #tpu.memory_space<vmem>>, %arg44: memref<1x16xf32, #tpu.memory_space<vmem>>, %arg45: memref<32x16xbf16, #tpu.memory_space<vmem>>, %arg46: memref<1x16x26xf32, #tpu.memory_space<vmem>>, %arg47: memref<32x32xf32, #tpu.memory_space<vmem>>, %arg48: memref<32x8xf32, #tpu.memory_space<vmem>>) attributes {dimension_semantics = [#tpu.dimension_semantics<parallel>], iteration_bounds = array<i64: 2>, scalar_prefetch = 0 : i64, scratch_operands = 2 : i64, tpu.core_type = #tpu.core_type<tc>, window_params = [{transform_indices = @transform_0, window_bounds = array<i64: 1, 16, 16>}, {pipeline_mode = #tpu.pipeline_mode<synchronous>, transform_indices = @transform_1, window_bounds = array<i64: 1, 8>}, {pipeline_mode = #tpu.pipeline_mode<synchronous>, transform_indices = @transform_2, window_bounds = array<i64: 1, 8>}, {pipeline_mode = #tpu.pipeline_mode<synchronous>, transform_indices = @transform_3, window_bounds = array<i64: 16, 8>}, {pipeline_mode = #tpu.pipeline_mode<synchronous>, transform_indices = @transform_4, window_bounds = array<i64: 1, 8>}, {pipeline_mode = #tpu.pipeline_mode<synchronous>, transform_indices = @transform_5, window_bounds = array<i64: 1, 8>}, {pipeline_mode = #tpu.pipeline_mode<synchronous>, transform_indices = @transform_6, window_bounds = array<i64: 5, 16, 8>}, {pipeline_mode = #tpu.pipeline_mode<synchronous>, transform_indices = @transform_7, window_bounds = array<i64: 1, 8>}, {pipeline_mode = #tpu.pipeline_mode<synchronous>, transform_indices = @transform_8, window_bounds = array<i64: 1, 8>}, {pipeline_mode = #tpu.pipeline_mode<synchronous>, transform_indices = @transform_9, window_bounds = array<i64: 5, 8, 8>}, {pipeline_mode = #tpu.pipeline_mode<synchronous>, transform_indices = @transform_10, window_bounds = array<i64: 1, 8>}, {pipeline_mode = #tpu.pipeline_mode<synchronous>, transform_indices = @transform_11, window_bounds = array<i64: 1, 8>}, {pipeline_mode = #tpu.pipeline_mode<synchronous>, transform_indices = @transform_12, window_bounds = array<i64: 24, 8>}, {pipeline_mode = #tpu.pipeline_mode<synchronous>, transform_indices = @transform_13, window_bounds = array<i64: 1, 8>}, {pipeline_mode = #tpu.pipeline_mode<synchronous>, transform_indices = @transform_14, window_bounds = array<i64: 1, 8>}, {pipeline_mode = #tpu.pipeline_mode<synchronous>, transform_indices = @transform_15, window_bounds = array<i64: 5, 24, 8>}, {pipeline_mode = #tpu.pipeline_mode<synchronous>, transform_indices = @transform_16, window_bounds = array<i64: 1, 8>}, {pipeline_mode = #tpu.pipeline_mode<synchronous>, transform_indices = @transform_17, window_bounds = array<i64: 1, 8>}, {pipeline_mode = #tpu.pipeline_mode<synchronous>, transform_indices = @transform_18, window_bounds = array<i64: 5, 8, 8>}, {pipeline_mode = #tpu.pipeline_mode<synchronous>, transform_indices = @transform_19, window_bounds = array<i64: 1, 8>}, {pipeline_mode = #tpu.pipeline_mode<synchronous>, transform_indices = @transform_20, window_bounds = array<i64: 1, 8>}, {pipeline_mode = #tpu.pipeline_mode<synchronous>, transform_indices = @transform_21, window_bounds = array<i64: 16, 8>}, {pipeline_mode = #tpu.pipeline_mode<synchronous>, transform_indices = @transform_22, window_bounds = array<i64: 1, 8>}, {pipeline_mode = #tpu.pipeline_mode<synchronous>, transform_indices = @transform_23, window_bounds = array<i64: 1, 8>}, {pipeline_mode = #tpu.pipeline_mode<synchronous>, transform_indices = @transform_24, window_bounds = array<i64: 5, 16, 8>}, {pipeline_mode = #tpu.pipeline_mode<synchronous>, transform_indices = @transform_25, window_bounds = array<i64: 1, 8>}, {pipeline_mode = #tpu.pipeline_mode<synchronous>, transform_indices = @transform_26, window_bounds = array<i64: 1, 8>}, {pipeline_mode = #tpu.pipeline_mode<synchronous>, transform_indices = @transform_27, window_bounds = array<i64: 5, 8, 8>}, {pipeline_mode = #tpu.pipeline_mode<synchronous>, transform_indices = @transform_28, window_bounds = array<i64: 1, 8>}, {pipeline_mode = #tpu.pipeline_mode<synchronous>, transform_indices = @transform_29, window_bounds = array<i64: 1, 8>}, {pipeline_mode = #tpu.pipeline_mode<synchronous>, transform_indices = @transform_30, window_bounds = array<i64: 24, 8>}, {pipeline_mode = #tpu.pipeline_mode<synchronous>, transform_indices = @transform_31, window_bounds = array<i64: 1, 8>}, {pipeline_mode = #tpu.pipeline_mode<synchronous>, transform_indices = @transform_32, window_bounds = array<i64: 1, 8>}, {pipeline_mode = #tpu.pipeline_mode<synchronous>, transform_indices = @transform_33, window_bounds = array<i64: 5, 24, 8>}, {pipeline_mode = #tpu.pipeline_mode<synchronous>, transform_indices = @transform_34, window_bounds = array<i64: 1, 8>}, {pipeline_mode = #tpu.pipeline_mode<synchronous>, transform_indices = @transform_35, window_bounds = array<i64: 1, 8>}, {pipeline_mode = #tpu.pipeline_mode<synchronous>, transform_indices = @transform_36, window_bounds = array<i64: 5, 8, 8>}, {pipeline_mode = #tpu.pipeline_mode<synchronous>, transform_indices = @transform_37, window_bounds = array<i64: 1, 26>}, {pipeline_mode = #tpu.pipeline_mode<synchronous>, transform_indices = @transform_38, window_bounds = array<i64: 32, 26>}, {pipeline_mode = #tpu.pipeline_mode<synchronous>, transform_indices = @transform_39, window_bounds = array<i64: 1, 16>}, {pipeline_mode = #tpu.pipeline_mode<synchronous>, transform_indices = @transform_40, window_bounds = array<i64: 1, 16>}, {pipeline_mode = #tpu.pipeline_mode<synchronous>, transform_indices = @transform_41, window_bounds = array<i64: 16, 16>}, {pipeline_mode = #tpu.pipeline_mode<synchronous>, transform_indices = @transform_42, window_bounds = array<i64: 1, 16>}, {pipeline_mode = #tpu.pipeline_mode<synchronous>, transform_indices = @transform_43, window_bounds = array<i64: 1, 16>}, {pipeline_mode = #tpu.pipeline_mode<synchronous>, transform_indices = @transform_44, window_bounds = array<i64: 32, 16>}, {transform_indices = @transform_45, window_bounds = array<i64: 1, 16, 26>}]} {
    %cst = arith.constant 0.000000e+00 : f32
    %0 = vector.broadcast %cst : f32 to vector<32x32xf32>
    %c0 = arith.constant 0 : index
    %c0_0 = arith.constant 0 : index
    %1 = vector.load %arg47[%c0, %c0_0] : memref<32x32xf32, #tpu.memory_space<vmem>>, vector<32x32xf32>
    tpu.vector_store %arg47[%c0, %c0_0], %0 {strides = array<i32>} : memref<32x32xf32, #tpu.memory_space<vmem>>, vector<32x32xf32>,
    %cst_1 = arith.constant 0.000000e+00 : f32
    %2 = vector.broadcast %cst_1 : f32 to vector<32x8xf32>
    %c0_2 = arith.constant 0 : index
    %c0_3 = arith.constant 0 : index
    %3 = vector.load %arg48[%c0_2, %c0_3] : memref<32x8xf32, #tpu.memory_space<vmem>>, vector<32x8xf32>
    tpu.vector_store %arg48[%c0_2, %c0_3], %2 {strides = array<i32>} : memref<32x8xf32, #tpu.memory_space<vmem>>, vector<32x8xf32>,
    %c0_4 = arith.constant 0 : index
    %c0_5 = arith.constant 0 : index
    %c0_6 = arith.constant 0 : index
    %4 = vector.load %arg1[%c0_4, %c0_5, %c0_6] : memref<1x16x16xf32, #tpu.memory_space<vmem>>, vector<1x16x16xf32>
    %5 = vector.shape_cast %4 : vector<1x16x16xf32> to vector<16x16xf32>
    %c0_7 = arith.constant 0 : index
    %c0_8 = arith.constant 0 : index
    %6 = vector.load %arg42[%c0_7, %c0_8] : memref<16x16xbf16, #tpu.memory_space<vmem>>, vector<16x16xbf16>
    %7 = arith.truncf %5 : vector<16x16xf32> to vector<16x16xbf16>
    %cst_9 = arith.constant dense<0.000000e+00> : vector<16x16xf32>
    %8 = tpu.matmul %7, %6, %cst_9 {dimension_numbers = #tpu.dot_dimension_numbers<[1], [0], [0], [1], [0, 0, 1, 1], [], []>} : vector<16x16xbf16>, vector<16x16xbf16>, vector<16x16xf32> -> vector<16x16xf32>
    %c0_10 = arith.constant 0 : index
    %c0_11 = arith.constant 0 : index
    %9 = vector.load %arg41[%c0_10, %c0_11] : memref<1x16xf32, #tpu.memory_space<vmem>>, vector<1x16xf32>
    %10 = vector.broadcast %9 : vector<1x16xf32> to vector<16x16xf32>
    %11 = arith.addf %8, %10 : vector<16x16xf32>
    %c0_12 = arith.constant 0 : index
    %c0_13 = arith.constant 0 : index
    %12 = vector.load %arg40[%c0_12, %c0_13] : memref<1x16xf32, #tpu.memory_space<vmem>>, vector<1x16xf32>
    %cst_14 = arith.constant 0.000000e+00 : f32
    %13 = vector.broadcast %cst_14 : f32 to vector<16x16xf32>
    %14 = arith.cmpf ogt, %11, %13 : vector<16x16xf32>
    %15 = vector.broadcast %12 : vector<1x16xf32> to vector<16x16xf32>
    %16 = arith.mulf %15, %11 : vector<16x16xf32>
    %17 = arith.select %14, %11, %16 : vector<16x16xi1>, vector<16x16xf32>
    %c8 = arith.constant 8 : index
    %c0_15 = arith.constant 0 : index
    %18 = vector.load %arg47[%c8, %c0_15] : memref<32x32xf32, #tpu.memory_space<vmem>>, vector<16x16xf32>
    tpu.vector_store %arg47[%c8, %c0_15], %17 {strides = array<i32>} : memref<32x32xf32, #tpu.memory_space<vmem>>, vector<16x16xf32>,
    %cst_16 = arith.constant 0.000000e+00 : f32
    %19 = vector.broadcast %cst_16 : f32 to vector<16x8xf32>
    %c6 = arith.constant 6 : index
    %c0_17 = arith.constant 0 : index
    %20 = vector.load %arg47[%c6, %c0_17] : memref<32x32xf32, #tpu.memory_space<vmem>>, vector<16x16xf32>
    %c0_18 = arith.constant 0 : index
    %c0_19 = arith.constant 0 : index
    %c0_20 = arith.constant 0 : index
    %21 = vector.load %arg7[%c0_18, %c0_19, %c0_20] : memref<5x16x8xbf16, #tpu.memory_space<vmem>>, vector<1x16x8xbf16>
    %22 = vector.shape_cast %21 : vector<1x16x8xbf16> to vector<16x8xbf16>
    %23 = arith.truncf %20 : vector<16x16xf32> to vector<16x16xbf16>
    %cst_21 = arith.constant dense<0.000000e+00> : vector<16x8xf32>
    %24 = tpu.matmul %23, %22, %cst_21 {dimension_numbers = #tpu.dot_dimension_numbers<[1], [0], [0], [1], [0, 0, 1, 1], [], []>} : vector<16x16xbf16>, vector<16x8xbf16>, vector<16x8xf32> -> vector<16x8xf32>
    %25 = arith.addf %19, %24 : vector<16x8xf32>
    %c7 = arith.constant 7 : index
    %c0_22 = arith.constant 0 : index
    %26 = vector.load %arg47[%c7, %c0_22] : memref<32x32xf32, #tpu.memory_space<vmem>>, vector<16x16xf32>
    %c1 = arith.constant 1 : index
    %c0_23 = arith.constant 0 : index
    %c0_24 = arith.constant 0 : index
    %27 = vector.load %arg7[%c1, %c0_23, %c0_24] : memref<5x16x8xbf16, #tpu.memory_space<vmem>>, vector<1x16x8xbf16>
    %28 = vector.shape_cast %27 : vector<1x16x8xbf16> to vector<16x8xbf16>
    %29 = arith.truncf %26 : vector<16x16xf32> to vector<16x16xbf16>
    %cst_25 = arith.constant dense<0.000000e+00> : vector<16x8xf32>
    %30 = tpu.matmul %29, %28, %cst_25 {dimension_numbers = #tpu.dot_dimension_numbers<[1], [0], [0], [1], [0, 0, 1, 1], [], []>} : vector<16x16xbf16>, vector<16x8xbf16>, vector<16x8xf32> -> vector<16x8xf32>
    %31 = arith.addf %25, %30 : vector<16x8xf32>
    %c8_26 = arith.constant 8 : index
    %c0_27 = arith.constant 0 : index
    %32 = vector.load %arg47[%c8_26, %c0_27] : memref<32x32xf32, #tpu.memory_space<vmem>>, vector<16x16xf32>
    %c2 = arith.constant 2 : index
    %c0_28 = arith.constant 0 : index
    %c0_29 = arith.constant 0 : index
    %33 = vector.load %arg7[%c2, %c0_28, %c0_29] : memref<5x16x8xbf16, #tpu.memory_space<vmem>>, vector<1x16x8xbf16>
    %34 = vector.shape_cast %33 : vector<1x16x8xbf16> to vector<16x8xbf16>
    %35 = arith.truncf %32 : vector<16x16xf32> to vector<16x16xbf16>
    %cst_30 = arith.constant dense<0.000000e+00> : vector<16x8xf32>
    %36 = tpu.matmul %35, %34, %cst_30 {dimension_numbers = #tpu.dot_dimension_numbers<[1], [0], [0], [1], [0, 0, 1, 1], [], []>} : vector<16x16xbf16>, vector<16x8xbf16>, vector<16x8xf32> -> vector<16x8xf32>
    %37 = arith.addf %31, %36 : vector<16x8xf32>
    %c9 = arith.constant 9 : index
    %c0_31 = arith.constant 0 : index
    %38 = vector.load %arg47[%c9, %c0_31] : memref<32x32xf32, #tpu.memory_space<vmem>>, vector<16x16xf32>
    %c3 = arith.constant 3 : index
    %c0_32 = arith.constant 0 : index
    %c0_33 = arith.constant 0 : index
    %39 = vector.load %arg7[%c3, %c0_32, %c0_33] : memref<5x16x8xbf16, #tpu.memory_space<vmem>>, vector<1x16x8xbf16>
    %40 = vector.shape_cast %39 : vector<1x16x8xbf16> to vector<16x8xbf16>
    %41 = arith.truncf %38 : vector<16x16xf32> to vector<16x16xbf16>
    %cst_34 = arith.constant dense<0.000000e+00> : vector<16x8xf32>
    %42 = tpu.matmul %41, %40, %cst_34 {dimension_numbers = #tpu.dot_dimension_numbers<[1], [0], [0], [1], [0, 0, 1, 1], [], []>} : vector<16x16xbf16>, vector<16x8xbf16>, vector<16x8xf32> -> vector<16x8xf32>
    %43 = arith.addf %37, %42 : vector<16x8xf32>
    %c10 = arith.constant 10 : index
    %c0_35 = arith.constant 0 : index
    %44 = vector.load %arg47[%c10, %c0_35] : memref<32x32xf32, #tpu.memory_space<vmem>>, vector<16x16xf32>
    %c4 = arith.constant 4 : index
    %c0_36 = arith.constant 0 : index
    %c0_37 = arith.constant 0 : index
    %45 = vector.load %arg7[%c4, %c0_36, %c0_37] : memref<5x16x8xbf16, #tpu.memory_space<vmem>>, vector<1x16x8xbf16>
    %46 = vector.shape_cast %45 : vector<1x16x8xbf16> to vector<16x8xbf16>
    %47 = arith.truncf %44 : vector<16x16xf32> to vector<16x16xbf16>
    %cst_38 = arith.constant dense<0.000000e+00> : vector<16x8xf32>
    %48 = tpu.matmul %47, %46, %cst_38 {dimension_numbers = #tpu.dot_dimension_numbers<[1], [0], [0], [1], [0, 0, 1, 1], [], []>} : vector<16x16xbf16>, vector<16x8xbf16>, vector<16x8xf32> -> vector<16x8xf32>
    %49 = arith.addf %43, %48 : vector<16x8xf32>
    %c0_39 = arith.constant 0 : index
    %c0_40 = arith.constant 0 : index
    %50 = vector.load %arg6[%c0_39, %c0_40] : memref<1x8xf32, #tpu.memory_space<vmem>>, vector<1x8xf32>
    %51 = vector.broadcast %50 : vector<1x8xf32> to vector<16x8xf32>
    %52 = arith.addf %49, %51 : vector<16x8xf32>
    %c0_41 = arith.constant 0 : index
    %c0_42 = arith.constant 0 : index
    %53 = vector.load %arg5[%c0_41, %c0_42] : memref<1x8xf32, #tpu.memory_space<vmem>>, vector<1x8xf32>
    %cst_43 = arith.constant 0.000000e+00 : f32
    %54 = vector.broadcast %cst_43 : f32 to vector<16x8xf32>
    %55 = arith.cmpf ogt, %52, %54 : vector<16x8xf32>
    %56 = vector.broadcast %53 : vector<1x8xf32> to vector<16x8xf32>
    %57 = arith.mulf %56, %52 : vector<16x8xf32>
    %58 = arith.select %55, %52, %57 : vector<16x8xi1>, vector<16x8xf32>
    %c8_44 = arith.constant 8 : index
    %c0_45 = arith.constant 0 : index
    %59 = vector.load %arg48[%c8_44, %c0_45] : memref<32x8xf32, #tpu.memory_space<vmem>>, vector<16x8xf32>
    tpu.vector_store %arg48[%c8_44, %c0_45], %58 {strides = array<i32>} : memref<32x8xf32, #tpu.memory_space<vmem>>, vector<16x8xf32>,
    %cst_46 = arith.constant 0.000000e+00 : f32
    %60 = vector.broadcast %cst_46 : f32 to vector<16x8xf32>
    %c6_47 = arith.constant 6 : index
    %c0_48 = arith.constant 0 : index
    %61 = vector.load %arg48[%c6_47, %c0_48] : memref<32x8xf32, #tpu.memory_space<vmem>>, vector<16x8xf32>
    %c0_49 = arith.constant 0 : index
    %c0_50 = arith.constant 0 : index
    %c0_51 = arith.constant 0 : index
    %62 = vector.load %arg10[%c0_49, %c0_50, %c0_51] : memref<5x8x8xbf16, #tpu.memory_space<vmem>>, vector<1x8x8xbf16>
    %63 = vector.shape_cast %62 : vector<1x8x8xbf16> to vector<8x8xbf16>
    %64 = arith.truncf %61 : vector<16x8xf32> to vector<16x8xbf16>
    %cst_52 = arith.constant dense<0.000000e+00> : vector<16x8xf32>
    %65 = tpu.matmul %64, %63, %cst_52 {dimension_numbers = #tpu.dot_dimension_numbers<[1], [0], [0], [1], [0, 0, 1, 1], [], []>} : vector<16x8xbf16>, vector<8x8xbf16>, vector<16x8xf32> -> vector<16x8xf32>
    %66 = arith.addf %60, %65 : vector<16x8xf32>
    %c7_53 = arith.constant 7 : index
    %c0_54 = arith.constant 0 : index
    %67 = vector.load %arg48[%c7_53, %c0_54] : memref<32x8xf32, #tpu.memory_space<vmem>>, vector<16x8xf32>
    %c1_55 = arith.constant 1 : index
    %c0_56 = arith.constant 0 : index
    %c0_57 = arith.constant 0 : index
    %68 = vector.load %arg10[%c1_55, %c0_56, %c0_57] : memref<5x8x8xbf16, #tpu.memory_space<vmem>>, vector<1x8x8xbf16>
    %69 = vector.shape_cast %68 : vector<1x8x8xbf16> to vector<8x8xbf16>
    %70 = arith.truncf %67 : vector<16x8xf32> to vector<16x8xbf16>
    %cst_58 = arith.constant dense<0.000000e+00> : vector<16x8xf32>
    %71 = tpu.matmul %70, %69, %cst_58 {dimension_numbers = #tpu.dot_dimension_numbers<[1], [0], [0], [1], [0, 0, 1, 1], [], []>} : vector<16x8xbf16>, vector<8x8xbf16>, vector<16x8xf32> -> vector<16x8xf32>
    %72 = arith.addf %66, %71 : vector<16x8xf32>
    %c8_59 = arith.constant 8 : index
    %c0_60 = arith.constant 0 : index
    %73 = vector.load %arg48[%c8_59, %c0_60] : memref<32x8xf32, #tpu.memory_space<vmem>>, vector<16x8xf32>
    %c2_61 = arith.constant 2 : index
    %c0_62 = arith.constant 0 : index
    %c0_63 = arith.constant 0 : index
    %74 = vector.load %arg10[%c2_61, %c0_62, %c0_63] : memref<5x8x8xbf16, #tpu.memory_space<vmem>>, vector<1x8x8xbf16>
    %75 = vector.shape_cast %74 : vector<1x8x8xbf16> to vector<8x8xbf16>
    %76 = arith.truncf %73 : vector<16x8xf32> to vector<16x8xbf16>
    %cst_64 = arith.constant dense<0.000000e+00> : vector<16x8xf32>
    %77 = tpu.matmul %76, %75, %cst_64 {dimension_numbers = #tpu.dot_dimension_numbers<[1], [0], [0], [1], [0, 0, 1, 1], [], []>} : vector<16x8xbf16>, vector<8x8xbf16>, vector<16x8xf32> -> vector<16x8xf32>
    %78 = arith.addf %72, %77 : vector<16x8xf32>
    %c9_65 = arith.constant 9 : index
    %c0_66 = arith.constant 0 : index
    %79 = vector.load %arg48[%c9_65, %c0_66] : memref<32x8xf32, #tpu.memory_space<vmem>>, vector<16x8xf32>
    %c3_67 = arith.constant 3 : index
    %c0_68 = arith.constant 0 : index
    %c0_69 = arith.constant 0 : index
    %80 = vector.load %arg10[%c3_67, %c0_68, %c0_69] : memref<5x8x8xbf16, #tpu.memory_space<vmem>>, vector<1x8x8xbf16>
    %81 = vector.shape_cast %80 : vector<1x8x8xbf16> to vector<8x8xbf16>
    %82 = arith.truncf %79 : vector<16x8xf32> to vector<16x8xbf16>
    %cst_70 = arith.constant dense<0.000000e+00> : vector<16x8xf32>
    %83 = tpu.matmul %82, %81, %cst_70 {dimension_numbers = #tpu.dot_dimension_numbers<[1], [0], [0], [1], [0, 0, 1, 1], [], []>} : vector<16x8xbf16>, vector<8x8xbf16>, vector<16x8xf32> -> vector<16x8xf32>
    %84 = arith.addf %78, %83 : vector<16x8xf32>
    %c10_71 = arith.constant 10 : index
    %c0_72 = arith.constant 0 : index
    %85 = vector.load %arg48[%c10_71, %c0_72] : memref<32x8xf32, #tpu.memory_space<vmem>>, vector<16x8xf32>
    %c4_73 = arith.constant 4 : index
    %c0_74 = arith.constant 0 : index
    %c0_75 = arith.constant 0 : index
    %86 = vector.load %arg10[%c4_73, %c0_74, %c0_75] : memref<5x8x8xbf16, #tpu.memory_space<vmem>>, vector<1x8x8xbf16>
    %87 = vector.shape_cast %86 : vector<1x8x8xbf16> to vector<8x8xbf16>
    %88 = arith.truncf %85 : vector<16x8xf32> to vector<16x8xbf16>
    %cst_76 = arith.constant dense<0.000000e+00> : vector<16x8xf32>
    %89 = tpu.matmul %88, %87, %cst_76 {dimension_numbers = #tpu.dot_dimension_numbers<[1], [0], [0], [1], [0, 0, 1, 1], [], []>} : vector<16x8xbf16>, vector<8x8xbf16>, vector<16x8xf32> -> vector<16x8xf32>
    %90 = arith.addf %84, %89 : vector<16x8xf32>
    %c0_77 = arith.constant 0 : index
    %c0_78 = arith.constant 0 : index
    %91 = vector.load %arg9[%c0_77, %c0_78] : memref<1x8xf32, #tpu.memory_space<vmem>>, vector<1x8xf32>
    %92 = vector.broadcast %91 : vector<1x8xf32> to vector<16x8xf32>
    %93 = arith.addf %90, %92 : vector<16x8xf32>
    %c0_79 = arith.constant 0 : index
    %c0_80 = arith.constant 0 : index
    %94 = vector.load %arg8[%c0_79, %c0_80] : memref<1x8xf32, #tpu.memory_space<vmem>>, vector<1x8xf32>
    %cst_81 = arith.constant 0.000000e+00 : f32
    %95 = vector.broadcast %cst_81 : f32 to vector<16x8xf32>
    %96 = arith.cmpf ogt, %93, %95 : vector<16x8xf32>
    %97 = vector.broadcast %94 : vector<1x8xf32> to vector<16x8xf32>
    %98 = arith.mulf %97, %93 : vector<16x8xf32>
    %99 = arith.select %96, %93, %98 : vector<16x8xi1>, vector<16x8xf32>
    %c8_82 = arith.constant 8 : index
    %c0_83 = arith.constant 0 : index
    %100 = vector.load %arg47[%c8_82, %c0_83] : memref<32x32xf32, #tpu.memory_space<vmem>>, vector<16x16xf32>
    %c0_84 = arith.constant 0 : index
    %c0_85 = arith.constant 0 : index
    %101 = vector.load %arg4[%c0_84, %c0_85] : memref<16x8xbf16, #tpu.memory_space<vmem>>, vector<16x8xbf16>
    %102 = arith.truncf %100 : vector<16x16xf32> to vector<16x16xbf16>
    %cst_86 = arith.constant dense<0.000000e+00> : vector<16x8xf32>
    %103 = tpu.matmul %102, %101, %cst_86 {dimension_numbers = #tpu.dot_dimension_numbers<[1], [0], [0], [1], [0, 0, 1, 1], [], []>} : vector<16x16xbf16>, vector<16x8xbf16>, vector<16x8xf32> -> vector<16x8xf32>
    %c0_87 = arith.constant 0 : index
    %c0_88 = arith.constant 0 : index
    %104 = vector.load %arg3[%c0_87, %c0_88] : memref<1x8xf32, #tpu.memory_space<vmem>>, vector<1x8xf32>
    %105 = vector.broadcast %104 : vector<1x8xf32> to vector<16x8xf32>
    %106 = arith.addf %103, %105 : vector<16x8xf32>
    %107 = arith.addf %99, %106 : vector<16x8xf32>
    %c0_89 = arith.constant 0 : index
    %c0_90 = arith.constant 0 : index
    %108 = vector.load %arg2[%c0_89, %c0_90] : memref<1x8xf32, #tpu.memory_space<vmem>>, vector<1x8xf32>
    %cst_91 = arith.constant 0.000000e+00 : f32
    %109 = vector.broadcast %cst_91 : f32 to vector<16x8xf32>
    %110 = arith.cmpf ogt, %107, %109 : vector<16x8xf32>
    %111 = vector.broadcast %108 : vector<1x8xf32> to vector<16x8xf32>
    %112 = arith.mulf %111, %107 : vector<16x8xf32>
    %113 = arith.select %110, %107, %112 : vector<16x8xi1>, vector<16x8xf32>
    %c8_92 = arith.constant 8 : index
    %c16 = arith.constant 16 : index
    %114 = vector.load %arg47[%c8_92, %c16] : memref<32x32xf32, #tpu.memory_space<vmem>>, vector<16x8xf32>
    tpu.vector_store %arg47[%c8_92, %c16], %113 {strides = array<i32>} : memref<32x32xf32, #tpu.memory_space<vmem>>, vector<16x8xf32>,
    %cst_93 = arith.constant 0.000000e+00 : f32
    %115 = vector.broadcast %cst_93 : f32 to vector<16x8xf32>
    %c4_94 = arith.constant 4 : index
    %c0_95 = arith.constant 0 : index
    %116 = vector.load %arg47[%c4_94, %c0_95] : memref<32x32xf32, #tpu.memory_space<vmem>>, vector<16x24xf32>
    %c0_96 = arith.constant 0 : index
    %c0_97 = arith.constant 0 : index
    %c0_98 = arith.constant 0 : index
    %117 = vector.load %arg16[%c0_96, %c0_97, %c0_98] : memref<5x24x8xbf16, #tpu.memory_space<vmem>>, vector<1x24x8xbf16>
    %118 = vector.shape_cast %117 : vector<1x24x8xbf16> to vector<24x8xbf16>
    %119 = arith.truncf %116 : vector<16x24xf32> to vector<16x24xbf16>
    %cst_99 = arith.constant dense<0.000000e+00> : vector<16x8xf32>
    %120 = tpu.matmul %119, %118, %cst_99 {dimension_numbers = #tpu.dot_dimension_numbers<[1], [0], [0], [1], [0, 0, 1, 1], [], []>} : vector<16x24xbf16>, vector<24x8xbf16>, vector<16x8xf32> -> vector<16x8xf32>
    %121 = arith.addf %115, %120 : vector<16x8xf32>
    %c6_100 = arith.constant 6 : index
    %c0_101 = arith.constant 0 : index
    %122 = vector.load %arg47[%c6_100, %c0_101] : memref<32x32xf32, #tpu.memory_space<vmem>>, vector<16x24xf32>
    %c1_102 = arith.constant 1 : index
    %c0_103 = arith.constant 0 : index
    %c0_104 = arith.constant 0 : index
    %123 = vector.load %arg16[%c1_102, %c0_103, %c0_104] : memref<5x24x8xbf16, #tpu.memory_space<vmem>>, vector<1x24x8xbf16>
    %124 = vector.shape_cast %123 : vector<1x24x8xbf16> to vector<24x8xbf16>
    %125 = arith.truncf %122 : vector<16x24xf32> to vector<16x24xbf16>
    %cst_105 = arith.constant dense<0.000000e+00> : vector<16x8xf32>
    %126 = tpu.matmul %125, %124, %cst_105 {dimension_numbers = #tpu.dot_dimension_numbers<[1], [0], [0], [1], [0, 0, 1, 1], [], []>} : vector<16x24xbf16>, vector<24x8xbf16>, vector<16x8xf32> -> vector<16x8xf32>
    %127 = arith.addf %121, %126 : vector<16x8xf32>
    %c8_106 = arith.constant 8 : index
    %c0_107 = arith.constant 0 : index
    %128 = vector.load %arg47[%c8_106, %c0_107] : memref<32x32xf32, #tpu.memory_space<vmem>>, vector<16x24xf32>
    %c2_108 = arith.constant 2 : index
    %c0_109 = arith.constant 0 : index
    %c0_110 = arith.constant 0 : index
    %129 = vector.load %arg16[%c2_108, %c0_109, %c0_110] : memref<5x24x8xbf16, #tpu.memory_space<vmem>>, vector<1x24x8xbf16>
    %130 = vector.shape_cast %129 : vector<1x24x8xbf16> to vector<24x8xbf16>
    %131 = arith.truncf %128 : vector<16x24xf32> to vector<16x24xbf16>
    %cst_111 = arith.constant dense<0.000000e+00> : vector<16x8xf32>
    %132 = tpu.matmul %131, %130, %cst_111 {dimension_numbers = #tpu.dot_dimension_numbers<[1], [0], [0], [1], [0, 0, 1, 1], [], []>} : vector<16x24xbf16>, vector<24x8xbf16>, vector<16x8xf32> -> vector<16x8xf32>
    %133 = arith.addf %127, %132 : vector<16x8xf32>
    %c10_112 = arith.constant 10 : index
    %c0_113 = arith.constant 0 : index
    %134 = vector.load %arg47[%c10_112, %c0_113] : memref<32x32xf32, #tpu.memory_space<vmem>>, vector<16x24xf32>
    %c3_114 = arith.constant 3 : index
    %c0_115 = arith.constant 0 : index
    %c0_116 = arith.constant 0 : index
    %135 = vector.load %arg16[%c3_114, %c0_115, %c0_116] : memref<5x24x8xbf16, #tpu.memory_space<vmem>>, vector<1x24x8xbf16>
    %136 = vector.shape_cast %135 : vector<1x24x8xbf16> to vector<24x8xbf16>
    %137 = arith.truncf %134 : vector<16x24xf32> to vector<16x24xbf16>
    %cst_117 = arith.constant dense<0.000000e+00> : vector<16x8xf32>
    %138 = tpu.matmul %137, %136, %cst_117 {dimension_numbers = #tpu.dot_dimension_numbers<[1], [0], [0], [1], [0, 0, 1, 1], [], []>} : vector<16x24xbf16>, vector<24x8xbf16>, vector<16x8xf32> -> vector<16x8xf32>
    %139 = arith.addf %133, %138 : vector<16x8xf32>
    %c12 = arith.constant 12 : index
    %c0_118 = arith.constant 0 : index
    %140 = vector.load %arg47[%c12, %c0_118] : memref<32x32xf32, #tpu.memory_space<vmem>>, vector<16x24xf32>
    %c4_119 = arith.constant 4 : index
    %c0_120 = arith.constant 0 : index
    %c0_121 = arith.constant 0 : index
    %141 = vector.load %arg16[%c4_119, %c0_120, %c0_121] : memref<5x24x8xbf16, #tpu.memory_space<vmem>>, vector<1x24x8xbf16>
    %142 = vector.shape_cast %141 : vector<1x24x8xbf16> to vector<24x8xbf16>
    %143 = arith.truncf %140 : vector<16x24xf32> to vector<16x24xbf16>
    %cst_122 = arith.constant dense<0.000000e+00> : vector<16x8xf32>
    %144 = tpu.matmul %143, %142, %cst_122 {dimension_numbers = #tpu.dot_dimension_numbers<[1], [0], [0], [1], [0, 0, 1, 1], [], []>} : vector<16x24xbf16>, vector<24x8xbf16>, vector<16x8xf32> -> vector<16x8xf32>
    %145 = arith.addf %139, %144 : vector<16x8xf32>
    %c0_123 = arith.constant 0 : index
    %c0_124 = arith.constant 0 : index
    %146 = vector.load %arg15[%c0_123, %c0_124] : memref<1x8xf32, #tpu.memory_space<vmem>>, vector<1x8xf32>
    %147 = vector.broadcast %146 : vector<1x8xf32> to vector<16x8xf32>
    %148 = arith.addf %145, %147 : vector<16x8xf32>
    %c0_125 = arith.constant 0 : index
    %c0_126 = arith.constant 0 : index
    %149 = vector.load %arg14[%c0_125, %c0_126] : memref<1x8xf32, #tpu.memory_space<vmem>>, vector<1x8xf32>
    %cst_127 = arith.constant 0.000000e+00 : f32
    %150 = vector.broadcast %cst_127 : f32 to vector<16x8xf32>
    %151 = arith.cmpf ogt, %148, %150 : vector<16x8xf32>
    %152 = vector.broadcast %149 : vector<1x8xf32> to vector<16x8xf32>
    %153 = arith.mulf %152, %148 : vector<16x8xf32>
    %154 = arith.select %151, %148, %153 : vector<16x8xi1>, vector<16x8xf32>
    %c8_128 = arith.constant 8 : index
    %c0_129 = arith.constant 0 : index
    %155 = vector.load %arg48[%c8_128, %c0_129] : memref<32x8xf32, #tpu.memory_space<vmem>>, vector<16x8xf32>
    tpu.vector_store %arg48[%c8_128, %c0_129], %154 {strides = array<i32>} : memref<32x8xf32, #tpu.memory_space<vmem>>, vector<16x8xf32>,
    %cst_130 = arith.constant 0.000000e+00 : f32
    %156 = vector.broadcast %cst_130 : f32 to vector<16x8xf32>
    %c4_131 = arith.constant 4 : index
    %c0_132 = arith.constant 0 : index
    %157 = vector.load %arg48[%c4_131, %c0_132] : memref<32x8xf32, #tpu.memory_space<vmem>>, vector<16x8xf32>
    %c0_133 = arith.constant 0 : index
    %c0_134 = arith.constant 0 : index
    %c0_135 = arith.constant 0 : index
    %158 = vector.load %arg19[%c0_133, %c0_134, %c0_135] : memref<5x8x8xbf16, #tpu.memory_space<vmem>>, vector<1x8x8xbf16>
    %159 = vector.shape_cast %158 : vector<1x8x8xbf16> to vector<8x8xbf16>
    %160 = arith.truncf %157 : vector<16x8xf32> to vector<16x8xbf16>
    %cst_136 = arith.constant dense<0.000000e+00> : vector<16x8xf32>
    %161 = tpu.matmul %160, %159, %cst_136 {dimension_numbers = #tpu.dot_dimension_numbers<[1], [0], [0], [1], [0, 0, 1, 1], [], []>} : vector<16x8xbf16>, vector<8x8xbf16>, vector<16x8xf32> -> vector<16x8xf32>
    %162 = arith.addf %156, %161 : vector<16x8xf32>
    %c6_137 = arith.constant 6 : index
    %c0_138 = arith.constant 0 : index
    %163 = vector.load %arg48[%c6_137, %c0_138] : memref<32x8xf32, #tpu.memory_space<vmem>>, vector<16x8xf32>
    %c1_139 = arith.constant 1 : index
    %c0_140 = arith.constant 0 : index
    %c0_141 = arith.constant 0 : index
    %164 = vector.load %arg19[%c1_139, %c0_140, %c0_141] : memref<5x8x8xbf16, #tpu.memory_space<vmem>>, vector<1x8x8xbf16>
    %165 = vector.shape_cast %164 : vector<1x8x8xbf16> to vector<8x8xbf16>
    %166 = arith.truncf %163 : vector<16x8xf32> to vector<16x8xbf16>
    %cst_142 = arith.constant dense<0.000000e+00> : vector<16x8xf32>
    %167 = tpu.matmul %166, %165, %cst_142 {dimension_numbers = #tpu.dot_dimension_numbers<[1], [0], [0], [1], [0, 0, 1, 1], [], []>} : vector<16x8xbf16>, vector<8x8xbf16>, vector<16x8xf32> -> vector<16x8xf32>
    %168 = arith.addf %162, %167 : vector<16x8xf32>
    %c8_143 = arith.constant 8 : index
    %c0_144 = arith.constant 0 : index
    %169 = vector.load %arg48[%c8_143, %c0_144] : memref<32x8xf32, #tpu.memory_space<vmem>>, vector<16x8xf32>
    %c2_145 = arith.constant 2 : index
    %c0_146 = arith.constant 0 : index
    %c0_147 = arith.constant 0 : index
    %170 = vector.load %arg19[%c2_145, %c0_146, %c0_147] : memref<5x8x8xbf16, #tpu.memory_space<vmem>>, vector<1x8x8xbf16>
    %171 = vector.shape_cast %170 : vector<1x8x8xbf16> to vector<8x8xbf16>
    %172 = arith.truncf %169 : vector<16x8xf32> to vector<16x8xbf16>
    %cst_148 = arith.constant dense<0.000000e+00> : vector<16x8xf32>
    %173 = tpu.matmul %172, %171, %cst_148 {dimension_numbers = #tpu.dot_dimension_numbers<[1], [0], [0], [1], [0, 0, 1, 1], [], []>} : vector<16x8xbf16>, vector<8x8xbf16>, vector<16x8xf32> -> vector<16x8xf32>
    %174 = arith.addf %168, %173 : vector<16x8xf32>
    %c10_149 = arith.constant 10 : index
    %c0_150 = arith.constant 0 : index
    %175 = vector.load %arg48[%c10_149, %c0_150] : memref<32x8xf32, #tpu.memory_space<vmem>>, vector<16x8xf32>
    %c3_151 = arith.constant 3 : index
    %c0_152 = arith.constant 0 : index
    %c0_153 = arith.constant 0 : index
    %176 = vector.load %arg19[%c3_151, %c0_152, %c0_153] : memref<5x8x8xbf16, #tpu.memory_space<vmem>>, vector<1x8x8xbf16>
    %177 = vector.shape_cast %176 : vector<1x8x8xbf16> to vector<8x8xbf16>
    %178 = arith.truncf %175 : vector<16x8xf32> to vector<16x8xbf16>
    %cst_154 = arith.constant dense<0.000000e+00> : vector<16x8xf32>
    %179 = tpu.matmul %178, %177, %cst_154 {dimension_numbers = #tpu.dot_dimension_numbers<[1], [0], [0], [1], [0, 0, 1, 1], [], []>} : vector<16x8xbf16>, vector<8x8xbf16>, vector<16x8xf32> -> vector<16x8xf32>
    %180 = arith.addf %174, %179 : vector<16x8xf32>
    %c12_155 = arith.constant 12 : index
    %c0_156 = arith.constant 0 : index
    %181 = vector.load %arg48[%c12_155, %c0_156] : memref<32x8xf32, #tpu.memory_space<vmem>>, vector<16x8xf32>
    %c4_157 = arith.constant 4 : index
    %c0_158 = arith.constant 0 : index
    %c0_159 = arith.constant 0 : index
    %182 = vector.load %arg19[%c4_157, %c0_158, %c0_159] : memref<5x8x8xbf16, #tpu.memory_space<vmem>>, vector<1x8x8xbf16>
    %183 = vector.shape_cast %182 : vector<1x8x8xbf16> to vector<8x8xbf16>
    %184 = arith.truncf %181 : vector<16x8xf32> to vector<16x8xbf16>
    %cst_160 = arith.constant dense<0.000000e+00> : vector<16x8xf32>
    %185 = tpu.matmul %184, %183, %cst_160 {dimension_numbers = #tpu.dot_dimension_numbers<[1], [0], [0], [1], [0, 0, 1, 1], [], []>} : vector<16x8xbf16>, vector<8x8xbf16>, vector<16x8xf32> -> vector<16x8xf32>
    %186 = arith.addf %180, %185 : vector<16x8xf32>
    %c0_161 = arith.constant 0 : index
    %c0_162 = arith.constant 0 : index
    %187 = vector.load %arg18[%c0_161, %c0_162] : memref<1x8xf32, #tpu.memory_space<vmem>>, vector<1x8xf32>
    %188 = vector.broadcast %187 : vector<1x8xf32> to vector<16x8xf32>
    %189 = arith.addf %186, %188 : vector<16x8xf32>
    %c0_163 = arith.constant 0 : index
    %c0_164 = arith.constant 0 : index
    %190 = vector.load %arg17[%c0_163, %c0_164] : memref<1x8xf32, #tpu.memory_space<vmem>>, vector<1x8xf32>
    %cst_165 = arith.constant 0.000000e+00 : f32
    %191 = vector.broadcast %cst_165 : f32 to vector<16x8xf32>
    %192 = arith.cmpf ogt, %189, %191 : vector<16x8xf32>
    %193 = vector.broadcast %190 : vector<1x8xf32> to vector<16x8xf32>
    %194 = arith.mulf %193, %189 : vector<16x8xf32>
    %195 = arith.select %192, %189, %194 : vector<16x8xi1>, vector<16x8xf32>
    %c8_166 = arith.constant 8 : index
    %c0_167 = arith.constant 0 : index
    %196 = vector.load %arg47[%c8_166, %c0_167] : memref<32x32xf32, #tpu.memory_space<vmem>>, vector<16x24xf32>
    %c0_168 = arith.constant 0 : index
    %c0_169 = arith.constant 0 : index
    %197 = vector.load %arg13[%c0_168, %c0_169] : memref<24x8xbf16, #tpu.memory_space<vmem>>, vector<24x8xbf16>
    %198 = arith.truncf %196 : vector<16x24xf32> to vector<16x24xbf16>
    %cst_170 = arith.constant dense<0.000000e+00> : vector<16x8xf32>
    %199 = tpu.matmul %198, %197, %cst_170 {dimension_numbers = #tpu.dot_dimension_numbers<[1], [0], [0], [1], [0, 0, 1, 1], [], []>} : vector<16x24xbf16>, vector<24x8xbf16>, vector<16x8xf32> -> vector<16x8xf32>
    %c0_171 = arith.constant 0 : index
    %c0_172 = arith.constant 0 : index
    %200 = vector.load %arg12[%c0_171, %c0_172] : memref<1x8xf32, #tpu.memory_space<vmem>>, vector<1x8xf32>
    %201 = vector.broadcast %200 : vector<1x8xf32> to vector<16x8xf32>
    %202 = arith.addf %199, %201 : vector<16x8xf32>
    %203 = arith.addf %195, %202 : vector<16x8xf32>
    %c0_173 = arith.constant 0 : index
    %c0_174 = arith.constant 0 : index
    %204 = vector.load %arg11[%c0_173, %c0_174] : memref<1x8xf32, #tpu.memory_space<vmem>>, vector<1x8xf32>
    %cst_175 = arith.constant 0.000000e+00 : f32
    %205 = vector.broadcast %cst_175 : f32 to vector<16x8xf32>
    %206 = arith.cmpf ogt, %203, %205 : vector<16x8xf32>
    %207 = vector.broadcast %204 : vector<1x8xf32> to vector<16x8xf32>
    %208 = arith.mulf %207, %203 : vector<16x8xf32>
    %209 = arith.select %206, %203, %208 : vector<16x8xi1>, vector<16x8xf32>
    %c8_176 = arith.constant 8 : index
    %c24 = arith.constant 24 : index
    %210 = vector.load %arg47[%c8_176, %c24] : memref<32x32xf32, #tpu.memory_space<vmem>>, vector<16x8xf32>
    tpu.vector_store %arg47[%c8_176, %c24], %209 {strides = array<i32>} : memref<32x32xf32, #tpu.memory_space<vmem>>, vector<16x8xf32>,
    %c8_177 = arith.constant 8 : index
    %c0_178 = arith.constant 0 : index
    %211 = vector.load %arg47[%c8_177, %c0_178] : memref<32x32xf32, #tpu.memory_space<vmem>>, vector<16x32xf32>
    %c0_179 = arith.constant 0 : index
    %c0_180 = arith.constant 0 : index
    %212 = vector.load %arg45[%c0_179, %c0_180] : memref<32x16xbf16, #tpu.memory_space<vmem>>, vector<32x16xbf16>
    %213 = arith.truncf %211 : vector<16x32xf32> to vector<16x32xbf16>
    %cst_181 = arith.constant dense<0.000000e+00> : vector<16x16xf32>
    %214 = tpu.matmul %213, %212, %cst_181 {dimension_numbers = #tpu.dot_dimension_numbers<[1], [0], [0], [1], [0, 0, 1, 1], [], []>} : vector<16x32xbf16>, vector<32x16xbf16>, vector<16x16xf32> -> vector<16x16xf32>
    %c0_182 = arith.constant 0 : index
    %c0_183 = arith.constant 0 : index
    %215 = vector.load %arg44[%c0_182, %c0_183] : memref<1x16xf32, #tpu.memory_space<vmem>>, vector<1x16xf32>
    %216 = vector.broadcast %215 : vector<1x16xf32> to vector<16x16xf32>
    %217 = arith.addf %214, %216 : vector<16x16xf32>
    %c0_184 = arith.constant 0 : index
    %c0_185 = arith.constant 0 : index
    %218 = vector.load %arg43[%c0_184, %c0_185] : memref<1x16xf32, #tpu.memory_space<vmem>>, vector<1x16xf32>
    %cst_186 = arith.constant 0.000000e+00 : f32
    %219 = vector.broadcast %cst_186 : f32 to vector<16x16xf32>
    %220 = arith.cmpf ogt, %217, %219 : vector<16x16xf32>
    %221 = vector.broadcast %218 : vector<1x16xf32> to vector<16x16xf32>
    %222 = arith.mulf %221, %217 : vector<16x16xf32>
    %223 = arith.select %220, %217, %222 : vector<16x16xi1>, vector<16x16xf32>
    %c8_187 = arith.constant 8 : index
    %c0_188 = arith.constant 0 : index
    %224 = vector.load %arg47[%c8_187, %c0_188] : memref<32x32xf32, #tpu.memory_space<vmem>>, vector<16x16xf32>
    tpu.vector_store %arg47[%c8_187, %c0_188], %223 {strides = array<i32>} : memref<32x32xf32, #tpu.memory_space<vmem>>, vector<16x16xf32>,
    %cst_189 = arith.constant 0.000000e+00 : f32
    %225 = vector.broadcast %cst_189 : f32 to vector<16x8xf32>
    %c6_190 = arith.constant 6 : index
    %c0_191 = arith.constant 0 : index
    %226 = vector.load %arg47[%c6_190, %c0_191] : memref<32x32xf32, #tpu.memory_space<vmem>>, vector<16x16xf32>
    %c0_192 = arith.constant 0 : index
    %c0_193 = arith.constant 0 : index
    %c0_194 = arith.constant 0 : index
    %227 = vector.load %arg25[%c0_192, %c0_193, %c0_194] : memref<5x16x8xbf16, #tpu.memory_space<vmem>>, vector<1x16x8xbf16>
    %228 = vector.shape_cast %227 : vector<1x16x8xbf16> to vector<16x8xbf16>
    %229 = arith.truncf %226 : vector<16x16xf32> to vector<16x16xbf16>
    %cst_195 = arith.constant dense<0.000000e+00> : vector<16x8xf32>
    %230 = tpu.matmul %229, %228, %cst_195 {dimension_numbers = #tpu.dot_dimension_numbers<[1], [0], [0], [1], [0, 0, 1, 1], [], []>} : vector<16x16xbf16>, vector<16x8xbf16>, vector<16x8xf32> -> vector<16x8xf32>
    %231 = arith.addf %225, %230 : vector<16x8xf32>
    %c7_196 = arith.constant 7 : index
    %c0_197 = arith.constant 0 : index
    %232 = vector.load %arg47[%c7_196, %c0_197] : memref<32x32xf32, #tpu.memory_space<vmem>>, vector<16x16xf32>
    %c1_198 = arith.constant 1 : index
    %c0_199 = arith.constant 0 : index
    %c0_200 = arith.constant 0 : index
    %233 = vector.load %arg25[%c1_198, %c0_199, %c0_200] : memref<5x16x8xbf16, #tpu.memory_space<vmem>>, vector<1x16x8xbf16>
    %234 = vector.shape_cast %233 : vector<1x16x8xbf16> to vector<16x8xbf16>
    %235 = arith.truncf %232 : vector<16x16xf32> to vector<16x16xbf16>
    %cst_201 = arith.constant dense<0.000000e+00> : vector<16x8xf32>
    %236 = tpu.matmul %235, %234, %cst_201 {dimension_numbers = #tpu.dot_dimension_numbers<[1], [0], [0], [1], [0, 0, 1, 1], [], []>} : vector<16x16xbf16>, vector<16x8xbf16>, vector<16x8xf32> -> vector<16x8xf32>
    %237 = arith.addf %231, %236 : vector<16x8xf32>
    %c8_202 = arith.constant 8 : index
    %c0_203 = arith.constant 0 : index
    %238 = vector.load %arg47[%c8_202, %c0_203] : memref<32x32xf32, #tpu.memory_space<vmem>>, vector<16x16xf32>
    %c2_204 = arith.constant 2 : index
    %c0_205 = arith.constant 0 : index
    %c0_206 = arith.constant 0 : index
    %239 = vector.load %arg25[%c2_204, %c0_205, %c0_206] : memref<5x16x8xbf16, #tpu.memory_space<vmem>>, vector<1x16x8xbf16>
    %240 = vector.shape_cast %239 : vector<1x16x8xbf16> to vector<16x8xbf16>
    %241 = arith.truncf %238 : vector<16x16xf32> to vector<16x16xbf16>
    %cst_207 = arith.constant dense<0.000000e+00> : vector<16x8xf32>
    %242 = tpu.matmul %241, %240, %cst_207 {dimension_numbers = #tpu.dot_dimension_numbers<[1], [0], [0], [1], [0, 0, 1, 1], [], []>} : vector<16x16xbf16>, vector<16x8xbf16>, vector<16x8xf32> -> vector<16x8xf32>
    %243 = arith.addf %237, %242 : vector<16x8xf32>
    %c9_208 = arith.constant 9 : index
    %c0_209 = arith.constant 0 : index
    %244 = vector.load %arg47[%c9_208, %c0_209] : memref<32x32xf32, #tpu.memory_space<vmem>>, vector<16x16xf32>
    %c3_210 = arith.constant 3 : index
    %c0_211 = arith.constant 0 : index
    %c0_212 = arith.constant 0 : index
    %245 = vector.load %arg25[%c3_210, %c0_211, %c0_212] : memref<5x16x8xbf16, #tpu.memory_space<vmem>>, vector<1x16x8xbf16>
    %246 = vector.shape_cast %245 : vector<1x16x8xbf16> to vector<16x8xbf16>
    %247 = arith.truncf %244 : vector<16x16xf32> to vector<16x16xbf16>
    %cst_213 = arith.constant dense<0.000000e+00> : vector<16x8xf32>
    %248 = tpu.matmul %247, %246, %cst_213 {dimension_numbers = #tpu.dot_dimension_numbers<[1], [0], [0], [1], [0, 0, 1, 1], [], []>} : vector<16x16xbf16>, vector<16x8xbf16>, vector<16x8xf32> -> vector<16x8xf32>
    %249 = arith.addf %243, %248 : vector<16x8xf32>
    %c10_214 = arith.constant 10 : index
    %c0_215 = arith.constant 0 : index
    %250 = vector.load %arg47[%c10_214, %c0_215] : memref<32x32xf32, #tpu.memory_space<vmem>>, vector<16x16xf32>
    %c4_216 = arith.constant 4 : index
    %c0_217 = arith.constant 0 : index
    %c0_218 = arith.constant 0 : index
    %251 = vector.load %arg25[%c4_216, %c0_217, %c0_218] : memref<5x16x8xbf16, #tpu.memory_space<vmem>>, vector<1x16x8xbf16>
    %252 = vector.shape_cast %251 : vector<1x16x8xbf16> to vector<16x8xbf16>
    %253 = arith.truncf %250 : vector<16x16xf32> to vector<16x16xbf16>
    %cst_219 = arith.constant dense<0.000000e+00> : vector<16x8xf32>
    %254 = tpu.matmul %253, %252, %cst_219 {dimension_numbers = #tpu.dot_dimension_numbers<[1], [0], [0], [1], [0, 0, 1, 1], [], []>} : vector<16x16xbf16>, vector<16x8xbf16>, vector<16x8xf32> -> vector<16x8xf32>
    %255 = arith.addf %249, %254 : vector<16x8xf32>
    %c0_220 = arith.constant 0 : index
    %c0_221 = arith.constant 0 : index
    %256 = vector.load %arg24[%c0_220, %c0_221] : memref<1x8xf32, #tpu.memory_space<vmem>>, vector<1x8xf32>
    %257 = vector.broadcast %256 : vector<1x8xf32> to vector<16x8xf32>
    %258 = arith.addf %255, %257 : vector<16x8xf32>
    %c0_222 = arith.constant 0 : index
    %c0_223 = arith.constant 0 : index
    %259 = vector.load %arg23[%c0_222, %c0_223] : memref<1x8xf32, #tpu.memory_space<vmem>>, vector<1x8xf32>
    %cst_224 = arith.constant 0.000000e+00 : f32
    %260 = vector.broadcast %cst_224 : f32 to vector<16x8xf32>
    %261 = arith.cmpf ogt, %258, %260 : vector<16x8xf32>
    %262 = vector.broadcast %259 : vector<1x8xf32> to vector<16x8xf32>
    %263 = arith.mulf %262, %258 : vector<16x8xf32>
    %264 = arith.select %261, %258, %263 : vector<16x8xi1>, vector<16x8xf32>
    %c8_225 = arith.constant 8 : index
    %c0_226 = arith.constant 0 : index
    %265 = vector.load %arg48[%c8_225, %c0_226] : memref<32x8xf32, #tpu.memory_space<vmem>>, vector<16x8xf32>
    tpu.vector_store %arg48[%c8_225, %c0_226], %264 {strides = array<i32>} : memref<32x8xf32, #tpu.memory_space<vmem>>, vector<16x8xf32>,
    %cst_227 = arith.constant 0.000000e+00 : f32
    %266 = vector.broadcast %cst_227 : f32 to vector<16x8xf32>
    %c6_228 = arith.constant 6 : index
    %c0_229 = arith.constant 0 : index
    %267 = vector.load %arg48[%c6_228, %c0_229] : memref<32x8xf32, #tpu.memory_space<vmem>>, vector<16x8xf32>
    %c0_230 = arith.constant 0 : index
    %c0_231 = arith.constant 0 : index
    %c0_232 = arith.constant 0 : index
    %268 = vector.load %arg28[%c0_230, %c0_231, %c0_232] : memref<5x8x8xbf16, #tpu.memory_space<vmem>>, vector<1x8x8xbf16>
    %269 = vector.shape_cast %268 : vector<1x8x8xbf16> to vector<8x8xbf16>
    %270 = arith.truncf %267 : vector<16x8xf32> to vector<16x8xbf16>
    %cst_233 = arith.constant dense<0.000000e+00> : vector<16x8xf32>
    %271 = tpu.matmul %270, %269, %cst_233 {dimension_numbers = #tpu.dot_dimension_numbers<[1], [0], [0], [1], [0, 0, 1, 1], [], []>} : vector<16x8xbf16>, vector<8x8xbf16>, vector<16x8xf32> -> vector<16x8xf32>
    %272 = arith.addf %266, %271 : vector<16x8xf32>
    %c7_234 = arith.constant 7 : index
    %c0_235 = arith.constant 0 : index
    %273 = vector.load %arg48[%c7_234, %c0_235] : memref<32x8xf32, #tpu.memory_space<vmem>>, vector<16x8xf32>
    %c1_236 = arith.constant 1 : index
    %c0_237 = arith.constant 0 : index
    %c0_238 = arith.constant 0 : index
    %274 = vector.load %arg28[%c1_236, %c0_237, %c0_238] : memref<5x8x8xbf16, #tpu.memory_space<vmem>>, vector<1x8x8xbf16>
    %275 = vector.shape_cast %274 : vector<1x8x8xbf16> to vector<8x8xbf16>
    %276 = arith.truncf %273 : vector<16x8xf32> to vector<16x8xbf16>
    %cst_239 = arith.constant dense<0.000000e+00> : vector<16x8xf32>
    %277 = tpu.matmul %276, %275, %cst_239 {dimension_numbers = #tpu.dot_dimension_numbers<[1], [0], [0], [1], [0, 0, 1, 1], [], []>} : vector<16x8xbf16>, vector<8x8xbf16>, vector<16x8xf32> -> vector<16x8xf32>
    %278 = arith.addf %272, %277 : vector<16x8xf32>
    %c8_240 = arith.constant 8 : index
    %c0_241 = arith.constant 0 : index
    %279 = vector.load %arg48[%c8_240, %c0_241] : memref<32x8xf32, #tpu.memory_space<vmem>>, vector<16x8xf32>
    %c2_242 = arith.constant 2 : index
    %c0_243 = arith.constant 0 : index
    %c0_244 = arith.constant 0 : index
    %280 = vector.load %arg28[%c2_242, %c0_243, %c0_244] : memref<5x8x8xbf16, #tpu.memory_space<vmem>>, vector<1x8x8xbf16>
    %281 = vector.shape_cast %280 : vector<1x8x8xbf16> to vector<8x8xbf16>
    %282 = arith.truncf %279 : vector<16x8xf32> to vector<16x8xbf16>
    %cst_245 = arith.constant dense<0.000000e+00> : vector<16x8xf32>
    %283 = tpu.matmul %282, %281, %cst_245 {dimension_numbers = #tpu.dot_dimension_numbers<[1], [0], [0], [1], [0, 0, 1, 1], [], []>} : vector<16x8xbf16>, vector<8x8xbf16>, vector<16x8xf32> -> vector<16x8xf32>
    %284 = arith.addf %278, %283 : vector<16x8xf32>
    %c9_246 = arith.constant 9 : index
    %c0_247 = arith.constant 0 : index
    %285 = vector.load %arg48[%c9_246, %c0_247] : memref<32x8xf32, #tpu.memory_space<vmem>>, vector<16x8xf32>
    %c3_248 = arith.constant 3 : index
    %c0_249 = arith.constant 0 : index
    %c0_250 = arith.constant 0 : index
    %286 = vector.load %arg28[%c3_248, %c0_249, %c0_250] : memref<5x8x8xbf16, #tpu.memory_space<vmem>>, vector<1x8x8xbf16>
    %287 = vector.shape_cast %286 : vector<1x8x8xbf16> to vector<8x8xbf16>
    %288 = arith.truncf %285 : vector<16x8xf32> to vector<16x8xbf16>
    %cst_251 = arith.constant dense<0.000000e+00> : vector<16x8xf32>
    %289 = tpu.matmul %288, %287, %cst_251 {dimension_numbers = #tpu.dot_dimension_numbers<[1], [0], [0], [1], [0, 0, 1, 1], [], []>} : vector<16x8xbf16>, vector<8x8xbf16>, vector<16x8xf32> -> vector<16x8xf32>
    %290 = arith.addf %284, %289 : vector<16x8xf32>
    %c10_252 = arith.constant 10 : index
    %c0_253 = arith.constant 0 : index
    %291 = vector.load %arg48[%c10_252, %c0_253] : memref<32x8xf32, #tpu.memory_space<vmem>>, vector<16x8xf32>
    %c4_254 = arith.constant 4 : index
    %c0_255 = arith.constant 0 : index
    %c0_256 = arith.constant 0 : index
    %292 = vector.load %arg28[%c4_254, %c0_255, %c0_256] : memref<5x8x8xbf16, #tpu.memory_space<vmem>>, vector<1x8x8xbf16>
    %293 = vector.shape_cast %292 : vector<1x8x8xbf16> to vector<8x8xbf16>
    %294 = arith.truncf %291 : vector<16x8xf32> to vector<16x8xbf16>
    %cst_257 = arith.constant dense<0.000000e+00> : vector<16x8xf32>
    %295 = tpu.matmul %294, %293, %cst_257 {dimension_numbers = #tpu.dot_dimension_numbers<[1], [0], [0], [1], [0, 0, 1, 1], [], []>} : vector<16x8xbf16>, vector<8x8xbf16>, vector<16x8xf32> -> vector<16x8xf32>
    %296 = arith.addf %290, %295 : vector<16x8xf32>
    %c0_258 = arith.constant 0 : index
    %c0_259 = arith.constant 0 : index
    %297 = vector.load %arg27[%c0_258, %c0_259] : memref<1x8xf32, #tpu.memory_space<vmem>>, vector<1x8xf32>
    %298 = vector.broadcast %297 : vector<1x8xf32> to vector<16x8xf32>
    %299 = arith.addf %296, %298 : vector<16x8xf32>
    %c0_260 = arith.constant 0 : index
    %c0_261 = arith.constant 0 : index
    %300 = vector.load %arg26[%c0_260, %c0_261] : memref<1x8xf32, #tpu.memory_space<vmem>>, vector<1x8xf32>
    %cst_262 = arith.constant 0.000000e+00 : f32
    %301 = vector.broadcast %cst_262 : f32 to vector<16x8xf32>
    %302 = arith.cmpf ogt, %299, %301 : vector<16x8xf32>
    %303 = vector.broadcast %300 : vector<1x8xf32> to vector<16x8xf32>
    %304 = arith.mulf %303, %299 : vector<16x8xf32>
    %305 = arith.select %302, %299, %304 : vector<16x8xi1>, vector<16x8xf32>
    %c8_263 = arith.constant 8 : index
    %c0_264 = arith.constant 0 : index
    %306 = vector.load %arg47[%c8_263, %c0_264] : memref<32x32xf32, #tpu.memory_space<vmem>>, vector<16x16xf32>
    %c0_265 = arith.constant 0 : index
    %c0_266 = arith.constant 0 : index
    %307 = vector.load %arg22[%c0_265, %c0_266] : memref<16x8xbf16, #tpu.memory_space<vmem>>, vector<16x8xbf16>
    %308 = arith.truncf %306 : vector<16x16xf32> to vector<16x16xbf16>
    %cst_267 = arith.constant dense<0.000000e+00> : vector<16x8xf32>
    %309 = tpu.matmul %308, %307, %cst_267 {dimension_numbers = #tpu.dot_dimension_numbers<[1], [0], [0], [1], [0, 0, 1, 1], [], []>} : vector<16x16xbf16>, vector<16x8xbf16>, vector<16x8xf32> -> vector<16x8xf32>
    %c0_268 = arith.constant 0 : index
    %c0_269 = arith.constant 0 : index
    %310 = vector.load %arg21[%c0_268, %c0_269] : memref<1x8xf32, #tpu.memory_space<vmem>>, vector<1x8xf32>
    %311 = vector.broadcast %310 : vector<1x8xf32> to vector<16x8xf32>
    %312 = arith.addf %309, %311 : vector<16x8xf32>
    %313 = arith.addf %305, %312 : vector<16x8xf32>
    %c0_270 = arith.constant 0 : index
    %c0_271 = arith.constant 0 : index
    %314 = vector.load %arg20[%c0_270, %c0_271] : memref<1x8xf32, #tpu.memory_space<vmem>>, vector<1x8xf32>
    %cst_272 = arith.constant 0.000000e+00 : f32
    %315 = vector.broadcast %cst_272 : f32 to vector<16x8xf32>
    %316 = arith.cmpf ogt, %313, %315 : vector<16x8xf32>
    %317 = vector.broadcast %314 : vector<1x8xf32> to vector<16x8xf32>
    %318 = arith.mulf %317, %313 : vector<16x8xf32>
    %319 = arith.select %316, %313, %318 : vector<16x8xi1>, vector<16x8xf32>
    %c8_273 = arith.constant 8 : index
    %c16_274 = arith.constant 16 : index
    %320 = vector.load %arg47[%c8_273, %c16_274] : memref<32x32xf32, #tpu.memory_space<vmem>>, vector<16x8xf32>
    tpu.vector_store %arg47[%c8_273, %c16_274], %319 {strides = array<i32>} : memref<32x32xf32, #tpu.memory_space<vmem>>, vector<16x8xf32>,
    %cst_275 = arith.constant 0.000000e+00 : f32
    %321 = vector.broadcast %cst_275 : f32 to vector<16x8xf32>
    %c4_276 = arith.constant 4 : index
    %c0_277 = arith.constant 0 : index
    %322 = vector.load %arg47[%c4_276, %c0_277] : memref<32x32xf32, #tpu.memory_space<vmem>>, vector<16x24xf32>
    %c0_278 = arith.constant 0 : index
    %c0_279 = arith.constant 0 : index
    %c0_280 = arith.constant 0 : index
    %323 = vector.load %arg34[%c0_278, %c0_279, %c0_280] : memref<5x24x8xbf16, #tpu.memory_space<vmem>>, vector<1x24x8xbf16>
    %324 = vector.shape_cast %323 : vector<1x24x8xbf16> to vector<24x8xbf16>
    %325 = arith.truncf %322 : vector<16x24xf32> to vector<16x24xbf16>
    %cst_281 = arith.constant dense<0.000000e+00> : vector<16x8xf32>
    %326 = tpu.matmul %325, %324, %cst_281 {dimension_numbers = #tpu.dot_dimension_numbers<[1], [0], [0], [1], [0, 0, 1, 1], [], []>} : vector<16x24xbf16>, vector<24x8xbf16>, vector<16x8xf32> -> vector<16x8xf32>
    %327 = arith.addf %321, %326 : vector<16x8xf32>
    %c6_282 = arith.constant 6 : index
    %c0_283 = arith.constant 0 : index
    %328 = vector.load %arg47[%c6_282, %c0_283] : memref<32x32xf32, #tpu.memory_space<vmem>>, vector<16x24xf32>
    %c1_284 = arith.constant 1 : index
    %c0_285 = arith.constant 0 : index
    %c0_286 = arith.constant 0 : index
    %329 = vector.load %arg34[%c1_284, %c0_285, %c0_286] : memref<5x24x8xbf16, #tpu.memory_space<vmem>>, vector<1x24x8xbf16>
    %330 = vector.shape_cast %329 : vector<1x24x8xbf16> to vector<24x8xbf16>
    %331 = arith.truncf %328 : vector<16x24xf32> to vector<16x24xbf16>
    %cst_287 = arith.constant dense<0.000000e+00> : vector<16x8xf32>
    %332 = tpu.matmul %331, %330, %cst_287 {dimension_numbers = #tpu.dot_dimension_numbers<[1], [0], [0], [1], [0, 0, 1, 1], [], []>} : vector<16x24xbf16>, vector<24x8xbf16>, vector<16x8xf32> -> vector<16x8xf32>
    %333 = arith.addf %327, %332 : vector<16x8xf32>
    %c8_288 = arith.constant 8 : index
    %c0_289 = arith.constant 0 : index
    %334 = vector.load %arg47[%c8_288, %c0_289] : memref<32x32xf32, #tpu.memory_space<vmem>>, vector<16x24xf32>
    %c2_290 = arith.constant 2 : index
    %c0_291 = arith.constant 0 : index
    %c0_292 = arith.constant 0 : index
    %335 = vector.load %arg34[%c2_290, %c0_291, %c0_292] : memref<5x24x8xbf16, #tpu.memory_space<vmem>>, vector<1x24x8xbf16>
    %336 = vector.shape_cast %335 : vector<1x24x8xbf16> to vector<24x8xbf16>
    %337 = arith.truncf %334 : vector<16x24xf32> to vector<16x24xbf16>
    %cst_293 = arith.constant dense<0.000000e+00> : vector<16x8xf32>
    %338 = tpu.matmul %337, %336, %cst_293 {dimension_numbers = #tpu.dot_dimension_numbers<[1], [0], [0], [1], [0, 0, 1, 1], [], []>} : vector<16x24xbf16>, vector<24x8xbf16>, vector<16x8xf32> -> vector<16x8xf32>
    %339 = arith.addf %333, %338 : vector<16x8xf32>
    %c10_294 = arith.constant 10 : index
    %c0_295 = arith.constant 0 : index
    %340 = vector.load %arg47[%c10_294, %c0_295] : memref<32x32xf32, #tpu.memory_space<vmem>>, vector<16x24xf32>
    %c3_296 = arith.constant 3 : index
    %c0_297 = arith.constant 0 : index
    %c0_298 = arith.constant 0 : index
    %341 = vector.load %arg34[%c3_296, %c0_297, %c0_298] : memref<5x24x8xbf16, #tpu.memory_space<vmem>>, vector<1x24x8xbf16>
    %342 = vector.shape_cast %341 : vector<1x24x8xbf16> to vector<24x8xbf16>
    %343 = arith.truncf %340 : vector<16x24xf32> to vector<16x24xbf16>
    %cst_299 = arith.constant dense<0.000000e+00> : vector<16x8xf32>
    %344 = tpu.matmul %343, %342, %cst_299 {dimension_numbers = #tpu.dot_dimension_numbers<[1], [0], [0], [1], [0, 0, 1, 1], [], []>} : vector<16x24xbf16>, vector<24x8xbf16>, vector<16x8xf32> -> vector<16x8xf32>
    %345 = arith.addf %339, %344 : vector<16x8xf32>
    %c12_300 = arith.constant 12 : index
    %c0_301 = arith.constant 0 : index
    %346 = vector.load %arg47[%c12_300, %c0_301] : memref<32x32xf32, #tpu.memory_space<vmem>>, vector<16x24xf32>
    %c4_302 = arith.constant 4 : index
    %c0_303 = arith.constant 0 : index
    %c0_304 = arith.constant 0 : index
    %347 = vector.load %arg34[%c4_302, %c0_303, %c0_304] : memref<5x24x8xbf16, #tpu.memory_space<vmem>>, vector<1x24x8xbf16>
    %348 = vector.shape_cast %347 : vector<1x24x8xbf16> to vector<24x8xbf16>
    %349 = arith.truncf %346 : vector<16x24xf32> to vector<16x24xbf16>
    %cst_305 = arith.constant dense<0.000000e+00> : vector<16x8xf32>
    %350 = tpu.matmul %349, %348, %cst_305 {dimension_numbers = #tpu.dot_dimension_numbers<[1], [0], [0], [1], [0, 0, 1, 1], [], []>} : vector<16x24xbf16>, vector<24x8xbf16>, vector<16x8xf32> -> vector<16x8xf32>
    %351 = arith.addf %345, %350 : vector<16x8xf32>
    %c0_306 = arith.constant 0 : index
    %c0_307 = arith.constant 0 : index
    %352 = vector.load %arg33[%c0_306, %c0_307] : memref<1x8xf32, #tpu.memory_space<vmem>>, vector<1x8xf32>
    %353 = vector.broadcast %352 : vector<1x8xf32> to vector<16x8xf32>
    %354 = arith.addf %351, %353 : vector<16x8xf32>
    %c0_308 = arith.constant 0 : index
    %c0_309 = arith.constant 0 : index
    %355 = vector.load %arg32[%c0_308, %c0_309] : memref<1x8xf32, #tpu.memory_space<vmem>>, vector<1x8xf32>
    %cst_310 = arith.constant 0.000000e+00 : f32
    %356 = vector.broadcast %cst_310 : f32 to vector<16x8xf32>
    %357 = arith.cmpf ogt, %354, %356 : vector<16x8xf32>
    %358 = vector.broadcast %355 : vector<1x8xf32> to vector<16x8xf32>
    %359 = arith.mulf %358, %354 : vector<16x8xf32>
    %360 = arith.select %357, %354, %359 : vector<16x8xi1>, vector<16x8xf32>
    %c8_311 = arith.constant 8 : index
    %c0_312 = arith.constant 0 : index
    %361 = vector.load %arg48[%c8_311, %c0_312] : memref<32x8xf32, #tpu.memory_space<vmem>>, vector<16x8xf32>
    tpu.vector_store %arg48[%c8_311, %c0_312], %360 {strides = array<i32>} : memref<32x8xf32, #tpu.memory_space<vmem>>, vector<16x8xf32>,
    %cst_313 = arith.constant 0.000000e+00 : f32
    %362 = vector.broadcast %cst_313 : f32 to vector<16x8xf32>
    %c4_314 = arith.constant 4 : index
    %c0_315 = arith.constant 0 : index
    %363 = vector.load %arg48[%c4_314, %c0_315] : memref<32x8xf32, #tpu.memory_space<vmem>>, vector<16x8xf32>
    %c0_316 = arith.constant 0 : index
    %c0_317 = arith.constant 0 : index
    %c0_318 = arith.constant 0 : index
    %364 = vector.load %arg37[%c0_316, %c0_317, %c0_318] : memref<5x8x8xbf16, #tpu.memory_space<vmem>>, vector<1x8x8xbf16>
    %365 = vector.shape_cast %364 : vector<1x8x8xbf16> to vector<8x8xbf16>
    %366 = arith.truncf %363 : vector<16x8xf32> to vector<16x8xbf16>
    %cst_319 = arith.constant dense<0.000000e+00> : vector<16x8xf32>
    %367 = tpu.matmul %366, %365, %cst_319 {dimension_numbers = #tpu.dot_dimension_numbers<[1], [0], [0], [1], [0, 0, 1, 1], [], []>} : vector<16x8xbf16>, vector<8x8xbf16>, vector<16x8xf32> -> vector<16x8xf32>
    %368 = arith.addf %362, %367 : vector<16x8xf32>
    %c6_320 = arith.constant 6 : index
    %c0_321 = arith.constant 0 : index
    %369 = vector.load %arg48[%c6_320, %c0_321] : memref<32x8xf32, #tpu.memory_space<vmem>>, vector<16x8xf32>
    %c1_322 = arith.constant 1 : index
    %c0_323 = arith.constant 0 : index
    %c0_324 = arith.constant 0 : index
    %370 = vector.load %arg37[%c1_322, %c0_323, %c0_324] : memref<5x8x8xbf16, #tpu.memory_space<vmem>>, vector<1x8x8xbf16>
    %371 = vector.shape_cast %370 : vector<1x8x8xbf16> to vector<8x8xbf16>
    %372 = arith.truncf %369 : vector<16x8xf32> to vector<16x8xbf16>
    %cst_325 = arith.constant dense<0.000000e+00> : vector<16x8xf32>
    %373 = tpu.matmul %372, %371, %cst_325 {dimension_numbers = #tpu.dot_dimension_numbers<[1], [0], [0], [1], [0, 0, 1, 1], [], []>} : vector<16x8xbf16>, vector<8x8xbf16>, vector<16x8xf32> -> vector<16x8xf32>
    %374 = arith.addf %368, %373 : vector<16x8xf32>
    %c8_326 = arith.constant 8 : index
    %c0_327 = arith.constant 0 : index
    %375 = vector.load %arg48[%c8_326, %c0_327] : memref<32x8xf32, #tpu.memory_space<vmem>>, vector<16x8xf32>
    %c2_328 = arith.constant 2 : index
    %c0_329 = arith.constant 0 : index
    %c0_330 = arith.constant 0 : index
    %376 = vector.load %arg37[%c2_328, %c0_329, %c0_330] : memref<5x8x8xbf16, #tpu.memory_space<vmem>>, vector<1x8x8xbf16>
    %377 = vector.shape_cast %376 : vector<1x8x8xbf16> to vector<8x8xbf16>
    %378 = arith.truncf %375 : vector<16x8xf32> to vector<16x8xbf16>
    %cst_331 = arith.constant dense<0.000000e+00> : vector<16x8xf32>
    %379 = tpu.matmul %378, %377, %cst_331 {dimension_numbers = #tpu.dot_dimension_numbers<[1], [0], [0], [1], [0, 0, 1, 1], [], []>} : vector<16x8xbf16>, vector<8x8xbf16>, vector<16x8xf32> -> vector<16x8xf32>
    %380 = arith.addf %374, %379 : vector<16x8xf32>
    %c10_332 = arith.constant 10 : index
    %c0_333 = arith.constant 0 : index
    %381 = vector.load %arg48[%c10_332, %c0_333] : memref<32x8xf32, #tpu.memory_space<vmem>>, vector<16x8xf32>
    %c3_334 = arith.constant 3 : index
    %c0_335 = arith.constant 0 : index
    %c0_336 = arith.constant 0 : index
    %382 = vector.load %arg37[%c3_334, %c0_335, %c0_336] : memref<5x8x8xbf16, #tpu.memory_space<vmem>>, vector<1x8x8xbf16>
    %383 = vector.shape_cast %382 : vector<1x8x8xbf16> to vector<8x8xbf16>
    %384 = arith.truncf %381 : vector<16x8xf32> to vector<16x8xbf16>
    %cst_337 = arith.constant dense<0.000000e+00> : vector<16x8xf32>
    %385 = tpu.matmul %384, %383, %cst_337 {dimension_numbers = #tpu.dot_dimension_numbers<[1], [0], [0], [1], [0, 0, 1, 1], [], []>} : vector<16x8xbf16>, vector<8x8xbf16>, vector<16x8xf32> -> vector<16x8xf32>
    %386 = arith.addf %380, %385 : vector<16x8xf32>
    %c12_338 = arith.constant 12 : index
    %c0_339 = arith.constant 0 : index
    %387 = vector.load %arg48[%c12_338, %c0_339] : memref<32x8xf32, #tpu.memory_space<vmem>>, vector<16x8xf32>
    %c4_340 = arith.constant 4 : index
    %c0_341 = arith.constant 0 : index
    %c0_342 = arith.constant 0 : index
    %388 = vector.load %arg37[%c4_340, %c0_341, %c0_342] : memref<5x8x8xbf16, #tpu.memory_space<vmem>>, vector<1x8x8xbf16>
    %389 = vector.shape_cast %388 : vector<1x8x8xbf16> to vector<8x8xbf16>
    %390 = arith.truncf %387 : vector<16x8xf32> to vector<16x8xbf16>
    %cst_343 = arith.constant dense<0.000000e+00> : vector<16x8xf32>
    %391 = tpu.matmul %390, %389, %cst_343 {dimension_numbers = #tpu.dot_dimension_numbers<[1], [0], [0], [1], [0, 0, 1, 1], [], []>} : vector<16x8xbf16>, vector<8x8xbf16>, vector<16x8xf32> -> vector<16x8xf32>
    %392 = arith.addf %386, %391 : vector<16x8xf32>
    %c0_344 = arith.constant 0 : index
    %c0_345 = arith.constant 0 : index
    %393 = vector.load %arg36[%c0_344, %c0_345] : memref<1x8xf32, #tpu.memory_space<vmem>>, vector<1x8xf32>
    %394 = vector.broadcast %393 : vector<1x8xf32> to vector<16x8xf32>
    %395 = arith.addf %392, %394 : vector<16x8xf32>
    %c0_346 = arith.constant 0 : index
    %c0_347 = arith.constant 0 : index
    %396 = vector.load %arg35[%c0_346, %c0_347] : memref<1x8xf32, #tpu.memory_space<vmem>>, vector<1x8xf32>
    %cst_348 = arith.constant 0.000000e+00 : f32
    %397 = vector.broadcast %cst_348 : f32 to vector<16x8xf32>
    %398 = arith.cmpf ogt, %395, %397 : vector<16x8xf32>
    %399 = vector.broadcast %396 : vector<1x8xf32> to vector<16x8xf32>
    %400 = arith.mulf %399, %395 : vector<16x8xf32>
    %401 = arith.select %398, %395, %400 : vector<16x8xi1>, vector<16x8xf32>
    %c8_349 = arith.constant 8 : index
    %c0_350 = arith.constant 0 : index
    %402 = vector.load %arg47[%c8_349, %c0_350] : memref<32x32xf32, #tpu.memory_space<vmem>>, vector<16x24xf32>
    %c0_351 = arith.constant 0 : index
    %c0_352 = arith.constant 0 : index
    %403 = vector.load %arg31[%c0_351, %c0_352] : memref<24x8xbf16, #tpu.memory_space<vmem>>, vector<24x8xbf16>
    %404 = arith.truncf %402 : vector<16x24xf32> to vector<16x24xbf16>
    %cst_353 = arith.constant dense<0.000000e+00> : vector<16x8xf32>
    %405 = tpu.matmul %404, %403, %cst_353 {dimension_numbers = #tpu.dot_dimension_numbers<[1], [0], [0], [1], [0, 0, 1, 1], [], []>} : vector<16x24xbf16>, vector<24x8xbf16>, vector<16x8xf32> -> vector<16x8xf32>
    %c0_354 = arith.constant 0 : index
    %c0_355 = arith.constant 0 : index
    %406 = vector.load %arg30[%c0_354, %c0_355] : memref<1x8xf32, #tpu.memory_space<vmem>>, vector<1x8xf32>
    %407 = vector.broadcast %406 : vector<1x8xf32> to vector<16x8xf32>
    %408 = arith.addf %405, %407 : vector<16x8xf32>
    %409 = arith.addf %401, %408 : vector<16x8xf32>
    %c0_356 = arith.constant 0 : index
    %c0_357 = arith.constant 0 : index
    %410 = vector.load %arg29[%c0_356, %c0_357] : memref<1x8xf32, #tpu.memory_space<vmem>>, vector<1x8xf32>
    %cst_358 = arith.constant 0.000000e+00 : f32
    %411 = vector.broadcast %cst_358 : f32 to vector<16x8xf32>
    %412 = arith.cmpf ogt, %409, %411 : vector<16x8xf32>
    %413 = vector.broadcast %410 : vector<1x8xf32> to vector<16x8xf32>
    %414 = arith.mulf %413, %409 : vector<16x8xf32>
    %415 = arith.select %412, %409, %414 : vector<16x8xi1>, vector<16x8xf32>
    %c8_359 = arith.constant 8 : index
    %c24_360 = arith.constant 24 : index
    %416 = vector.load %arg47[%c8_359, %c24_360] : memref<32x32xf32, #tpu.memory_space<vmem>>, vector<16x8xf32>
    tpu.vector_store %arg47[%c8_359, %c24_360], %415 {strides = array<i32>} : memref<32x32xf32, #tpu.memory_space<vmem>>, vector<16x8xf32>,
    %c8_361 = arith.constant 8 : index
    %c0_362 = arith.constant 0 : index
    %417 = vector.load %arg47[%c8_361, %c0_362] : memref<32x32xf32, #tpu.memory_space<vmem>>, vector<16x32xf32>
    %c0_363 = arith.constant 0 : index
    %c0_364 = arith.constant 0 : index
    %418 = vector.load %arg39[%c0_363, %c0_364] : memref<32x26xbf16, #tpu.memory_space<vmem>>, vector<32x26xbf16>
    %419 = arith.truncf %417 : vector<16x32xf32> to vector<16x32xbf16>
    %cst_365 = arith.constant dense<0.000000e+00> : vector<16x26xf32>
    %420 = tpu.matmul %419, %418, %cst_365 {dimension_numbers = #tpu.dot_dimension_numbers<[1], [0], [0], [1], [0, 0, 1, 1], [], []>} : vector<16x32xbf16>, vector<32x26xbf16>, vector<16x26xf32> -> vector<16x26xf32>
    %c0_366 = arith.constant 0 : index
    %c0_367 = arith.constant 0 : index
    %421 = vector.load %arg38[%c0_366, %c0_367] : memref<1x26xf32, #tpu.memory_space<vmem>>, vector<1x26xf32>
    %422 = vector.broadcast %421 : vector<1x26xf32> to vector<16x26xf32>
    %423 = arith.addf %420, %422 : vector<16x26xf32>
    %c0_368 = arith.constant 0 : index
    %c0_369 = arith.constant 0 : index
    %c0_370 = arith.constant 0 : index
    %424 = vector.load %arg46[%c0_368, %c0_369, %c0_370] : memref<1x16x26xf32, #tpu.memory_space<vmem>>, vector<1x16x26xf32>
    %425 = vector.shape_cast %424 : vector<1x16x26xf32> to vector<16x26xf32>
    %426 = vector.shape_cast %423 : vector<16x26xf32> to vector<1x16x26xf32>
    tpu.vector_store %arg46[%c0_368, %c0_369, %c0_370], %426 {strides = array<i32>} : memref<1x16x26xf32, #tpu.memory_space<vmem>>, vector<1x16x26xf32>,
    return
  }
  func.func @transform_0(%arg0: i32) -> (i32, i32, i32) {
    %c0_i32 = arith.constant 0 : i32
    %c0_i32_0 = arith.constant 0 : i32
    %c0_i32_1 = arith.constant 0 : i32
    return %arg0, %c0_i32, %c0_i32_0 : i32, i32, i32
  }
  func.func @transform_1(%arg0: i32) -> (i32, i32) {
    %c0_i32 = arith.constant 0 : i32
    %c0_i32_0 = arith.constant 0 : i32
    %c0_i32_1 = arith.constant 0 : i32
    return %c0_i32, %c0_i32_0 : i32, i32
  }
  func.func @transform_2(%arg0: i32) -> (i32, i32) {
    %c0_i32 = arith.constant 0 : i32
    %c0_i32_0 = arith.constant 0 : i32
    %c0_i32_1 = arith.constant 0 : i32
    return %c0_i32, %c0_i32_0 : i32, i32
  }
  func.func @transform_3(%arg0: i32) -> (i32, i32) {
    %c0_i32 = arith.constant 0 : i32
    %c0_i32_0 = arith.constant 0 : i32
    %c0_i32_1 = arith.constant 0 : i32
    return %c0_i32, %c0_i32_0 : i32, i32
  }
  func.func @transform_4(%arg0: i32) -> (i32, i32) {
    %c0_i32 = arith.constant 0 : i32
    %c0_i32_0 = arith.constant 0 : i32
    %c0_i32_1 = arith.constant 0 : i32
    return %c0_i32, %c0_i32_0 : i32, i32
  }
  func.func @transform_5(%arg0: i32) -> (i32, i32) {
    %c0_i32 = arith.constant 0 : i32
    %c0_i32_0 = arith.constant 0 : i32
    %c0_i32_1 = arith.constant 0 : i32
    return %c0_i32, %c0_i32_0 : i32, i32
  }
  func.func @transform_6(%arg0: i32) -> (i32, i32, i32) {
    %c0_i32 = arith.constant 0 : i32
    %c0_i32_0 = arith.constant 0 : i32
    %c0_i32_1 = arith.constant 0 : i32
    %c0_i32_2 = arith.constant 0 : i32
    return %c0_i32, %c0_i32_0, %c0_i32_1 : i32, i32, i32
  }
  func.func @transform_7(%arg0: i32) -> (i32, i32) {
    %c0_i32 = arith.constant 0 : i32
    %c0_i32_0 = arith.constant 0 : i32
    %c0_i32_1 = arith.constant 0 : i32
    return %c0_i32, %c0_i32_0 : i32, i32
  }
  func.func @transform_8(%arg0: i32) -> (i32, i32) {
    %c0_i32 = arith.constant 0 : i32
    %c0_i32_0 = arith.constant 0 : i32
    %c0_i32_1 = arith.constant 0 : i32
    return %c0_i32, %c0_i32_0 : i32, i32
  }
  func.func @transform_9(%arg0: i32) -> (i32, i32, i32) {
    %c0_i32 = arith.constant 0 : i32
    %c0_i32_0 = arith.constant 0 : i32
    %c0_i32_1 = arith.constant 0 : i32
    %c0_i32_2 = arith.constant 0 : i32
    return %c0_i32, %c0_i32_0, %c0_i32_1 : i32, i32, i32
  }
  func.func @transform_10(%arg0: i32) -> (i32, i32) {
    %c0_i32 = arith.constant 0 : i32
    %c0_i32_0 = arith.constant 0 : i32
    %c0_i32_1 = arith.constant 0 : i32
    return %c0_i32, %c0_i32_0 : i32, i32
  }
  func.func @transform_11(%arg0: i32) -> (i32, i32) {
    %c0_i32 = arith.constant 0 : i32
    %c0_i32_0 = arith.constant 0 : i32
    %c0_i32_1 = arith.constant 0 : i32
    return %c0_i32, %c0_i32_0 : i32, i32
  }
  func.func @transform_12(%arg0: i32) -> (i32, i32) {
    %c0_i32 = arith.constant 0 : i32
    %c0_i32_0 = arith.constant 0 : i32
    %c0_i32_1 = arith.constant 0 : i32
    return %c0_i32, %c0_i32_0 : i32, i32
  }
  func.func @transform_13(%arg0: i32) -> (i32, i32) {
    %c0_i32 = arith.constant 0 : i32
    %c0_i32_0 = arith.constant 0 : i32
    %c0_i32_1 = arith.constant 0 : i32
    return %c0_i32, %c0_i32_0 : i32, i32
  }
  func.func @transform_14(%arg0: i32) -> (i32, i32) {
    %c0_i32 = arith.constant 0 : i32
    %c0_i32_0 = arith.constant 0 : i32
    %c0_i32_1 = arith.constant 0 : i32
    return %c0_i32, %c0_i32_0 : i32, i32
  }
  func.func @transform_15(%arg0: i32) -> (i32, i32, i32) {
    %c0_i32 = arith.constant 0 : i32
    %c0_i32_0 = arith.constant 0 : i32
    %c0_i32_1 = arith.constant 0 : i32
    %c0_i32_2 = arith.constant 0 : i32
    return %c0_i32, %c0_i32_0, %c0_i32_1 : i32, i32, i32
  }
  func.func @transform_16(%arg0: i32) -> (i32, i32) {
    %c0_i32 = arith.constant 0 : i32
    %c0_i32_0 = arith.constant 0 : i32
    %c0_i32_1 = arith.constant 0 : i32
    return %c0_i32, %c0_i32_0 : i32, i32
  }
  func.func @transform_17(%arg0: i32) -> (i32, i32) {
    %c0_i32 = arith.constant 0 : i32
    %c0_i32_0 = arith.constant 0 : i32
    %c0_i32_1 = arith.constant 0 : i32
    return %c0_i32, %c0_i32_0 : i32, i32
  }
  func.func @transform_18(%arg0: i32) -> (i32, i32, i32) {
    %c0_i32 = arith.constant 0 : i32
    %c0_i32_0 = arith.constant 0 : i32
    %c0_i32_1 = arith.constant 0 : i32
    %c0_i32_2 = arith.constant 0 : i32
    return %c0_i32, %c0_i32_0, %c0_i32_1 : i32, i32, i32
  }
  func.func @transform_19(%arg0: i32) -> (i32, i32) {
    %c0_i32 = arith.constant 0 : i32
    %c0_i32_0 = arith.constant 0 : i32
    %c0_i32_1 = arith.constant 0 : i32
    return %c0_i32, %c0_i32_0 : i32, i32
  }
  func.func @transform_20(%arg0: i32) -> (i32, i32) {
    %c0_i32 = arith.constant 0 : i32
    %c0_i32_0 = arith.constant 0 : i32
    %c0_i32_1 = arith.constant 0 : i32
    return %c0_i32, %c0_i32_0 : i32, i32
  }
  func.func @transform_21(%arg0: i32) -> (i32, i32) {
    %c0_i32 = arith.constant 0 : i32
    %c0_i32_0 = arith.constant 0 : i32
    %c0_i32_1 = arith.constant 0 : i32
    return %c0_i32, %c0_i32_0 : i32, i32
  }
  func.func @transform_22(%arg0: i32) -> (i32, i32) {
    %c0_i32 = arith.constant 0 : i32
    %c0_i32_0 = arith.constant 0 : i32
    %c0_i32_1 = arith.constant 0 : i32
    return %c0_i32, %c0_i32_0 : i32, i32
  }
  func.func @transform_23(%arg0: i32) -> (i32, i32) {
    %c0_i32 = arith.constant 0 : i32
    %c0_i32_0 = arith.constant 0 : i32
    %c0_i32_1 = arith.constant 0 : i32
    return %c0_i32, %c0_i32_0 : i32, i32
  }
  func.func @transform_24(%arg0: i32) -> (i32, i32, i32) {
    %c0_i32 = arith.constant 0 : i32
    %c0_i32_0 = arith.constant 0 : i32
    %c0_i32_1 = arith.constant 0 : i32
    %c0_i32_2 = arith.constant 0 : i32
    return %c0_i32, %c0_i32_0, %c0_i32_1 : i32, i32, i32
  }
  func.func @transform_25(%arg0: i32) -> (i32, i32) {
    %c0_i32 = arith.constant 0 : i32
    %c0_i32_0 = arith.constant 0 : i32
    %c0_i32_1 = arith.constant 0 : i32
    return %c0_i32, %c0_i32_0 : i32, i32
  }
  func.func @transform_26(%arg0: i32) -> (i32, i32) {
    %c0_i32 = arith.constant 0 : i32
    %c0_i32_0 = arith.constant 0 : i32
    %c0_i32_1 = arith.constant 0 : i32
    return %c0_i32, %c0_i32_0 : i32, i32
  }
  func.func @transform_27(%arg0: i32) -> (i32, i32, i32) {
    %c0_i32 = arith.constant 0 : i32
    %c0_i32_0 = arith.constant 0 : i32
    %c0_i32_1 = arith.constant 0 : i32
    %c0_i32_2 = arith.constant 0 : i32
    return %c0_i32, %c0_i32_0, %c0_i32_1 : i32, i32, i32
  }
  func.func @transform_28(%arg0: i32) -> (i32, i32) {
    %c0_i32 = arith.constant 0 : i32
    %c0_i32_0 = arith.constant 0 : i32
    %c0_i32_1 = arith.constant 0 : i32
    return %c0_i32, %c0_i32_0 : i32, i32
  }
  func.func @transform_29(%arg0: i32) -> (i32, i32) {
    %c0_i32 = arith.constant 0 : i32
    %c0_i32_0 = arith.constant 0 : i32
    %c0_i32_1 = arith.constant 0 : i32
    return %c0_i32, %c0_i32_0 : i32, i32
  }
  func.func @transform_30(%arg0: i32) -> (i32, i32) {
    %c0_i32 = arith.constant 0 : i32
    %c0_i32_0 = arith.constant 0 : i32
    %c0_i32_1 = arith.constant 0 : i32
    return %c0_i32, %c0_i32_0 : i32, i32
  }
  func.func @transform_31(%arg0: i32) -> (i32, i32) {
    %c0_i32 = arith.constant 0 : i32
    %c0_i32_0 = arith.constant 0 : i32
    %c0_i32_1 = arith.constant 0 : i32
    return %c0_i32, %c0_i32_0 : i32, i32
  }
  func.func @transform_32(%arg0: i32) -> (i32, i32) {
    %c0_i32 = arith.constant 0 : i32
    %c0_i32_0 = arith.constant 0 : i32
    %c0_i32_1 = arith.constant 0 : i32
    return %c0_i32, %c0_i32_0 : i32, i32
  }
  func.func @transform_33(%arg0: i32) -> (i32, i32, i32) {
    %c0_i32 = arith.constant 0 : i32
    %c0_i32_0 = arith.constant 0 : i32
    %c0_i32_1 = arith.constant 0 : i32
    %c0_i32_2 = arith.constant 0 : i32
    return %c0_i32, %c0_i32_0, %c0_i32_1 : i32, i32, i32
  }
  func.func @transform_34(%arg0: i32) -> (i32, i32) {
    %c0_i32 = arith.constant 0 : i32
    %c0_i32_0 = arith.constant 0 : i32
    %c0_i32_1 = arith.constant 0 : i32
    return %c0_i32, %c0_i32_0 : i32, i32
  }
  func.func @transform_35(%arg0: i32) -> (i32, i32) {
    %c0_i32 = arith.constant 0 : i32
    %c0_i32_0 = arith.constant 0 : i32
    %c0_i32_1 = arith.constant 0 : i32
    return %c0_i32, %c0_i32_0 : i32, i32
  }
  func.func @transform_36(%arg0: i32) -> (i32, i32, i32) {
    %c0_i32 = arith.constant 0 : i32
    %c0_i32_0 = arith.constant 0 : i32
    %c0_i32_1 = arith.constant 0 : i32
    %c0_i32_2 = arith.constant 0 : i32
    return %c0_i32, %c0_i32_0, %c0_i32_1 : i32, i32, i32
  }
  func.func @transform_37(%arg0: i32) -> (i32, i32) {
    %c0_i32 = arith.constant 0 : i32
    %c0_i32_0 = arith.constant 0 : i32
    %c0_i32_1 = arith.constant 0 : i32
    return %c0_i32, %c0_i32_0 : i32, i32
  }
  func.func @transform_38(%arg0: i32) -> (i32, i32) {
    %c0_i32 = arith.constant 0 : i32
    %c0_i32_0 = arith.constant 0 : i32
    %c0_i32_1 = arith.constant 0 : i32
    return %c0_i32, %c0_i32_0 : i32, i32
  }
  func.func @transform_39(%arg0: i32) -> (i32, i32) {
    %c0_i32 = arith.constant 0 : i32
    %c0_i32_0 = arith.constant 0 : i32
    %c0_i32_1 = arith.constant 0 : i32
    return %c0_i32, %c0_i32_0 : i32, i32
  }
  func.func @transform_40(%arg0: i32) -> (i32, i32) {
    %c0_i32 = arith.constant 0 : i32
    %c0_i32_0 = arith.constant 0 : i32
    %c0_i32_1 = arith.constant 0 : i32
    return %c0_i32, %c0_i32_0 : i32, i32
  }
  func.func @transform_41(%arg0: i32) -> (i32, i32) {
    %c0_i32 = arith.constant 0 : i32
    %c0_i32_0 = arith.constant 0 : i32
    %c0_i32_1 = arith.constant 0 : i32
    return %c0_i32, %c0_i32_0 : i32, i32
  }
  func.func @transform_42(%arg0: i32) -> (i32, i32) {
    %c0_i32 = arith.constant 0 : i32
    %c0_i32_0 = arith.constant 0 : i32
    %c0_i32_1 = arith.constant 0 : i32
    return %c0_i32, %c0_i32_0 : i32, i32
  }
  func.func @transform_43(%arg0: i32) -> (i32, i32) {
    %c0_i32 = arith.constant 0 : i32
    %c0_i32_0 = arith.constant 0 : i32
    %c0_i32_1 = arith.constant 0 : i32
    return %c0_i32, %c0_i32_0 : i32, i32
  }
  func.func @transform_44(%arg0: i32) -> (i32, i32) {
    %c0_i32 = arith.constant 0 : i32
    %c0_i32_0 = arith.constant 0 : i32
    %c0_i32_1 = arith.constant 0 : i32
    return %c0_i32, %c0_i32_0 : i32, i32
  }
  func.func @transform_45(%arg0: i32) -> (i32, i32, i32) {
    %c0_i32 = arith.constant 0 : i32
    %c0_i32_0 = arith.constant 0 : i32
    %c0_i32_1 = arith.constant 0 : i32
    return %arg0, %c0_i32, %c0_i32_0 : i32, i32, i32
  }
}

</mosaic_0001>

<bundles_post_ra>
// kernel: _fwd.1
= control target key start
LH: loop header
LB: loop body
LE: loop exit
PB: predicated region body
PF: predicated region fallthrough
CT: control target
= control target key end

     0   :  { %s5228_s6 = smov 1   ;;  %s5229_s10 = smov 2   ;;  %s5916_s0 = inlined_call_operand.smem [shape: u32[46], index: -1, kind: input, shape index: {}] }
   0x1   :  { %s5285_s5 = sld [smem:[%s5916_s0]]   ;;  %s5230_s14 = smov 3  }
   0x2   :  { %s5290_s9 = sld [smem:[%s5916_s0 + %s5228_s6]]   ;;  %s5231_s18 = smov 4  }
   0x3   :  { %s5295_s13 = sld [smem:[%s5916_s0 + %s5229_s10]]   ;;  %s5232_s22 = smov 5  }
   0x4   :  { %s5300_s17 = sld [smem:[%s5916_s0 + %s5230_s14]]   ;;  %s5233_s26 = smov 6  }
   0x5   :  { %s5305_s21 = sld [smem:[%s5916_s0 + %s5231_s18]]   ;;  %s5234_s30 = smov 7  }
   0x6   :  { %s5310_s25 = sld [smem:[%s5916_s0 + %s5232_s22]]   ;;  %s5235_s4 = smov 8  }
   0x7   :  { %s5315_s29 = sld [smem:[%s5916_s0 + %s5233_s26]]   ;;  %s5236_s10 = smov 9  }
   0x8   :  { %s5320_s3 = sld [smem:[%s5916_s0 + %s5234_s30]]   ;;  %s5237_s15 = smov 10  }
   0x9   :  { %s5325_s8 = sld [smem:[%s5916_s0 + %s5235_s4]]   ;;  %s5238_s20 = smov 11  }
   0xa   :  { %s5330_s14 = sld [smem:[%s5916_s0 + %s5236_s10]]   ;;  %s5239_s26 = smov 12  }
   0xb   :  { %s5335_s19 = sld [smem:[%s5916_s0 + %s5237_s15]]   ;;  %s5240_s1 = smov 13  }
   0xc   :  { %s5340_s24 = sld [smem:[%s5916_s0 + %s5238_s20]]   ;;  %s5241_s7 = smov 14  }
   0xd   :  { %s5345_s30 = sld [smem:[%s5916_s0 + %s5239_s26]]   ;;  %s5242_s15 = smov 15  }
   0xe   :  { %s5350_s6 = sld [smem:[%s5916_s0 + %s5240_s1]]   ;;  %s5243_s22 = smov 16  }
   0xf   :  { %s5355_s12 = sld [smem:[%s5916_s0 + %s5241_s7]]   ;;  %s5244_s28 = smov 17  }
  0x10   :  { %s5360_s20 = sld [smem:[%s5916_s0 + %s5242_s15]]   ;;  %s5245_s7 = smov 18  }
  0x11   :  { %5929 = sst [smem:[#allocation4_spill]] %s5335_s19  ;;  %s5246_s15 = smov 19  }
  0x12   :  { %5930 = sst [smem:[#allocation5_spill]] %s5340_s24 }
  0x13   :  { %5931 = sst [smem:[#allocation6_spill]] %s5345_s30 }
  0x14   :  { %5932 = sst [smem:[#allocation7_spill]] %s5350_s6 }
  0x15   :  { %5933 = sst [smem:[#allocation8_spill]] %s5355_s12 }
  0x16   :  { %s5365_s27 = sld [smem:[%s5916_s0 + %s5243_s22]]   ;;  %s5247_s22 = smov 20  }
  0x17   :  { %s5370_s4 = sld [smem:[%s5916_s0 + %s5244_s28]]   ;;  %s5248_s28 = smov 21  }
  0x18   :  { %s5375_s19 = sld [smem:[%s5916_s0 + %s5245_s7]]   ;;  %s5249_s7 = smov 22  }
  0x19   :  { %s5380_s24 = sld [smem:[%s5916_s0 + %s5246_s15]]   ;;  %s5250_s15 = smov 23  }
  0x1a   :  { %s5395_s30 = sld [smem:[%s5916_s0 + %s5249_s7]]   ;;  %s5253_s7 = smov 26  }
  0x1c   :  { %5934 = sst [smem:[#allocation9_spill]] %s5365_s27 }
  0x1d   :  { %5935 = sst [smem:[#allocation10_spill]] %s5370_s4 }
  0x1e   :  { %5936 = sst [smem:[#allocation11_spill]] %s5375_s19 }
  0x1f   :  { %5937 = sst [smem:[#allocation12_spill]] %s5380_s24 }
  0x20   :  { %s5385_s27 = sld [smem:[%s5916_s0 + %s5247_s22]]   ;;  %s5251_s22 = smov 24  }
  0x21   :  { %s5390_s4 = sld [smem:[%s5916_s0 + %s5248_s28]]   ;;  %s5252_s28 = smov 25  }
  0x22   :  { %5940 = sst [smem:[#allocation15_spill]] %s5395_s30 }
  0x23   :  { %s5400_s24 = sld [smem:[%s5916_s0 + %s5250_s15]]   ;;  %s5254_s15 = smov 27  }
  0x24   :  { %s5415_s30 = sld [smem:[%s5916_s0 + %s5253_s7]]   ;;  %s5257_s7 = smov 30  }
  0x26   :  { %5938 = sst [smem:[#allocation13_spill]] %s5385_s27 }
  0x27   :  { %5939 = sst [smem:[#allocation14_spill]] %s5390_s4 }
  0x28   :  { %s5405_s27 = sld [smem:[%s5916_s0 + %s5251_s22]]   ;;  %s5255_s22 = smov 28  }
  0x29   :  { %5941 = sst [smem:[#allocation16_spill]] %s5400_s24 }
  0x2a   :  { %s5410_s4 = sld [smem:[%s5916_s0 + %s5252_s28]]   ;;  %s5256_s28 = smov 29  }
  0x2b   :  { %5944 = sst [smem:[#allocation19_spill]] %s5415_s30 }
  0x2c   :  { %s5420_s24 = sld [smem:[%s5916_s0 + %s5254_s15]]   ;;  %s5258_s15 = smov 31  }
  0x2d   :  { %s5435_s30 = sld [smem:[%s5916_s0 + %s5257_s7]]   ;;  %s5261_s7 = smov 34  }
  0x2e   :  { %5942 = sst [smem:[#allocation17_spill]] %s5405_s27 }
  0x2f   :  { %s5425_s27 = sld [smem:[%s5916_s0 + %s5255_s22]]   ;;  %s5259_s22 = smov 32  }
  0x30   :  { %5943 = sst [smem:[#allocation18_spill]] %s5410_s4 }
  0x31   :  { %s5430_s4 = sld [smem:[%s5916_s0 + %s5256_s28]]   ;;  %s5260_s28 = smov 33  }
  0x32   :  { %5945 = sst [smem:[#allocation20_spill]] %s5420_s24 }
  0x33   :  { %5948 = sst [smem:[#allocation23_spill]] %s5435_s30 }
  0x34   :  { %s5440_s24 = sld [smem:[%s5916_s0 + %s5258_s15]]   ;;  %s5262_s15 = smov 35  }
  0x35   :  { %5946 = sst [smem:[#allocation21_spill]] %s5425_s27 }
  0x36   :  { %s5445_s27 = sld [smem:[%s5916_s0 + %s5259_s22]]   ;;  %s5263_s22 = smov 36  }
  0x37   :  { %5947 = sst [smem:[#allocation22_spill]] %s5430_s4 }
  0x38   :  { %s5450_s4 = sld [smem:[%s5916_s0 + %s5260_s28]]   ;;  %s5264_s28 = smov 37  }
  0x39   :  { %s5455_s30 = sld [smem:[%s5916_s0 + %s5261_s7]]   ;;  %s5265_s7 = smov 38  }
  0x3a   :  { %5949 = sst [smem:[#allocation24_spill]] %s5440_s24 }
  0x3b   :  { %s5460_s24 = sld [smem:[%s5916_s0 + %s5262_s15]]   ;;  %s5266_s15 = smov 39  }
  0x3c   :  { %5950 = sst [smem:[#allocation25_spill]] %s5445_s27 }
  0x3d   :  { %s5465_s27 = sld [smem:[%s5916_s0 + %s5263_s22]]   ;;  %s5267_s22 = smov 40  }
  0x3e   :  { %5951 = sst [smem:[#allocation26_spill]] %s5450_s4 }
  0x3f   :  { %5952 = sst [smem:[#allocation27_spill]] %s5455_s30 }
  0x40   :  { %s5470_s4 = sld [smem:[%s5916_s0 + %s5264_s28]]   ;;  %s5268_s28 = smov 41  }
  0x41   :  { %5953 = sst [smem:[#allocation28_spill]] %s5460_s24 }
  0x42   :  { %s5475_s30 = sld [smem:[%s5916_s0 + %s5265_s7]]   ;;  %s5269_s7 = smov 42  }
  0x43   :  { %5954 = sst [smem:[#allocation29_spill]] %s5465_s27 }
  0x44   :  { %s5480_s24 = sld [smem:[%s5916_s0 + %s5266_s15]]   ;;  %s5270_s15 = smov 43  }
  0x45   :  { %s5485_s27 = sld [smem:[%s5916_s0 + %s5267_s22]]   ;;  %s5271_s22 = smov 44  }
  0x46   :  { %5955 = sst [smem:[#allocation30_spill]] %s5470_s4 }
  0x47   :  { %s5490_s4 = sld [smem:[%s5916_s0 + %s5268_s28]]   ;;  %s5272_s28 = smov 45  }
  0x48   :  { %5956 = sst [smem:[#allocation31_spill]] %s5475_s30 }
  0x49   :  { %s5495_s30 = sld [smem:[%s5916_s0 + %s5269_s7]]   ;;  %s5512_s7 = smov 0  }
  0x4a   :  { %s5500_s6 = sld [smem:[%s5916_s0 + %s5270_s15]]  }
  0x4b   :  { %s5505_s12 = sld [smem:[%s5916_s0 + %s5271_s22]]  }
  0x4c   :  { %s5510_s19 = sld [smem:[%s5916_s0 + %s5272_s28]]  }
  0x4d LB: > { %s4518_s10 = sadd.s32 4294967295, %s5226_s7   ;;  %p4522_p0 = scmp.ge.s32.totalorder %s5226_s7, 1  ;;  %s5226_s7 = sphi %s5512_s7, %s101_s7  }
  0x4e   : > { %p1233_p1 = scmp.lt.s32.totalorder %s5226_s7, 3 }
  0x50   : > { %p1234_p2 = pnand %p4522_p0, %p1233_p1 }
  0x51   : > { %v5179_v0 = vld [vmem:[%s5490_s4] sm:$0xff] (!%p1234_p2)   ;;  %v5273_v1 = vmov (!%p1234_p2), 0.0   ;;  %p1341_p3 = scmp.lt.s32.totalorder (!%p1234_p2), %s4518_s10, 1  ;;  %vm1352_vm0 = vcmask (!%p1234_p2), 261120   ;;  %vm5274_vm1 = vmmov (!%p1234_p2), 0   ;;  %vm1380_vm2 = vcmask (!%p1234_p2), 130048  }
  0x52   : > { %1237 = sbr.rel (%p1234_p2) target bundleno = 3231 (0xc9f), region = 200  ;;  %4812 = vmatprep.subr.bf16.mxu0 (!%p1234_p2), %v5273_v1  ;;  %4818 = vmatprep.subr.bf16.mxu1 (!%p1234_p2), %v5273_v1  ;;  %1353 = vst.msk [vmem:[#allocation2] sm:$0xff] (!%p1234_p2), %vm1352_vm0, %v5273_v1  ;;  %1354 = vst.msk [vmem:[#allocation2 + $0x8] sm:$0xff] (!%p1234_p2), %vm1352_vm0, %v5273_v1  ;;  %v5180_v5 = vld [vmem:[%s5315_s29 + $0x8] sm:$0xff] (!%p1234_p2)   ;;  %v5181_v6 = vld [vmem:[%s5315_s29] sm:$0xff] (!%p1234_p2)   ;;  %vm1357_vm5 = vcmask (!%p1234_p2), 64512  }
  0x53   : > { %4813 = vmatpush3.bf16.msra.mxu0 (!%p1234_p2), %v5179_v0  ;;  %4814 = vmatprep.mubr.msk.bf16.mxu0 (!%p1234_p2), %vm5274_vm1, %v5273_v1  ;;  %1356 = vst.msk [vmem:[#allocation2 + $0x18] sm:$0xff] (!%p1234_p2), %vm1352_vm0, %v5273_v1  ;;  %1355 = vst.msk [vmem:[#allocation2 + $0x10] sm:$0xff] (!%p1234_p2), %vm1352_vm0, %v5273_v1  ;;  %v4527_v7 = vld [vmem:[%s5485_s27] ss:$0 sm:$0xff] (!%p1234_p2)  ;;  %v5183_v21 = vld [vmem:[%s5315_s29 + $0x18] sm:$0xff] (!%p1234_p2)   ;;  %vm1761_vm6 = vcmask (!%p1234_p2), 1043456  }
  0x54   : > { %4824 = vmatprep.subr.bf16.mxu0 (!%p1234_p2), %v5273_v1  ;;  %4820 = vmatprep.mubr.msk.bf16.mxu1 (!%p1234_p2), %vm5274_vm1, %v5273_v1  ;;  %v4530_v9 = vld [vmem:[%s5480_s24] ss:$0 sm:$0xff] (!%p1234_p2)  ;;  %v5182_v25 = vld [vmem:[%s5315_s29 + $0x10] sm:$0xff] (!%p1234_p2)   ;;  %1359 = vst.msk [vmem:[#allocation3 + $0x8] sm:$0xff] (!%p1234_p2), %vm1357_vm5, %v5273_v1  ;;  %1358 = vst.msk [vmem:[#allocation3] sm:$0xff] (!%p1234_p2), %vm1357_vm5, %v5273_v1  ;;  %s5275_s15 = smov (!%p1234_p2), 16  }
  0x55   : > { %4819 = vmatpush3.bf16.msra.mxu1 (!%p1234_p2), %v5180_v5  ;;  %v5184_v32 = vld [vmem:[%s5315_s29 + $0x20] sm:$0xff] (!%p1234_p2)   ;;  %1360 = vst.msk [vmem:[#allocation3 + $0x10] sm:$0xff] (!%p1234_p2), %vm1357_vm5, %v5273_v1  ;;  %1361 = vst.msk [vmem:[#allocation3 + $0x18] sm:$0xff] (!%p1234_p2), %vm1357_vm5, %v5273_v1  ;;  %vm2122_vm13 = vcmask (!%p1234_p2), 195712   ;;  %vm2147_vm14 = vcmask (!%p1234_p2), 195584   ;;  %s5957_s16 = sld [smem:[#allocation11_spill]] (!%p1234_p2) }
  0x56   : > { %4830 = vmatprep.subr.bf16.mxu1 (!%p1234_p2), %v5273_v1  ;;  %v4551_v37 = vld [vmem:[%s5330_s14 + $0x4] sm:$0xf] (!%p1234_p2)  ;;  %v1751_v38 = vld [vmem:[%s5330_s14] sm:$0xf] (!%p1234_p2)  ;;  %s5958_s18 = sld [smem:[#allocation8_spill]] (!%p1234_p2)  ;;  %s5959_s22 = sld [smem:[#allocation7_spill]] (!%p1234_p2) }
  0x57   : > { %v1763_v39 = vsel (!%p1234_p2), %vm1761_vm6, %v4551_v37, 0  ;;  %v1810_v40 = vsel (!%p1234_p2), %vm1761_vm6, %v1751_v38, 0  ;;  %v4549_v0 = vld [vmem:[%s5310_s25] ss:$0 sm:$0xff] (!%p1234_p2)  ;;  %s5960_s23 = sld [smem:[#allocation6_spill]] (!%p1234_p2)  ;;  %s5961_s26 = sld [smem:[#allocation10_spill]] (!%p1234_p2) }
  0x58   : > { %s5962_s28 = sld [smem:[#allocation9_spill]] (!%p1234_p2)  ;;  %s5963_s1 = sld [smem:[#allocation5_spill]] (!%p1234_p2) }
  0x59   : > { %s5988_s10 = smov (!%p1341_p3, %s4518_s10), 1  ;;  %s5964_s2 = sld [smem:[#allocation4_spill]] }
  0x5a   : > { %s5925_s0 = sshll.u32 %s5988_s10, 4 }
  0x5b   : > { %s1345_s11 = scalar_lea.vmem %s5285_s5, %s5925_s0  ;;  %s5974_s0 = sld [smem:[#allocation12_spill]] }
  0x5c   : > { %v1362_v2 = vld [vmem:[%s1345_s11] sm:$0xff]  ;;  %v1363_v3 = vld [vmem:[%s1345_s11 + $0x8] sm:$0xff]  ;;  %s5965_s11 = sld [smem:[#allocation17_spill]] }
  0x5d   : > { %v1366_v4 = vpack.c.bf16 %v1363_v3, %v1362_v2 }
  0x5f   : > { %4815 = vmatmul.mubr.msk.bf16.vlgmr.msra.gmra.mrb[0].mxu0 %vm1380_vm2, %v1366_v4  ;;  %v4550_v4 = vld [vmem:[%s5305_s21] ss:$0 sm:$0xff] }
  0x60   : > { %4826 = vmatprep.mubr.msk.bf16.mxu0 %vm5274_vm1, %v5273_v1  ;;  %4825 = vmatpush3.bf16.msra.mxu0 %v5181_v6 }
  0x61   : > { %4836 = vmatprep.subr.bf16.mxu0 %v5273_v1 }
 0x132   : > { %v1418_v8 = vpop.f32.mrb[0].mxu0 }
 0x133   : > { %v1419_v10 = vadd.f32 %v4527_v7, %v1418_v8  ;;  %v4816_v11 = vpop.f32.mrb[1].mxu0 }
 0x134   : > { %v1421_v12 = vpop.f32.mrb[2].mxu0 }
 0x135   : > { %vm1426_vm3 = vcmp.gt.f32.partialorder %v1419_v10, 0.0  ;;  %v1434_v13 = vmul.f32 %v4530_v9, %v1419_v10  ;;  %v1422_v14 = vadd.f32 %v4527_v7, %v1421_v12  ;;  %v4817_v15 = vpop.f32.mrb[3].mxu0 }
 0x136   : > { %v4556_v15 = vld [vmem:[%s5330_s14 + $0xc] sm:$0xf] }
 0x137   : > { %v1436_v16 = vsel %vm1426_vm3, %v1419_v10, %v1434_v13  ;;  %vm1427_vm4 = vcmp.gt.f32.partialorder %v1422_v14, 0.0  ;;  %v1435_v17 = vmul.f32 %v4530_v9, %v1422_v14 }
 0x138   : > { %1438 = vst.msk [vmem:[#allocation2 + $0x8] sm:$0xff] %vm1380_vm2, %v1436_v16 }
 0x139   : > { %v1437_v18 = vsel %vm1427_vm4, %v1422_v14, %v1435_v17  ;;  %v4554_v14 = vld [vmem:[%s5330_s14 + $0x8] sm:$0xf] }
 0x13a   : > { %1439 = vst.msk [vmem:[#allocation2 + $0x10] sm:$0xff] %vm1380_vm2, %v1437_v18 }
 0x13f   : > { %v1440_v20 = vld [vmem:[#allocation2 + $0x6] sm:$0xff] }
 0x140   : > { %v1445_v22 = vld [vmem:[#allocation2 + $0x7] sm:$0xff] }
 0x141   : > { %v1441_v19 = vld [vmem:[#allocation2 + $0xe] sm:$0xff] }
 0x142   : > { %v1446_v23 = vld [vmem:[#allocation2 + $0xf] sm:$0xff]  ;;  %v1444_v24 = vpack.c.bf16 %v1441_v19, %v1440_v20 }
 0x143   : > { %v1450_v26 = vpack.c.bf16 %v1446_v23, %v1445_v22  ;;  %v1609_v27 = vld [vmem:[#allocation2 + $0x9] sm:$0xff]  ;;  %v1610_v28 = vld [vmem:[#allocation2 + $0x11] sm:$0xff]  ;;  %v1862_v22 = vsel %vm1761_vm6, %v4554_v14, 0  ;;  %v1916_v23 = vsel %vm1761_vm6, %v4556_v15, 0  ;;  %v5189_v14 = vld [vmem:[%s5360_s20 + $0x8] ss:$0 sps:$4 sm:$0xff]  }
 0x144   : > { %4827 = vmatmul.mubr.msk.bf16.vlgmr.msra.gmra.mrb[4].mxu0 %vm1380_vm2, %v1444_v24  ;;  %v1552_v29 = vld [vmem:[#allocation2 + $0x10] sm:$0xff]  ;;  %v1551_v30 = vld [vmem:[#allocation2 + $0x8] sm:$0xff]  ;;  %v1614_v31 = vpack.c.bf16 %v1610_v28, %v1609_v27 }
 0x145   : > { %4821 = vmatmul.mubr.msk.bf16.vlgmr.msra.gmra.mrb[0].mxu1 %vm1380_vm2, %v1450_v26  ;;  %4837 = vmatpush3.bf16.msra.mxu0 %v5183_v21  ;;  %v5564_v33 = vpack.c.bf16 %v1552_v29, %v1551_v30  ;;  %v1667_v34 = vld [vmem:[#allocation2 + $0xa] sm:$0xff]  ;;  %v1668_v35 = vld [vmem:[#allocation2 + $0x12] sm:$0xff]  ;;  %v5185_v29 = vld [vmem:[%s5300_s17] sm:$0xff]  }
 0x146   : > { %4831 = vmatpush3.bf16.msra.mxu1 %v5182_v25  ;;  %4832 = vmatprep.mubr.msk.bf16.mxu1 %vm5274_vm1, %v5273_v1  ;;  %v1672_v36 = vpack.c.bf16 %v1668_v35, %v1667_v34  ;;  %v4558_v24 = vld [vmem:[%s5330_s14 + $0x10] sm:$0xf] }
 0x147   : > { %4838 = vmatprep.mubr.msk.bf16.mxu0 %vm5274_vm1, %v5273_v1  ;;  %4842 = vmatprep.subr.bf16.mxu1 %v5273_v1 }
 0x148   : > { %4848 = vmatprep.subr.bf16.mxu0 %v5273_v1 }
 0x14c   : > { %4839 = vmatmul.mubr.msk.bf16.vlgmr.msra.gmra.mrb[8].mxu0 %vm1380_vm2, %v1614_v31 }
 0x14d   : > { %4833 = vmatmul.mubr.msk.bf16.vlgmr.msra.gmra.mrb[4].mxu1 %vm1380_vm2, %v5564_v33  ;;  %4850 = vmatprep.mubr.msk.bf16.mxu0 %vm5274_vm1, %v5273_v1 }
 0x14e   : > { %4843 = vmatpush3.bf16.msra.mxu1 %v5184_v32  ;;  %4844 = vmatprep.mubr.msk.bf16.mxu1 %vm5274_vm1, %v5273_v1  ;;  %v1970_v32 = vsel %vm1761_vm6, %v4558_v24, 0 }
 0x14f   : > { %4854 = vmatprep.subr.bf16.mxu1 %v5273_v1  ;;  %4849 = vmatpush3.bf16.msra.mxu0 %v1763_v39 }
 0x150   : > { %4860 = vmatprep.subr.bf16.mxu0 %v5273_v1 }
 0x155   : > { %4845 = vmatmul.mubr.msk.bf16.vlgmr.msra.gmra.mrb[8].mxu1 %vm1380_vm2, %v1672_v36 }
 0x156   : > { %4856 = vmatprep.mubr.msk.bf16.mxu1 %vm5274_vm1, %v5273_v1  ;;  %4855 = vmatpush3.bf16.msra.mxu1 %v1810_v40 }
 0x157   : > { %4866 = vmatprep.subr.bf16.mxu1 %v5273_v1 }
 0x217   : > { %v1544_v41 = vpop.f32.mrb[4].mxu0 }
 0x218   : > { %v1494_v42 = vpop.f32.mrb[0].mxu1  ;;  %v4828_v43 = vpop.f32.mrb[5].mxu0 }
 0x219   : > { %v1545_v44 = vadd.f32 %v1544_v41, %v1494_v42  ;;  %v4822_v45 = vpop.f32.mrb[1].mxu1  ;;  %v1547_v46 = vpop.f32.mrb[6].mxu0 }
 0x21a   : > { %v1497_v47 = vpop.f32.mrb[2].mxu1  ;;  %v4829_v48 = vpop.f32.mrb[7].mxu0 }
 0x21b   : > { %v1548_v49 = vadd.f32 %v1547_v46, %v1497_v47  ;;  %v4823_v50 = vpop.f32.mrb[3].mxu1 }
 0x21f   : > { %v1658_v51 = vpop.f32.mrb[8].mxu0 }
 0x220   : > { %v1600_v52 = vpop.f32.mrb[4].mxu1  ;;  %v4840_v53 = vpop.f32.mrb[9].mxu0 }
 0x221   : > { %v1607_v54 = vadd.f32 %v1600_v52, %v1545_v44  ;;  %v4834_v55 = vpop.f32.mrb[5].mxu1  ;;  %v1661_v56 = vpop.f32.mrb[10].mxu0 }
 0x222   : > { %v1603_v57 = vpop.f32.mrb[6].mxu1  ;;  %v4841_v58 = vpop.f32.mrb[11].mxu0 }
 0x223   : > { %v1665_v59 = vadd.f32 %v1658_v51, %v1607_v54  ;;  %v1608_v60 = vadd.f32 %v1603_v57, %v1548_v49  ;;  %v4835_v61 = vpop.f32.mrb[7].mxu1 }
 0x225   : > { %v1666_v62 = vadd.f32 %v1661_v56, %v1608_v60 }
 0x228   : > { %v1716_v63 = vpop.f32.mrb[8].mxu1 }
 0x229   : > { %v1723_v2 = vadd.f32 %v1716_v63, %v1665_v59  ;;  %v4846_v3 = vpop.f32.mrb[9].mxu1  ;;  %v4560_v59 = vld [vmem:[%s5325_s8] ss:$0 sm:$0xff] }
 0x22a   : > { %v1719_v5 = vpop.f32.mrb[10].mxu1 }
 0x22b   : > { %v1732_v6 = vadd.f32 %v4549_v0, %v1723_v2  ;;  %v1724_v7 = vadd.f32 %v1719_v5, %v1666_v62  ;;  %v4847_v8 = vpop.f32.mrb[11].mxu1  ;;  %v4562_v5 = vld [vmem:[%s5295_s13] ss:$0 sm:$0xff] }
 0x22d   : > { %vm1735_vm7 = vcmp.gt.f32.partialorder %v1732_v6, 0.0  ;;  %v1743_v9 = vmul.f32 %v4550_v4, %v1732_v6  ;;  %v1733_v10 = vadd.f32 %v4549_v0, %v1724_v7  ;;  %v4561_v0 = vld [vmem:[%s5320_s3] ss:$0 sm:$0xff] }
 0x22f   : > { %v1745_v11 = vsel %vm1735_vm7, %v1732_v6, %v1743_v9  ;;  %vm1736_vm8 = vcmp.gt.f32.partialorder %v1733_v10, 0.0  ;;  %v1744_v12 = vmul.f32 %v4550_v4, %v1733_v10  ;;  %v5186_v9 = vld [vmem:[%s5360_s20 + $0xc] sm:$0xff]  }
 0x230   : > { %1747 = vst.msk [vmem:[#allocation3 + $0x8] sm:$0xff] %vm1357_vm5, %v1745_v11  ;;  %v5188_v11 = vld [vmem:[%s5360_s20 + $0x14] ss:$0 sps:$4 sm:$0xff]  }
 0x231   : > { %v1746_v13 = vsel %vm1736_vm8, %v1733_v10, %v1744_v12  ;;  %v5187_v10 = vld [vmem:[%s5360_s20] sm:$0xff]  }
 0x232   : > { %1748 = vst.msk [vmem:[#allocation3 + $0x10] sm:$0xff] %vm1357_vm5, %v1746_v13 }
 0x237   : > { %v1753_v16 = vld [vmem:[#allocation3 + $0x7] sm:$0xff] }
 0x238   : > { %v1749_v18 = vld [vmem:[#allocation3 + $0x6] sm:$0xff] }
 0x239   : > { %v1754_v17 = vld [vmem:[#allocation3 + $0xf] sm:$0xff] }
 0x23a   : > { %v1750_v19 = vld [vmem:[#allocation3 + $0xe] sm:$0xff]  ;;  %v1757_v20 = vpack.c.bf16 %v1754_v17, %v1753_v16  ;;  %v2152_v16 = vsel %vm1761_vm6, %v5188_v11, 0 }
 0x23b   : > { %v1752_v21 = vpack.c.bf16 %v1750_v19, %v1749_v18  ;;  %v1854_v25 = vld [vmem:[#allocation3 + $0x10] sm:$0xff]  ;;  %v1853_v28 = vld [vmem:[#allocation3 + $0x8] sm:$0xff]  ;;  %v4565_v19 = vld [vmem:[%s5290_s9] ss:$0 sm:$0xff] }
 0x23c   : > { %4851 = vmatmul.mubr.msk.bf16.vlgmr.msra.gmra.mrb[12].mxu0 %vm1357_vm5, %v1757_v20  ;;  %v1907_v26 = vld [vmem:[#allocation3 + $0x9] sm:$0xff]  ;;  %v1908_v27 = vld [vmem:[#allocation3 + $0x11] sm:$0xff]  ;;  %v1857_v30 = vpack.c.bf16 %v1854_v25, %v1853_v28  ;;  %v2208_v20 = vsel %vm1761_vm6, %v5189_v14, 0 }
 0x23d   : > { %4857 = vmatmul.mubr.msk.bf16.vlgmr.msra.gmra.mrb[12].mxu1 %vm1357_vm5, %v1752_v21  ;;  %4861 = vmatpush3.bf16.msra.mxu0 %v1862_v22  ;;  %v1911_v31 = vpack.c.bf16 %v1908_v27, %v1907_v26  ;;  %v1961_v34 = vld [vmem:[#allocation3 + $0xa] sm:$0xff]  ;;  %v1962_v35 = vld [vmem:[#allocation3 + $0x12] sm:$0xff] }
 0x23e   : > { %4867 = vmatpush3.bf16.msra.mxu1 %v1916_v23  ;;  %4862 = vmatprep.mubr.msk.bf16.mxu0 %vm5274_vm1, %v5273_v1  ;;  %v1965_v36 = vpack.c.bf16 %v1962_v35, %v1961_v34  ;;  %v5191_v34 = vld [vmem:[%s5360_s20 + $0x24] sm:$0xff]  }
 0x23f   : > { %4868 = vmatprep.mubr.msk.bf16.mxu1 %vm5274_vm1, %v5273_v1  ;;  %4872 = vmatprep.subr.bf16.mxu0 %v5273_v1 }
 0x240   : > { %4878 = vmatprep.subr.bf16.mxu1 %v5273_v1 }
 0x244   : > { %4863 = vmatmul.mubr.msk.bf16.vlgmr.msra.gmra.mrb[16].mxu0 %vm1357_vm5, %v1857_v30 }
 0x245   : > { %4869 = vmatmul.mubr.msk.bf16.vlgmr.msra.gmra.mrb[16].mxu1 %vm1357_vm5, %v1911_v31  ;;  %4873 = vmatpush3.bf16.msra.mxu0 %v1970_v32  ;;  %v5190_v32 = vld [vmem:[%s5360_s20 + $0x18] sm:$0xff]  }
 0x246   : > { %4879 = vmatpush3.bf16.msra.mxu1 %v5185_v29  ;;  %4874 = vmatprep.mubr.msk.bf16.mxu0 %vm5274_vm1, %v5273_v1 }
 0x247   : > { %4880 = vmatprep.mubr.msk.bf16.mxu1 %vm5274_vm1, %v5273_v1  ;;  %4884 = vmatprep.subr.bf16.mxu0 %v5273_v1 }
 0x248   : > { %4892 = vmatprep.subr.bf16.mxu1 %v5273_v1 }
 0x24c   : > { %4875 = vmatmul.mubr.msk.bf16.vlgmr.msra.gmra.mrb[20].mxu0 %vm1357_vm5, %v1965_v36 }
 0x24d   : > { %4881 = vmatmul.mubr.msk.bf16.vlgmr.msra.gmra.mrb[20].mxu1 %vm1380_vm2, %v5564_v33  ;;  %4888 = vmatprep.mubr.msk.bf16.mxu0 %vm5274_vm1, %v5273_v1 }
 0x24e   : > { %4896 = vmatprep.mubr.msk.bf16.mxu1 %vm5274_vm1, %v5273_v1  ;;  %4885 = vmatpush3.bf16.msra.mxu0 %v5186_v9 }
 0x24f   : > { %4893 = vmatpush3.bf16.msra.mxu1 %v5187_v10  ;;  %4886 = vmatprep.subr.bf16.mxu0 %v5273_v1 }
 0x250   : > { %4894 = vmatprep.subr.bf16.mxu1 %v5273_v1 }
 0x252   : > { %4887 = vmatpush3.bf16.msra.mxu0 %v2152_v16 }
 0x253   : > { %4895 = vmatpush3.bf16.msra.mxu1 %v2208_v20  ;;  %4900 = vmatprep.subr.bf16.mxu0 %v5273_v1 }
 0x254   : > { %4908 = vmatprep.subr.bf16.mxu1 %v5273_v1 }
 0x30f   : > { %v1799_v37 = vpop.f32.mrb[12].mxu0 }
 0x310   : > { %v1846_v38 = vpop.f32.mrb[12].mxu1  ;;  %v4852_v40 = vpop.f32.mrb[13].mxu0 }
 0x311   : > { %v1847_v39 = vadd.f32 %v1846_v38, %v1799_v37  ;;  %v4858_v41 = vpop.f32.mrb[13].mxu1  ;;  %v1802_v42 = vpop.f32.mrb[14].mxu0  ;;  %v5192_v40 = vld [vmem:[%s5360_s20 + $0x20] ss:$0 sps:$4 sm:$0xff]  }
 0x312   : > { %v1849_v43 = vpop.f32.mrb[14].mxu1  ;;  %v4853_v45 = vpop.f32.mrb[15].mxu0  ;;  %v5193_v41 = vld [vmem:[%s5360_s20 + $0x2c] ss:$0 sps:$4 sm:$0xff]  }
 0x313   : > { %v1850_v44 = vadd.f32 %v1849_v43, %v1802_v42  ;;  %v4859_v46 = vpop.f32.mrb[15].mxu1  ;;  %v2271_v42 = vsel %vm1761_vm6, %v5192_v40, 0  ;;  %v2336_v43 = vsel %vm1761_vm6, %v5193_v41, 0 }
 0x317   : > { %v1898_v47 = vpop.f32.mrb[16].mxu0 }
 0x318   : > { %v1952_v48 = vpop.f32.mrb[16].mxu1  ;;  %v1905_v33 = vadd.f32 %v1898_v47, %v1847_v39  ;;  %v4864_v49 = vpop.f32.mrb[17].mxu0 }
 0x319   : > { %v4870_v50 = vpop.f32.mrb[17].mxu1  ;;  %v1901_v51 = vpop.f32.mrb[18].mxu0 }
 0x31a   : > { %v1955_v52 = vpop.f32.mrb[18].mxu1  ;;  %v1959_v53 = vadd.f32 %v1952_v48, %v1905_v33  ;;  %v1906_v54 = vadd.f32 %v1901_v51, %v1850_v44  ;;  %v4865_v55 = vpop.f32.mrb[19].mxu0  ;;  %v5194_v48 = vld [vmem:[%s5360_s20 + $0x30] sm:$0xff]   ;;  %v5195_v50 = vld [vmem:[%s5360_s20 + $0x38] ss:$0 sps:$4 sm:$0xff]  }
 0x31b   : > { %v4871_v56 = vpop.f32.mrb[19].mxu1  ;;  %v2401_v51 = vsel %vm1761_vm6, %v5195_v50, 0  ;;  %v2472_v55 = vld [vmem:[%s5957_s16] sm:$0xf] }
 0x31c   : > { %v1960_v57 = vadd.f32 %v1955_v52, %v1906_v54  ;;  %v4595_v54 = vld [vmem:[%s5957_s16 + $0x4] sm:$0xf] }
 0x31d   : > { %v2483_v56 = vsel %vm1761_vm6, %v4595_v54, 0 }
 0x31f   : > { %v2006_v58 = vpop.f32.mrb[20].mxu0 }
 0x320   : > { %v2092_v60 = vpop.f32.mrb[20].mxu1  ;;  %v2013_v61 = vadd.f32 %v2006_v58, %v1959_v53  ;;  %v4876_v62 = vpop.f32.mrb[21].mxu0 }
 0x321   : > { %v4882_v63 = vpop.f32.mrb[21].mxu1  ;;  %v2009_v2 = vpop.f32.mrb[22].mxu0  ;;  %v2093_v15 = vadd.f32 %v4562_v5, %v2092_v60 }
 0x322   : > { %v2095_v3 = vpop.f32.mrb[22].mxu1  ;;  %v2022_v4 = vadd.f32 %v4560_v59, %v2013_v61  ;;  %v2014_v6 = vadd.f32 %v2009_v2, %v1960_v57  ;;  %v4877_v7 = vpop.f32.mrb[23].mxu0  ;;  %v2530_v57 = vsel %vm1761_vm6, %v2472_v55, 0 }
 0x323   : > { %v4883_v8 = vpop.f32.mrb[23].mxu1  ;;  %v2096_v22 = vadd.f32 %v4562_v5, %v2095_v3 }
 0x324   : > { %v2033_v12 = vmul.f32 %v4561_v0, %v2022_v4  ;;  %vm2025_vm9 = vcmp.gt.f32.partialorder %v2022_v4, 0.0  ;;  %v2023_v13 = vadd.f32 %v4560_v59, %v2014_v6 }
 0x326   : > { %v2035_v17 = vsel %vm2025_vm9, %v2022_v4, %v2033_v12  ;;  %v2034_v18 = vmul.f32 %v4561_v0, %v2023_v13  ;;  %vm2026_vm10 = vcmp.gt.f32.partialorder %v2023_v13, 0.0 }
 0x327   : > { %v2099_v21 = vadd.f32 %v2093_v15, %v2035_v17 }
 0x328   : > { %v2036_v23 = vsel %vm2026_vm10, %v2023_v13, %v2034_v18  ;;  %v4593_v18 = vld [vmem:[%s5958_s18] ss:$0 sm:$0xff]  ;;  %s5926_s18 = smov 24   ;;  %vm2849_vm10 = vcmask 261312  }
 0x329   : > { %v2100_v24 = vadd.f32 %v2096_v22, %v2036_v23  ;;  %vm2102_vm11 = vcmp.gt.f32.partialorder %v2099_v21, 0.0  ;;  %v2110_v25 = vmul.f32 %v4565_v19, %v2099_v21 }
 0x32b   : > { %v2112_v26 = vsel %vm2102_vm11, %v2099_v21, %v2110_v25  ;;  %v2111_v27 = vmul.f32 %v4565_v19, %v2100_v24  ;;  %vm2103_vm12 = vcmp.gt.f32.partialorder %v2100_v24, 0.0  ;;  %v4594_v21 = vld [vmem:[%s5959_s22] ss:$0 sm:$0xff]  ;;  %s5966_s22 = sld [smem:[#allocation20_spill]] }
 0x32c   : > { %2116 = vrot.lane.b32.xlu0 %v2112_v26, %s5275_s15 }
 0x32d   : > { %v2113_v28 = vsel %vm2103_vm12, %v2100_v24, %v2111_v27 }
 0x330   : > { %2118 = vrot.lane.b32.xlu0 %v2113_v28, %s5275_s15 }
 0x39e   : > { %v2117_v29 = vpop.permute.xlu0 %2116 }
 0x39f   : > { %2123 = vst.msk [vmem:[#allocation2 + $0x8] sm:$0xff] %vm2122_vm13, %v2117_v29 }
 0x3a2   : > { %v2119_v30 = vpop.permute.xlu0 %2118 }
 0x3a3   : > { %2124 = vst.msk [vmem:[#allocation2 + $0x10] sm:$0xff] %vm2122_vm13, %v2119_v30 }
 0x3a6   : > { %v2131_v31 = vld [vmem:[#allocation2 + $0x6] sm:$0xff] }
 0x3a7   : > { %v2125_v36 = vld [vmem:[#allocation2 + $0x4] sm:$0xff] }
 0x3a8   : > { %v2251_v47 = vld [vmem:[#allocation2 + $0x8] sm:$0xff] }
 0x3aa   : > { %v2132_v35 = vld [vmem:[#allocation2 + $0xe] sm:$0xff] }
 0x3ab   : > { %v2126_v37 = vld [vmem:[#allocation2 + $0xc] sm:$0xff]  ;;  %v2137_v38 = vpack.c.bf16 %v2132_v35, %v2131_v31  ;;  %v2382_v52 = vld [vmem:[#allocation2 + $0x14] sm:$0xff]  ;;  %v4598_v31 = vld [vmem:[%s5957_s16 + $0x8] sm:$0xf] }
 0x3ac   : > { %v2130_v39 = vpack.c.bf16 %v2126_v37, %v2125_v36  ;;  %v2252_v44 = vld [vmem:[#allocation2 + $0x10] sm:$0xff]  ;;  %v2387_v53 = vpack.c.bf16 %v2382_v52, %v2126_v37  ;;  %v2582_v40 = vsel %vm1761_vm6, %v4598_v31, 0 }
 0x3ad   : > { %4889 = vmatmul.mubr.msk.bf16.vlgmr.msra.gmra.mrb[24].mxu0 %vm2147_vm14, %v2137_v38  ;;  %v2316_v45 = vld [vmem:[#allocation2 + $0xa] sm:$0xff]  ;;  %v2317_v46 = vld [vmem:[#allocation2 + $0x12] sm:$0xff]  ;;  %v5659_v33 = vpack.c.bf16 %v2252_v44, %v2251_v47  ;;  %v5196_v47 = vld [vmem:[%s5960_s23] sm:$0xff]  }
 0x3ae   : > { %4897 = vmatmul.mubr.msk.bf16.vlgmr.msra.gmra.mrb[24].mxu1 %vm2147_vm14, %v2130_v39  ;;  %4901 = vmatpush3.bf16.msra.mxu0 %v5190_v32  ;;  %v2322_v49 = vpack.c.bf16 %v2317_v46, %v2316_v45  ;;  %v4600_v32 = vld [vmem:[%s5957_s16 + $0xc] sm:$0xf] }
 0x3af   : > { %4909 = vmatpush3.bf16.msra.mxu1 %v5191_v34  ;;  %4902 = vmatprep.subr.bf16.mxu0 %v5273_v1  ;;  %v2636_v41 = vsel %vm1761_vm6, %v4600_v32, 0 }
 0x3b0   : > { %4910 = vmatprep.subr.bf16.mxu1 %v5273_v1  ;;  %4904 = vmatprep.mubr.msk.bf16.mxu0 %vm5274_vm1, %v5273_v1 }
 0x3b1   : > { %4912 = vmatprep.mubr.msk.bf16.mxu1 %vm5274_vm1, %v5273_v1 }
 0x3b2   : > { %4903 = vmatpush3.bf16.msra.mxu0 %v2271_v42  ;;  %v4602_v42 = vld [vmem:[%s5957_s16 + $0x10] sm:$0xf] }
 0x3b3   : > { %4911 = vmatpush3.bf16.msra.mxu1 %v2336_v43  ;;  %4916 = vmatprep.subr.bf16.mxu0 %v5273_v1  ;;  %v2690_v50 = vsel %vm1761_vm6, %v4602_v42, 0 }
 0x3b4   : > { %4924 = vmatprep.subr.bf16.mxu1 %v5273_v1 }
 0x3b5   : > { %4905 = vmatmul.mubr.msk.bf16.vlgmr.msra.gmra.mrb[28].mxu0 %vm2147_vm14, %v5659_v33 }
 0x3b6   : > { %4913 = vmatmul.mubr.msk.bf16.vlgmr.msra.gmra.mrb[28].mxu1 %vm2147_vm14, %v2322_v49  ;;  %4917 = vmatpush3.bf16.msra.mxu0 %v5194_v48 }
 0x3b7   : > { %4920 = vmatprep.mubr.msk.bf16.mxu0 %vm5274_vm1, %v5273_v1  ;;  %4918 = vmatprep.subr.bf16.mxu0 %v5273_v1 }
 0x3b8   : > { %4926 = vmatprep.mubr.msk.bf16.mxu1 %vm5274_vm1, %v5273_v1  ;;  %4925 = vmatpush3.bf16.msra.mxu1 %v2483_v56 }
 0x3b9   : > { %4936 = vmatprep.subr.bf16.mxu1 %v5273_v1 }
 0x3ba   : > { %4919 = vmatpush3.bf16.msra.mxu0 %v2401_v51  ;;  %v5197_v51 = vld [vmem:[%s5960_s23 + $0x8] ss:$0 sps:$4 sm:$0xff]  }
 0x3bb   : > { %4930 = vmatprep.subr.bf16.mxu0 %v5273_v1  ;;  %v2783_v52 = vsel %vm1761_vm6, %v5197_v51, 0  ;;  %v4611_v51 = vld [vmem:[%s5500_s6] ss:$0 sm:$0xff] }
 0x3bd   : > { %4921 = vmatmul.mubr.msk.bf16.vlgmr.msra.gmra.mrb[32].mxu0 %vm2147_vm14, %v2387_v53 }
 0x3be   : > { %4932 = vmatprep.mubr.msk.bf16.mxu0 %vm5274_vm1, %v5273_v1  ;;  %4931 = vmatpush3.bf16.msra.mxu0 %v2530_v57 }
 0x3bf   : > { %4942 = vmatprep.subr.bf16.mxu0 %v5273_v1 }
 0x480   : > { %v2188_v58 = vpop.f32.mrb[24].mxu0 }
 0x481   : > { %v2244_v59 = vpop.f32.mrb[24].mxu1  ;;  %v4890_v61 = vpop.f32.mrb[25].mxu0 }
 0x482   : > { %v2245_v60 = vadd.f32 %v2244_v59, %v2188_v58  ;;  %v4898_v62 = vpop.f32.mrb[25].mxu1  ;;  %v2191_v63 = vpop.f32.mrb[26].mxu0 }
 0x483   : > { %v2247_v0 = vpop.f32.mrb[26].mxu1  ;;  %v4891_v3 = vpop.f32.mrb[27].mxu0 }
 0x484   : > { %v2248_v2 = vadd.f32 %v2247_v0, %v2191_v63  ;;  %v4899_v4 = vpop.f32.mrb[27].mxu1 }
 0x488   : > { %v2307_v5 = vpop.f32.mrb[28].mxu0 }
 0x489   : > { %v2372_v6 = vpop.f32.mrb[28].mxu1  ;;  %v2314_v7 = vadd.f32 %v2307_v5, %v2245_v60  ;;  %v4906_v8 = vpop.f32.mrb[29].mxu0 }
 0x48a   : > { %v4914_v9 = vpop.f32.mrb[29].mxu1  ;;  %v2310_v10 = vpop.f32.mrb[30].mxu0 }
 0x48b   : > { %v2375_v11 = vpop.f32.mrb[30].mxu1  ;;  %v2379_v12 = vadd.f32 %v2372_v6, %v2314_v7  ;;  %v2315_v13 = vadd.f32 %v2310_v10, %v2248_v2  ;;  %v4907_v14 = vpop.f32.mrb[31].mxu0 }
 0x48c   : > { %v4915_v15 = vpop.f32.mrb[31].mxu1  ;;  %v4604_v14 = vld [vmem:[%s5961_s26] ss:$0 sm:$0xff]  ;;  %s5967_s26 = sld [smem:[#allocation16_spill]] }
 0x48d   : > { %v2380_v16 = vadd.f32 %v2375_v11, %v2315_v13 }
 0x490   : > { %v2437_v17 = vpop.f32.mrb[32].mxu0 }
 0x491   : > { %v2444_v19 = vadd.f32 %v2437_v17, %v2379_v12  ;;  %v4922_v20 = vpop.f32.mrb[33].mxu0 }
 0x492   : > { %v2440_v22 = vpop.f32.mrb[34].mxu0 }
 0x493   : > { %v2453_v23 = vadd.f32 %v4593_v18, %v2444_v19  ;;  %v2445_v24 = vadd.f32 %v2440_v22, %v2380_v16  ;;  %v4923_v25 = vpop.f32.mrb[35].mxu0  ;;  %v4605_v19 = vld [vmem:[%s5962_s28] ss:$0 sm:$0xff]  ;;  %s5968_s28 = sld [smem:[#allocation15_spill]] }
 0x495   : > { %vm2456_vm15 = vcmp.gt.f32.partialorder %v2453_v23, 0.0  ;;  %v2464_v26 = vmul.f32 %v4594_v21, %v2453_v23  ;;  %v2454_v27 = vadd.f32 %v4593_v18, %v2445_v24 }
 0x497   : > { %v2466_v28 = vsel %vm2456_vm15, %v2453_v23, %v2464_v26  ;;  %vm2457_vm3 = vcmp.gt.f32.partialorder %v2454_v27, 0.0  ;;  %v2465_v29 = vmul.f32 %v4594_v21, %v2454_v27  ;;  %v4606_v23 = vld [vmem:[%s5963_s1] ss:$0 sm:$0xff]  ;;  %s5969_s1 = sld [smem:[#allocation14_spill]] }
 0x498   : > { %2468 = vst.msk [vmem:[#allocation3 + $0x8] sm:$0xff] %vm1357_vm5, %v2466_v28 }
 0x499   : > { %v2467_v30 = vsel %vm2457_vm3, %v2454_v27, %v2465_v29  ;;  %v5198_v27 = vld [vmem:[%s5505_s12] sm:$0xff]  }
 0x49a   : > { %2469 = vst.msk [vmem:[#allocation3 + $0x10] sm:$0xff] %vm1357_vm5, %v2467_v30  ;;  %v5199_v30 = vld [vmem:[%s5505_s12 + $0x8] sm:$0xff]  }
 0x49f   : > { %v2474_v34 = vld [vmem:[#allocation3 + $0x6] sm:$0xff] }
 0x4a0   : > { %v2470_v36 = vld [vmem:[#allocation3 + $0x4] sm:$0xff] }
 0x4a1   : > { %v2475_v35 = vld [vmem:[#allocation3 + $0xe] sm:$0xff] }
 0x4a2   : > { %v2471_v37 = vld [vmem:[#allocation3 + $0xc] sm:$0xff]  ;;  %v2478_v38 = vpack.c.bf16 %v2475_v35, %v2474_v34  ;;  %v2682_v53 = vld [vmem:[#allocation3 + $0x14] sm:$0xff]  ;;  %v4610_v35 = vld [vmem:[%s5964_s2] ss:$0 sm:$0xff]  ;;  %s5970_s2 = sld [smem:[#allocation19_spill]] }
 0x4a3   : > { %v2473_v39 = vpack.c.bf16 %v2471_v37, %v2470_v36  ;;  %v2574_v43 = vld [vmem:[#allocation3 + $0x10] sm:$0xff]  ;;  %v2573_v46 = vld [vmem:[#allocation3 + $0x8] sm:$0xff]  ;;  %v2685_v54 = vpack.c.bf16 %v2682_v53, %v2471_v37  ;;  %v4615_v53 = vld [vmem:[%s5495_s30] ss:$0 sm:$0xff] }
 0x4a4   : > { %4927 = vmatmul.mubr.msk.bf16.vlgmr.msra.gmra.mrb[32].mxu1 %vm1357_vm5, %v2478_v38  ;;  %v2627_v44 = vld [vmem:[#allocation3 + $0xa] sm:$0xff]  ;;  %v2628_v45 = vld [vmem:[#allocation3 + $0x12] sm:$0xff]  ;;  %v2577_v48 = vpack.c.bf16 %v2574_v43, %v2573_v46 }
 0x4a5   : > { %4933 = vmatmul.mubr.msk.bf16.vlgmr.msra.gmra.mrb[36].mxu0 %vm1357_vm5, %v2473_v39  ;;  %4937 = vmatpush3.bf16.msra.mxu1 %v2582_v40  ;;  %v2631_v49 = vpack.c.bf16 %v2628_v45, %v2627_v44 }
 0x4a6   : > { %4943 = vmatpush3.bf16.msra.mxu0 %v2636_v41  ;;  %4938 = vmatprep.mubr.msk.bf16.mxu1 %vm5274_vm1, %v5273_v1 }
 0x4a7   : > { %4944 = vmatprep.mubr.msk.bf16.mxu0 %vm5274_vm1, %v5273_v1  ;;  %4948 = vmatprep.subr.bf16.mxu1 %v5273_v1 }
 0x4a8   : > { %4954 = vmatprep.subr.bf16.mxu0 %v5273_v1 }
 0x4ac   : > { %4939 = vmatmul.mubr.msk.bf16.vlgmr.msra.gmra.mrb[36].mxu1 %vm1357_vm5, %v2577_v48 }
 0x4ad   : > { %4945 = vmatmul.mubr.msk.bf16.vlgmr.msra.gmra.mrb[40].mxu0 %vm1357_vm5, %v2631_v49  ;;  %4949 = vmatpush3.bf16.msra.mxu1 %v2690_v50  ;;  %v5200_v49 = vld [vmem:[%s5965_s11 + $0x8] sm:$0xff]   ;;  %v5201_v50 = vld [vmem:[%s5965_s11] sm:$0xff]  }
 0x4ae   : > { %4955 = vmatpush3.bf16.msra.mxu0 %v5196_v47  ;;  %4950 = vmatprep.mubr.msk.bf16.mxu1 %vm5274_vm1, %v5273_v1 }
 0x4af   : > { %4956 = vmatprep.subr.bf16.mxu0 %v5273_v1  ;;  %4958 = vmatprep.mubr.msk.bf16.mxu0 %vm5274_vm1, %v5273_v1 }
 0x4b0   : > { %4962 = vmatprep.subr.bf16.mxu1 %v5273_v1 }
 0x4b2   : > { %4957 = vmatpush3.bf16.msra.mxu0 %v2783_v52 }
 0x4b3   : > { %4970 = vmatprep.subr.bf16.mxu0 %v5273_v1 }
 0x4b4   : > { %4951 = vmatmul.mubr.msk.bf16.vlgmr.msra.gmra.mrb[40].mxu1 %vm1357_vm5, %v2685_v54 }
 0x4b5   : > { %4959 = vmatmul.mubr.msk.bf16.vlgmr.msra.gmra.mrb[44].mxu0 %vm2147_vm14, %v5659_v33  ;;  %4966 = vmatprep.mubr.msk.bf16.mxu1 %vm5274_vm1, %v5273_v1 }
 0x4b6   : > { %4972 = vmatprep.mubr.msk.bf16.mxu0 %vm5274_vm1, %v5273_v1  ;;  %4963 = vmatpush3.bf16.msra.mxu1 %v5198_v27 }
 0x4b7   : > { %4964 = vmatprep.subr.bf16.mxu1 %v5273_v1  ;;  %4971 = vmatpush3.bf16.msra.mxu0 %v5200_v49 }
 0x4b8   : > { %4982 = vmatprep.subr.bf16.mxu0 %v5273_v1 }
 0x4ba   : > { %4965 = vmatpush3.bf16.msra.mxu1 %v5199_v30 }
 0x4bb   : > { %4976 = vmatprep.subr.bf16.mxu1 %v5273_v1 }
 0x577   : > { %v2519_v55 = vpop.f32.mrb[32].mxu1 }
 0x578   : > { %v2566_v56 = vpop.f32.mrb[36].mxu0  ;;  %v4928_v58 = vpop.f32.mrb[33].mxu1 }
 0x579   : > { %v2567_v57 = vadd.f32 %v2566_v56, %v2519_v55  ;;  %v4934_v59 = vpop.f32.mrb[37].mxu0  ;;  %v2522_v60 = vpop.f32.mrb[34].mxu1 }
 0x57a   : > { %v2569_v61 = vpop.f32.mrb[38].mxu0  ;;  %v4929_v63 = vpop.f32.mrb[35].mxu1 }
 0x57b   : > { %v2570_v62 = vadd.f32 %v2569_v61, %v2522_v60  ;;  %v4935_v0 = vpop.f32.mrb[39].mxu0 }
 0x57c   : > { %v5202_v0 = vld [vmem:[%s5965_s11 + $0x10] sm:$0xff]  }
 0x57f   : > { %v2618_v2 = vpop.f32.mrb[36].mxu1 }
 0x580   : > { %v2672_v3 = vpop.f32.mrb[40].mxu0  ;;  %v2625_v33 = vadd.f32 %v2618_v2, %v2567_v57  ;;  %v4940_v4 = vpop.f32.mrb[37].mxu1  ;;  %v5203_v2 = vld [vmem:[%s5965_s11 + $0x18] sm:$0xff]  }
 0x581   : > { %v4946_v5 = vpop.f32.mrb[41].mxu0  ;;  %v2621_v6 = vpop.f32.mrb[38].mxu1 }
 0x582   : > { %v2675_v7 = vpop.f32.mrb[42].mxu0  ;;  %v2679_v8 = vadd.f32 %v2672_v3, %v2625_v33  ;;  %v2626_v9 = vadd.f32 %v2621_v6, %v2570_v62  ;;  %v4941_v10 = vpop.f32.mrb[39].mxu1 }
 0x583   : > { %v4947_v11 = vpop.f32.mrb[43].mxu0 }
 0x584   : > { %v2680_v12 = vadd.f32 %v2675_v7, %v2626_v9  ;;  %v5204_v11 = vld [vmem:[%s5965_s11 + $0x20] sm:$0xff]  }
 0x587   : > { %v2726_v13 = vpop.f32.mrb[40].mxu1 }
 0x588   : > { %v2819_v15 = vpop.f32.mrb[44].mxu0  ;;  %v2733_v16 = vadd.f32 %v2726_v13, %v2679_v8  ;;  %v4952_v17 = vpop.f32.mrb[41].mxu1 }
 0x589   : > { %v4960_v18 = vpop.f32.mrb[45].mxu0  ;;  %v2729_v20 = vpop.f32.mrb[42].mxu1  ;;  %v2820_v31 = vadd.f32 %v4606_v23, %v2819_v15  ;;  %v4636_v17 = vld [vmem:[%s5966_s22 + $0x4] sm:$0xf] }
 0x58a   : > { %v2822_v21 = vpop.f32.mrb[46].mxu0  ;;  %v2742_v22 = vadd.f32 %v4604_v14, %v2733_v16  ;;  %v2734_v24 = vadd.f32 %v2729_v20, %v2680_v12  ;;  %v4953_v25 = vpop.f32.mrb[43].mxu1  ;;  %v3248_v18 = vld [vmem:[%s5966_s22] sm:$0xf] }
 0x58b   : > { %v4961_v26 = vpop.f32.mrb[47].mxu0  ;;  %v2823_v37 = vadd.f32 %v4606_v23, %v2822_v21  ;;  %v3306_v20 = vsel %vm1761_vm6, %v3248_v18, 0 }
 0x58c   : > { %v2753_v28 = vmul.f32 %v4605_v19, %v2742_v22  ;;  %vm2745_vm4 = vcmp.gt.f32.partialorder %v2742_v22, 0.0  ;;  %v2743_v29 = vadd.f32 %v4604_v14, %v2734_v24 }
 0x58e   : > { %v2755_v32 = vsel %vm2745_vm4, %v2742_v22, %v2753_v28  ;;  %v2754_v34 = vmul.f32 %v4605_v19, %v2743_v29  ;;  %vm2746_vm7 = vcmp.gt.f32.partialorder %v2743_v29, 0.0  ;;  %v3259_v19 = vsel %vm1761_vm6, %v4636_v17, 0 }
 0x58f   : > { %v2826_v36 = vadd.f32 %v2820_v31, %v2755_v32 }
 0x590   : > { %v2756_v38 = vsel %vm2746_vm7, %v2743_v29, %v2754_v34 }
 0x591   : > { %v2827_v39 = vadd.f32 %v2823_v37, %v2756_v38  ;;  %vm2829_vm8 = vcmp.gt.f32.partialorder %v2826_v36, 0.0  ;;  %v2837_v40 = vmul.f32 %v4610_v35, %v2826_v36 }
 0x593   : > { %v2839_v41 = vsel %vm2829_vm8, %v2826_v36, %v2837_v40  ;;  %v2838_v42 = vmul.f32 %v4610_v35, %v2827_v39  ;;  %vm2830_vm9 = vcmp.gt.f32.partialorder %v2827_v39, 0.0 }
 0x594   : > { %2843 = vrot.lane.b32.xlu1 %v2839_v41, %s5926_s18 }
 0x595   : > { %v2840_v43 = vsel %vm2830_vm9, %v2827_v39, %v2838_v42 }
 0x598   : > { %2845 = vrot.lane.b32.xlu1 %v2840_v43, %s5926_s18  ;;  %s5982_s18 = sld [smem:[#allocation22_spill]] }
 0x606   : > { %v2844_v44 = vpop.permute.xlu1 %2843 }
 0x607   : > { %2850 = vst.msk [vmem:[#allocation2 + $0x8] sm:$0xff] %vm2849_vm10, %v2844_v44 }
 0x60a   : > { %v2846_v45 = vpop.permute.xlu1 %2845 }
 0x60b   : > { %2851 = vst.msk [vmem:[#allocation2 + $0x10] sm:$0xff] %vm2849_vm10, %v2846_v45  ;;  %v4634_v45 = vld [vmem:[%s5967_s26] ss:$0 sm:$0xff]  ;;  %s5971_s26 = sld [smem:[#allocation18_spill]] }
 0x60e   : > { %v2852_v46 = vld [vmem:[#allocation2 + $0x8] sm:$0xff] }
 0x612   : > { %v2853_v47 = vld [vmem:[#allocation2 + $0x10] sm:$0xff] }
 0x613   : > { %v2858_v48 = vpack.c.bf16 %v2853_v47, %v2852_v46 }
 0x615   : > { %4967 = vmatmul.mubr.msk.bf16.vlgmr.msra.gmra.mrb[44].mxu1 %vm1352_vm0, %v2858_v48  ;;  %v4635_v48 = vld [vmem:[%s5968_s28] ss:$0 sm:$0xff]  ;;  %s5972_s28 = sld [smem:[#allocation26_spill]] }
 0x616   : > { %4978 = vmatprep.mubr.msk.bf16.mxu1 %vm5274_vm1, %v5273_v1  ;;  %4977 = vmatpush3.bf16.msra.mxu1 %v5201_v50 }
 0x617   : > { %4988 = vmatprep.subr.bf16.mxu1 %v5273_v1 }
 0x6e8   : > { %v2915_v52 = vpop.f32.mrb[44].mxu1 }
 0x6e9   : > { %v2916_v54 = vadd.f32 %v4611_v51, %v2915_v52  ;;  %v4968_v55 = vpop.f32.mrb[45].mxu1 }
 0x6ea   : > { %v2918_v56 = vpop.f32.mrb[46].mxu1 }
 0x6eb   : > { %vm2923_vm11 = vcmp.gt.f32.partialorder %v2916_v54, 0.0  ;;  %v2931_v57 = vmul.f32 %v4615_v53, %v2916_v54  ;;  %v2919_v58 = vadd.f32 %v4611_v51, %v2918_v56  ;;  %v4969_v59 = vpop.f32.mrb[47].mxu1 }
 0x6ec   : > { %v4641_v59 = vld [vmem:[%s5966_s22 + $0xc] sm:$0xf] }
 0x6ed   : > { %v2933_v60 = vsel %vm2923_vm11, %v2916_v54, %v2931_v57  ;;  %vm2924_vm12 = vcmp.gt.f32.partialorder %v2919_v58, 0.0  ;;  %v2932_v61 = vmul.f32 %v4615_v53, %v2919_v58  ;;  %vm4415_vm11 = vcmask 211968  }
 0x6ee   : > { %2935 = vst.msk [vmem:[#allocation2 + $0x8] sm:$0xff] %vm1380_vm2, %v2933_v60 }
 0x6ef   : > { %v2934_v62 = vsel %vm2924_vm12, %v2919_v58, %v2932_v61  ;;  %v4639_v58 = vld [vmem:[%s5966_s22 + $0x8] sm:$0xf] }
 0x6f0   : > { %2936 = vst.msk [vmem:[#allocation2 + $0x10] sm:$0xff] %vm1380_vm2, %v2934_v62 }
 0x6f5   : > { %v2942_v63 = vld [vmem:[#allocation2 + $0x7] sm:$0xff] }
 0x6f6   : > { %v2937_v33 = vld [vmem:[#allocation2 + $0x6] sm:$0xff] }
 0x6f7   : > { %v2943_v3 = vld [vmem:[#allocation2 + $0xf] sm:$0xff] }
 0x6f8   : > { %v2938_v4 = vld [vmem:[#allocation2 + $0xe] sm:$0xff]  ;;  %v2947_v5 = vpack.c.bf16 %v2943_v3, %v2942_v63  ;;  %v3358_v3 = vsel %vm1761_vm6, %v4639_v58, 0 }
 0x6f9   : > { %v2941_v6 = vpack.c.bf16 %v2938_v4, %v2937_v33  ;;  %v3049_v7 = vld [vmem:[#allocation2 + $0x10] sm:$0xff]  ;;  %v3048_v10 = vld [vmem:[#allocation2 + $0x8] sm:$0xff]  ;;  %v3412_v33 = vsel %vm1761_vm6, %v4641_v59, 0 }
 0x6fa   : > { %4973 = vmatmul.mubr.msk.bf16.vlgmr.msra.gmra.mrb[48].mxu0 %vm1380_vm2, %v2947_v5  ;;  %v3106_v8 = vld [vmem:[#allocation2 + $0x9] sm:$0xff]  ;;  %v3107_v9 = vld [vmem:[#allocation2 + $0x11] sm:$0xff]  ;;  %v5753_v12 = vpack.c.bf16 %v3049_v7, %v3048_v10 }
 0x6fb   : > { %4979 = vmatmul.mubr.msk.bf16.vlgmr.msra.gmra.mrb[48].mxu1 %vm1380_vm2, %v2941_v6  ;;  %4983 = vmatpush3.bf16.msra.mxu0 %v5202_v0  ;;  %v3111_v13 = vpack.c.bf16 %v3107_v9, %v3106_v8  ;;  %v3164_v14 = vld [vmem:[#allocation2 + $0xa] sm:$0xff]  ;;  %v3165_v15 = vld [vmem:[#allocation2 + $0x12] sm:$0xff]  ;;  %v5205_v9 = vld [vmem:[%s5969_s1] sm:$0xff]   ;;  %s5973_s1 = sld [smem:[#allocation13_spill]] }
 0x6fc   : > { %4989 = vmatpush3.bf16.msra.mxu1 %v5203_v2  ;;  %4984 = vmatprep.mubr.msk.bf16.mxu0 %vm5274_vm1, %v5273_v1  ;;  %v3169_v16 = vpack.c.bf16 %v3165_v15, %v3164_v14  ;;  %v4643_v4 = vld [vmem:[%s5966_s22 + $0x10] sm:$0xf] }
 0x6fd   : > { %4990 = vmatprep.mubr.msk.bf16.mxu1 %vm5274_vm1, %v5273_v1  ;;  %4994 = vmatprep.subr.bf16.mxu0 %v5273_v1 }
 0x6fe   : > { %5000 = vmatprep.subr.bf16.mxu1 %v5273_v1 }
 0x702   : > { %4985 = vmatmul.mubr.msk.bf16.vlgmr.msra.gmra.mrb[52].mxu0 %vm1380_vm2, %v5753_v12 }
 0x703   : > { %4991 = vmatmul.mubr.msk.bf16.vlgmr.msra.gmra.mrb[52].mxu1 %vm1380_vm2, %v3111_v13  ;;  %4995 = vmatpush3.bf16.msra.mxu0 %v5204_v11  ;;  %v3466_v13 = vsel %vm1761_vm6, %v4643_v4, 0 }
 0x704   : > { %4996 = vmatprep.mubr.msk.bf16.mxu0 %vm5274_vm1, %v5273_v1  ;;  %5006 = vmatprep.subr.bf16.mxu0 %v5273_v1 }
 0x705   : > { %5002 = vmatprep.mubr.msk.bf16.mxu1 %vm5274_vm1, %v5273_v1  ;;  %5001 = vmatpush3.bf16.msra.mxu1 %v3259_v19 }
 0x706   : > { %5012 = vmatprep.subr.bf16.mxu1 %v5273_v1 }
 0x70a   : > { %4997 = vmatmul.mubr.msk.bf16.vlgmr.msra.gmra.mrb[56].mxu0 %vm1380_vm2, %v3169_v16 }
 0x70b   : > { %5008 = vmatprep.mubr.msk.bf16.mxu0 %vm5274_vm1, %v5273_v1  ;;  %5007 = vmatpush3.bf16.msra.mxu0 %v3306_v20 }
 0x70c   : > { %5018 = vmatprep.subr.bf16.mxu0 %v5273_v1 }
 0x7cd   : > { %v2991_v21 = vpop.f32.mrb[48].mxu0 }
 0x7ce   : > { %v3041_v22 = vpop.f32.mrb[48].mxu1  ;;  %v4974_v24 = vpop.f32.mrb[49].mxu0 }
 0x7cf   : > { %v3042_v23 = vadd.f32 %v3041_v22, %v2991_v21  ;;  %v4980_v25 = vpop.f32.mrb[49].mxu1  ;;  %v2994_v26 = vpop.f32.mrb[50].mxu0 }
 0x7d0   : > { %v3044_v27 = vpop.f32.mrb[50].mxu1  ;;  %v4975_v29 = vpop.f32.mrb[51].mxu0 }
 0x7d1   : > { %v3045_v28 = vadd.f32 %v3044_v27, %v2994_v26  ;;  %v4981_v30 = vpop.f32.mrb[51].mxu1 }
 0x7d5   : > { %v3097_v31 = vpop.f32.mrb[52].mxu0 }
 0x7d6   : > { %v3155_v32 = vpop.f32.mrb[52].mxu1  ;;  %v3104_v34 = vadd.f32 %v3097_v31, %v3042_v23  ;;  %v4986_v35 = vpop.f32.mrb[53].mxu0 }
 0x7d7   : > { %v4992_v36 = vpop.f32.mrb[53].mxu1  ;;  %v3100_v37 = vpop.f32.mrb[54].mxu0 }
 0x7d8   : > { %v3158_v38 = vpop.f32.mrb[54].mxu1  ;;  %v3162_v39 = vadd.f32 %v3155_v32, %v3104_v34  ;;  %v3105_v40 = vadd.f32 %v3100_v37, %v3045_v28  ;;  %v4987_v41 = vpop.f32.mrb[55].mxu0 }
 0x7d9   : > { %v4993_v42 = vpop.f32.mrb[55].mxu1 }
 0x7da   : > { %v3163_v43 = vadd.f32 %v3158_v38, %v3105_v40  ;;  %v4645_v40 = vld [vmem:[%s5970_s2] ss:$0 sm:$0xff]  ;;  %s5977_s2 = sld [smem:[#allocation24_spill]] }
 0x7dd   : > { %v3213_v44 = vpop.f32.mrb[56].mxu0 }
 0x7de   : > { %v3220_v46 = vadd.f32 %v3213_v44, %v3162_v39  ;;  %v4998_v47 = vpop.f32.mrb[57].mxu0 }
 0x7df   : > { %v3216_v49 = vpop.f32.mrb[58].mxu0 }
 0x7e0   : > { %v3229_v50 = vadd.f32 %v4634_v45, %v3220_v46  ;;  %v3221_v51 = vadd.f32 %v3216_v49, %v3163_v43  ;;  %v4999_v52 = vpop.f32.mrb[59].mxu0  ;;  %v4646_v43 = vld [vmem:[%s5971_s26] ss:$0 sm:$0xff]  ;;  %s5978_s26 = sld [smem:[#allocation23_spill]] }
 0x7e1   : > { %v5207_v49 = vld [vmem:[%s5972_s28] sm:$0xff]  }
 0x7e2   : > { %vm3232_vm15 = vcmp.gt.f32.partialorder %v3229_v50, 0.0  ;;  %v3240_v53 = vmul.f32 %v4635_v48, %v3229_v50  ;;  %v3230_v54 = vadd.f32 %v4634_v45, %v3221_v51  ;;  %v4647_v52 = vld [vmem:[%s5973_s1] ss:$0 sm:$0xff]  ;;  %s5979_s1 = sld [smem:[#allocation28_spill]] }
 0x7e4   : > { %v3242_v55 = vsel %vm3232_vm15, %v3229_v50, %v3240_v53  ;;  %vm3233_vm3 = vcmp.gt.f32.partialorder %v3230_v54, 0.0  ;;  %v3241_v56 = vmul.f32 %v4635_v48, %v3230_v54  ;;  %v5206_v48 = vld [vmem:[%s5972_s28 + $0xc] sm:$0xff]   ;;  %v5208_v50 = vld [vmem:[%s5972_s28 + $0x14] ss:$0 sps:$4 sm:$0xff]  }
 0x7e5   : > { %3244 = vst.msk [vmem:[#allocation3 + $0x8] sm:$0xff] %vm1357_vm5, %v3242_v55 }
 0x7e6   : > { %v3243_v57 = vsel %vm3233_vm3, %v3230_v54, %v3241_v56  ;;  %v5209_v56 = vld [vmem:[%s5972_s28 + $0x8] ss:$0 sps:$4 sm:$0xff]  }
 0x7e7   : > { %3245 = vst.msk [vmem:[#allocation3 + $0x10] sm:$0xff] %vm1357_vm5, %v3243_v57  ;;  %v3646_v57 = vsel %vm1761_vm6, %v5208_v50, 0 }
 0x7ec   : > { %v3250_v60 = vld [vmem:[#allocation3 + $0x7] sm:$0xff] }
 0x7ed   : > { %v3246_v62 = vld [vmem:[#allocation3 + $0x6] sm:$0xff] }
 0x7ee   : > { %v3251_v61 = vld [vmem:[#allocation3 + $0xf] sm:$0xff] }
 0x7ef   : > { %v3247_v63 = vld [vmem:[#allocation3 + $0xe] sm:$0xff]  ;;  %v3254_v0 = vpack.c.bf16 %v3251_v61, %v3250_v60  ;;  %v3702_v60 = vsel %vm1761_vm6, %v5209_v56, 0 }
 0x7f0   : > { %v3249_v2 = vpack.c.bf16 %v3247_v63, %v3246_v62  ;;  %v3350_v5 = vld [vmem:[#allocation3 + $0x10] sm:$0xff]  ;;  %v3349_v8 = vld [vmem:[#allocation3 + $0x8] sm:$0xff] }
 0x7f1   : > { %5003 = vmatmul.mubr.msk.bf16.vlgmr.msra.gmra.mrb[56].mxu1 %vm1357_vm5, %v3254_v0  ;;  %v3403_v6 = vld [vmem:[#allocation3 + $0x9] sm:$0xff]  ;;  %v3404_v7 = vld [vmem:[#allocation3 + $0x11] sm:$0xff]  ;;  %v3353_v10 = vpack.c.bf16 %v3350_v5, %v3349_v8  ;;  %v4650_v0 = vld [vmem:[%s5974_s0] ss:$0 sm:$0xff]  ;;  %s5975_s0 = sld [smem:[#allocation29_spill]] }
 0x7f2   : > { %5009 = vmatmul.mubr.msk.bf16.vlgmr.msra.gmra.mrb[60].mxu0 %vm1357_vm5, %v3249_v2  ;;  %5013 = vmatpush3.bf16.msra.mxu1 %v3358_v3  ;;  %v3407_v11 = vpack.c.bf16 %v3404_v7, %v3403_v6  ;;  %v3457_v14 = vld [vmem:[#allocation3 + $0xa] sm:$0xff]  ;;  %v3458_v15 = vld [vmem:[#allocation3 + $0x12] sm:$0xff] }
 0x7f3   : > { %5019 = vmatpush3.bf16.msra.mxu0 %v3412_v33  ;;  %5014 = vmatprep.mubr.msk.bf16.mxu1 %vm5274_vm1, %v5273_v1  ;;  %v3461_v16 = vpack.c.bf16 %v3458_v15, %v3457_v14  ;;  %v5211_v14 = vld [vmem:[%s5972_s28 + $0x24] sm:$0xff]  }
 0x7f4   : > { %5020 = vmatprep.mubr.msk.bf16.mxu0 %vm5274_vm1, %v5273_v1  ;;  %5024 = vmatprep.subr.bf16.mxu1 %v5273_v1 }
 0x7f5   : > { %5030 = vmatprep.subr.bf16.mxu0 %v5273_v1 }
 0x7f9   : > { %5015 = vmatmul.mubr.msk.bf16.vlgmr.msra.gmra.mrb[60].mxu1 %vm1357_vm5, %v3353_v10 }
 0x7fa   : > { %5021 = vmatmul.mubr.msk.bf16.vlgmr.msra.gmra.mrb[64].mxu0 %vm1357_vm5, %v3407_v11  ;;  %5025 = vmatpush3.bf16.msra.mxu1 %v3466_v13  ;;  %v5210_v13 = vld [vmem:[%s5972_s28 + $0x18] sm:$0xff]  }
 0x7fb   : > { %5031 = vmatpush3.bf16.msra.mxu0 %v5205_v9  ;;  %5026 = vmatprep.mubr.msk.bf16.mxu1 %vm5274_vm1, %v5273_v1 }
 0x7fc   : > { %5032 = vmatprep.mubr.msk.bf16.mxu0 %vm5274_vm1, %v5273_v1  ;;  %5036 = vmatprep.subr.bf16.mxu1 %v5273_v1 }
 0x7fd   : > { %5044 = vmatprep.subr.bf16.mxu0 %v5273_v1 }
 0x801   : > { %5027 = vmatmul.mubr.msk.bf16.vlgmr.msra.gmra.mrb[64].mxu1 %vm1357_vm5, %v3461_v16 }
 0x802   : > { %5033 = vmatmul.mubr.msk.bf16.vlgmr.msra.gmra.mrb[68].mxu0 %vm1380_vm2, %v5753_v12  ;;  %5040 = vmatprep.mubr.msk.bf16.mxu1 %vm5274_vm1, %v5273_v1 }
 0x803   : > { %5048 = vmatprep.mubr.msk.bf16.mxu0 %vm5274_vm1, %v5273_v1  ;;  %5037 = vmatpush3.bf16.msra.mxu1 %v5206_v48 }
 0x804   : > { %5045 = vmatpush3.bf16.msra.mxu0 %v5207_v49  ;;  %5038 = vmatprep.subr.bf16.mxu1 %v5273_v1 }
 0x805   : > { %5046 = vmatprep.subr.bf16.mxu0 %v5273_v1 }
 0x807   : > { %5039 = vmatpush3.bf16.msra.mxu1 %v3646_v57 }
 0x808   : > { %5047 = vmatpush3.bf16.msra.mxu0 %v3702_v60  ;;  %5052 = vmatprep.subr.bf16.mxu1 %v5273_v1 }
 0x809   : > { %5060 = vmatprep.subr.bf16.mxu0 %v5273_v1 }
 0x8c4   : > { %v3295_v17 = vpop.f32.mrb[56].mxu1 }
 0x8c5   : > { %v3342_v18 = vpop.f32.mrb[60].mxu0  ;;  %v5004_v20 = vpop.f32.mrb[57].mxu1 }
 0x8c6   : > { %v3343_v19 = vadd.f32 %v3342_v18, %v3295_v17  ;;  %v5010_v21 = vpop.f32.mrb[61].mxu0  ;;  %v3298_v22 = vpop.f32.mrb[58].mxu1  ;;  %v5212_v20 = vld [vmem:[%s5972_s28 + $0x20] ss:$0 sps:$4 sm:$0xff]  }
 0x8c7   : > { %v3345_v23 = vpop.f32.mrb[62].mxu0  ;;  %v5005_v25 = vpop.f32.mrb[59].mxu1  ;;  %v5213_v21 = vld [vmem:[%s5972_s28 + $0x2c] ss:$0 sps:$4 sm:$0xff]  }
 0x8c8   : > { %v3346_v24 = vadd.f32 %v3345_v23, %v3298_v22  ;;  %v5011_v26 = vpop.f32.mrb[63].mxu0  ;;  %v3765_v22 = vsel %vm1761_vm6, %v5212_v20, 0  ;;  %v3830_v23 = vsel %vm1761_vm6, %v5213_v21, 0 }
 0x8cc   : > { %v3394_v27 = vpop.f32.mrb[60].mxu1 }
 0x8cd   : > { %v3448_v12 = vpop.f32.mrb[64].mxu0  ;;  %v3401_v28 = vadd.f32 %v3394_v27, %v3343_v19  ;;  %v5016_v29 = vpop.f32.mrb[61].mxu1 }
 0x8ce   : > { %v5022_v30 = vpop.f32.mrb[65].mxu0  ;;  %v3397_v31 = vpop.f32.mrb[62].mxu1 }
 0x8cf   : > { %v3451_v32 = vpop.f32.mrb[66].mxu0  ;;  %v3455_v34 = vadd.f32 %v3448_v12, %v3401_v28  ;;  %v3402_v35 = vadd.f32 %v3397_v31, %v3346_v24  ;;  %v5017_v36 = vpop.f32.mrb[63].mxu1  ;;  %v5214_v12 = vld [vmem:[%s5972_s28 + $0x30] sm:$0xff]   ;;  %v5215_v30 = vld [vmem:[%s5972_s28 + $0x38] ss:$0 sps:$4 sm:$0xff]  }
 0x8d0   : > { %v5023_v37 = vpop.f32.mrb[67].mxu0  ;;  %v3895_v31 = vsel %vm1761_vm6, %v5215_v30, 0  ;;  %v3966_v36 = vld [vmem:[%s5975_s0] sm:$0xf] }
 0x8d1   : > { %v3456_v38 = vadd.f32 %v3451_v32, %v3402_v35  ;;  %v4680_v35 = vld [vmem:[%s5975_s0 + $0x4] sm:$0xf] }
 0x8d2   : > { %v3977_v37 = vsel %vm1761_vm6, %v4680_v35, 0 }
 0x8d4   : > { %v3502_v39 = vpop.f32.mrb[64].mxu1 }
 0x8d5   : > { %v3588_v41 = vpop.f32.mrb[68].mxu0  ;;  %v3509_v42 = vadd.f32 %v3502_v39, %v3455_v34  ;;  %v5028_v44 = vpop.f32.mrb[65].mxu1 }
 0x8d6   : > { %v5034_v45 = vpop.f32.mrb[69].mxu0  ;;  %v3505_v46 = vpop.f32.mrb[66].mxu1  ;;  %v3589_v61 = vadd.f32 %v4647_v52, %v3588_v41 }
 0x8d7   : > { %v3591_v47 = vpop.f32.mrb[70].mxu0  ;;  %v3518_v51 = vadd.f32 %v4645_v40, %v3509_v42  ;;  %v3510_v53 = vadd.f32 %v3505_v46, %v3456_v38  ;;  %v5029_v54 = vpop.f32.mrb[67].mxu1  ;;  %v4024_v38 = vsel %vm1761_vm6, %v3966_v36, 0 }
 0x8d8   : > { %v5035_v55 = vpop.f32.mrb[71].mxu0  ;;  %v3592_v3 = vadd.f32 %v4647_v52, %v3591_v47 }
 0x8d9   : > { %v3529_v58 = vmul.f32 %v4646_v43, %v3518_v51  ;;  %vm3521_vm2 = vcmp.gt.f32.partialorder %v3518_v51, 0.0  ;;  %v3519_v59 = vadd.f32 %v4645_v40, %v3510_v53 }
 0x8db   : > { %v3531_v62 = vsel %vm3521_vm2, %v3518_v51, %v3529_v58  ;;  %v3530_v63 = vmul.f32 %v4646_v43, %v3519_v59  ;;  %vm3522_vm4 = vcmp.gt.f32.partialorder %v3519_v59, 0.0 }
 0x8dc   : > { %v3595_v2 = vadd.f32 %v3589_v61, %v3531_v62 }
 0x8dd   : > { %v3532_v33 = vsel %vm3522_vm4, %v3519_v59, %v3530_v63 }
 0x8de   : > { %v3596_v4 = vadd.f32 %v3592_v3, %v3532_v33  ;;  %vm3598_vm7 = vcmp.gt.f32.partialorder %v3595_v2, 0.0  ;;  %v3606_v5 = vmul.f32 %v4650_v0, %v3595_v2 }
 0x8e0   : > { %v3608_v6 = vsel %vm3598_vm7, %v3595_v2, %v3606_v5  ;;  %vm3599_vm8 = vcmp.gt.f32.partialorder %v3596_v4, 0.0  ;;  %v3607_v7 = vmul.f32 %v4650_v0, %v3596_v4  ;;  %v4679_v2 = vld [vmem:[%s5977_s2] ss:$0 sm:$0xff]  ;;  %s5981_s2 = sld [smem:[#allocation31_spill]] }
 0x8e1   : > { %3612 = vrot.lane.b32.xlu0 %v3608_v6, %s5275_s15 }
 0x8e2   : > { %v3609_v8 = vsel %vm3599_vm8, %v3596_v4, %v3607_v7 }
 0x8e3   : > { %3614 = vrot.lane.b32.xlu1 %v3609_v8, %s5275_s15  ;;  %s5976_s15 = sld [smem:[#allocation25_spill]] }
 0x8e9   : > { %v4678_v62 = vld [vmem:[%s5976_s15] ss:$0 sm:$0xff]  ;;  %s5980_s15 = sld [smem:[#allocation27_spill]] }
 0x953   : > { %v3613_v9 = vpop.permute.xlu0 %3612 }
 0x954   : > { %3618 = vst.msk [vmem:[#allocation2 + $0x8] sm:$0xff] %vm2122_vm13, %v3613_v9 }
 0x955   : > { %v3615_v10 = vpop.permute.xlu1 %3614 }
 0x956   : > { %3619 = vst.msk [vmem:[#allocation2 + $0x10] sm:$0xff] %vm2122_vm13, %v3615_v10 }
 0x95b   : > { %v3626_v11 = vld [vmem:[#allocation2 + $0x6] sm:$0xff] }
 0x95c   : > { %v3620_v16 = vld [vmem:[#allocation2 + $0x4] sm:$0xff] }
 0x95d   : > { %v3627_v15 = vld [vmem:[#allocation2 + $0xe] sm:$0xff] }
 0x95e   : > { %v3621_v17 = vld [vmem:[#allocation2 + $0xc] sm:$0xff]  ;;  %v3632_v18 = vpack.c.bf16 %v3627_v15, %v3626_v11  ;;  %v3876_v32 = vld [vmem:[#allocation2 + $0x14] sm:$0xff]  ;;  %v4683_v11 = vld [vmem:[%s5975_s0 + $0x8] sm:$0xf] }
 0x95f   : > { %v3625_v19 = vpack.c.bf16 %v3621_v17, %v3620_v16  ;;  %v3746_v24 = vld [vmem:[#allocation2 + $0x10] sm:$0xff]  ;;  %v3745_v27 = vld [vmem:[#allocation2 + $0x8] sm:$0xff]  ;;  %v3881_v34 = vpack.c.bf16 %v3876_v32, %v3621_v17  ;;  %v4076_v20 = vsel %vm1761_vm6, %v4683_v11, 0 }
 0x960   : > { %5041 = vmatmul.mubr.msk.bf16.vlgmr.msra.gmra.mrb[68].mxu1 %vm2147_vm14, %v3632_v18  ;;  %v3810_v25 = vld [vmem:[#allocation2 + $0xa] sm:$0xff]  ;;  %v3811_v26 = vld [vmem:[#allocation2 + $0x12] sm:$0xff]  ;;  %v5840_v28 = vpack.c.bf16 %v3746_v24, %v3745_v27  ;;  %v5216_v27 = vld [vmem:[%s5978_s26] sm:$0xff]  }
 0x961   : > { %5049 = vmatmul.mubr.msk.bf16.vlgmr.msra.gmra.mrb[72].mxu0 %vm2147_vm14, %v3625_v19  ;;  %5053 = vmatpush3.bf16.msra.mxu1 %v5210_v13  ;;  %v3816_v29 = vpack.c.bf16 %v3811_v26, %v3810_v25  ;;  %v4685_v13 = vld [vmem:[%s5975_s0 + $0xc] sm:$0xf] }
 0x962   : > { %5061 = vmatpush3.bf16.msra.mxu0 %v5211_v14  ;;  %5054 = vmatprep.subr.bf16.mxu1 %v5273_v1  ;;  %v4130_v21 = vsel %vm1761_vm6, %v4685_v13, 0 }
 0x963   : > { %5062 = vmatprep.subr.bf16.mxu0 %v5273_v1  ;;  %5056 = vmatprep.mubr.msk.bf16.mxu1 %vm5274_vm1, %v5273_v1 }
 0x964   : > { %5064 = vmatprep.mubr.msk.bf16.mxu0 %vm5274_vm1, %v5273_v1 }
 0x965   : > { %5055 = vmatpush3.bf16.msra.mxu1 %v3765_v22  ;;  %v4687_v22 = vld [vmem:[%s5975_s0 + $0x10] sm:$0xf]  ;;  %s5983_s0 = sld [smem:[#allocation21_spill]] }
 0x966   : > { %5063 = vmatpush3.bf16.msra.mxu0 %v3830_v23  ;;  %5068 = vmatprep.subr.bf16.mxu1 %v5273_v1  ;;  %v4184_v30 = vsel %vm1761_vm6, %v4687_v22, 0 }
 0x967   : > { %5076 = vmatprep.subr.bf16.mxu0 %v5273_v1 }
 0x968   : > { %5057 = vmatmul.mubr.msk.bf16.vlgmr.msra.gmra.mrb[72].mxu1 %vm2147_vm14, %v5840_v28 }
 0x969   : > { %5065 = vmatmul.mubr.msk.bf16.vlgmr.msra.gmra.mrb[76].mxu0 %vm2147_vm14, %v3816_v29  ;;  %5069 = vmatpush3.bf16.msra.mxu1 %v5214_v12 }
 0x96a   : > { %5072 = vmatprep.mubr.msk.bf16.mxu1 %vm5274_vm1, %v5273_v1  ;;  %5070 = vmatprep.subr.bf16.mxu1 %v5273_v1 }
 0x96b   : > { %5078 = vmatprep.mubr.msk.bf16.mxu0 %vm5274_vm1, %v5273_v1  ;;  %5077 = vmatpush3.bf16.msra.mxu0 %v3977_v37 }
 0x96c   : > { %5088 = vmatprep.subr.bf16.mxu0 %v5273_v1 }
 0x96d   : > { %5071 = vmatpush3.bf16.msra.mxu1 %v3895_v31  ;;  %v5217_v31 = vld [vmem:[%s5978_s26 + $0x8] ss:$0 sps:$4 sm:$0xff]  }
 0x96e   : > { %5082 = vmatprep.subr.bf16.mxu1 %v5273_v1  ;;  %v4277_v32 = vsel %vm1761_vm6, %v5217_v31, 0 }
 0x970   : > { %5073 = vmatmul.mubr.msk.bf16.vlgmr.msra.gmra.mrb[76].mxu1 %vm2147_vm14, %v3881_v34 }
 0x971   : > { %5084 = vmatprep.mubr.msk.bf16.mxu1 %vm5274_vm1, %v5273_v1  ;;  %5083 = vmatpush3.bf16.msra.mxu1 %v4024_v38 }
 0x972   : > { %5094 = vmatprep.subr.bf16.mxu1 %v5273_v1 }
 0xa33   : > { %v3682_v39 = vpop.f32.mrb[68].mxu1 }
 0xa34   : > { %v3738_v40 = vpop.f32.mrb[72].mxu0  ;;  %v5042_v42 = vpop.f32.mrb[69].mxu1 }
 0xa35   : > { %v3739_v41 = vadd.f32 %v3738_v40, %v3682_v39  ;;  %v5050_v43 = vpop.f32.mrb[73].mxu0  ;;  %v3685_v44 = vpop.f32.mrb[70].mxu1 }
 0xa36   : > { %v3741_v45 = vpop.f32.mrb[74].mxu0  ;;  %v5043_v47 = vpop.f32.mrb[71].mxu1 }
 0xa37   : > { %v3742_v46 = vadd.f32 %v3741_v45, %v3685_v44  ;;  %v5051_v48 = vpop.f32.mrb[75].mxu0 }
 0xa3b   : > { %v3801_v49 = vpop.f32.mrb[72].mxu1 }
 0xa3c   : > { %v3866_v50 = vpop.f32.mrb[76].mxu0  ;;  %v3808_v51 = vadd.f32 %v3801_v49, %v3739_v41  ;;  %v5058_v52 = vpop.f32.mrb[73].mxu1 }
 0xa3d   : > { %v5066_v53 = vpop.f32.mrb[77].mxu0  ;;  %v3804_v54 = vpop.f32.mrb[74].mxu1 }
 0xa3e   : > { %v3869_v55 = vpop.f32.mrb[78].mxu0  ;;  %v3873_v56 = vadd.f32 %v3866_v50, %v3808_v51  ;;  %v3809_v57 = vadd.f32 %v3804_v54, %v3742_v46  ;;  %v5059_v58 = vpop.f32.mrb[75].mxu1 }
 0xa3f   : > { %v5067_v59 = vpop.f32.mrb[79].mxu0  ;;  %v4689_v58 = vld [vmem:[%s5979_s1] ss:$0 sm:$0xff]  ;;  %s5985_s1 = smov 24  }
 0xa40   : > { %v3874_v60 = vadd.f32 %v3869_v55, %v3809_v57 }
 0xa43   : > { %v3931_v61 = vpop.f32.mrb[76].mxu1 }
 0xa44   : > { %v3938_v63 = vadd.f32 %v3931_v61, %v3873_v56  ;;  %v5074_v0 = vpop.f32.mrb[77].mxu1 }
 0xa45   : > { %v3934_v3 = vpop.f32.mrb[78].mxu1 }
 0xa46   : > { %v3947_v33 = vadd.f32 %v4678_v62, %v3938_v63  ;;  %v3939_v4 = vadd.f32 %v3934_v3, %v3874_v60  ;;  %v5075_v5 = vpop.f32.mrb[79].mxu1  ;;  %v4690_v63 = vld [vmem:[%s5980_s15] ss:$0 sm:$0xff] }
 0xa47   : > { %v5218_v3 = vld [vmem:[%s5981_s2] sm:$0xff]  }
 0xa48   : > { %vm3950_vm13 = vcmp.gt.f32.partialorder %v3947_v33, 0.0  ;;  %v3958_v6 = vmul.f32 %v4679_v2, %v3947_v33  ;;  %v3948_v7 = vadd.f32 %v4678_v62, %v3939_v4  ;;  %v4691_v4 = vld [vmem:[%s5982_s18] ss:$0 sm:$0xff]  ;;  %s5984_s18 = sld [smem:[#allocation30_spill]] }
 0xa4a   : > { %v3960_v8 = vsel %vm3950_vm13, %v3947_v33, %v3958_v6  ;;  %vm3951_vm9 = vcmp.gt.f32.partialorder %v3948_v7, 0.0  ;;  %v3959_v9 = vmul.f32 %v4679_v2, %v3948_v7 }
 0xa4b   : > { %3962 = vst.msk [vmem:[#allocation3 + $0x8] sm:$0xff] %vm1357_vm5, %v3960_v8  ;;  %v5219_v8 = vld [vmem:[%s5981_s2 + $0x8] sm:$0xff]  }
 0xa4c   : > { %v3961_v10 = vsel %vm3951_vm9, %v3948_v7, %v3959_v9 }
 0xa4d   : > { %3963 = vst.msk [vmem:[#allocation3 + $0x10] sm:$0xff] %vm1357_vm5, %v3961_v10 }
 0xa52   : > { %v3968_v14 = vld [vmem:[#allocation3 + $0x6] sm:$0xff] }
 0xa53   : > { %v3964_v16 = vld [vmem:[#allocation3 + $0x4] sm:$0xff] }
 0xa54   : > { %v3969_v15 = vld [vmem:[#allocation3 + $0xe] sm:$0xff] }
 0xa55   : > { %v3965_v17 = vld [vmem:[#allocation3 + $0xc] sm:$0xff]  ;;  %v3972_v18 = vpack.c.bf16 %v3969_v15, %v3968_v14  ;;  %v4176_v34 = vld [vmem:[#allocation3 + $0x14] sm:$0xff]  ;;  %v4695_v15 = vld [vmem:[%s5983_s0] ss:$0 sm:$0xff]  ;;  %s5986_s0 = sshll.u32 %s5988_s10, 4 }
 0xa56   : > { %v3967_v19 = vpack.c.bf16 %v3965_v17, %v3964_v16  ;;  %v4068_v23 = vld [vmem:[#allocation3 + $0x10] sm:$0xff]  ;;  %v4067_v26 = vld [vmem:[#allocation3 + $0x8] sm:$0xff]  ;;  %v4179_v35 = vpack.c.bf16 %v4176_v34, %v3965_v17  ;;  %s1350_s15 = scalar_lea.vmem %s5510_s19, %s5986_s0 }
 0xa57   : > { %5079 = vmatmul.mubr.msk.bf16.vlgmr.msra.gmra.mrb[80].mxu0 %vm1357_vm5, %v3972_v18  ;;  %v4121_v24 = vld [vmem:[#allocation3 + $0xa] sm:$0xff]  ;;  %v4122_v25 = vld [vmem:[#allocation3 + $0x12] sm:$0xff]  ;;  %v4071_v12 = vpack.c.bf16 %v4068_v23, %v4067_v26 }
 0xa58   : > { %5085 = vmatmul.mubr.msk.bf16.vlgmr.msra.gmra.mrb[80].mxu1 %vm1357_vm5, %v3967_v19  ;;  %5089 = vmatpush3.bf16.msra.mxu0 %v4076_v20  ;;  %v4125_v29 = vpack.c.bf16 %v4122_v25, %v4121_v24 }
 0xa59   : > { %5095 = vmatpush3.bf16.msra.mxu1 %v4130_v21  ;;  %5090 = vmatprep.mubr.msk.bf16.mxu0 %vm5274_vm1, %v5273_v1 }
 0xa5a   : > { %5096 = vmatprep.mubr.msk.bf16.mxu1 %vm5274_vm1, %v5273_v1  ;;  %5100 = vmatprep.subr.bf16.mxu0 %v5273_v1 }
 0xa5b   : > { %5106 = vmatprep.subr.bf16.mxu1 %v5273_v1 }
 0xa5f   : > { %5091 = vmatmul.mubr.msk.bf16.vlgmr.msra.gmra.mrb[84].mxu0 %vm1357_vm5, %v4071_v12  ;;  %v4696_v12 = vld [vmem:[%s5984_s18] ss:$0 sm:$0xff] }
 0xa60   : > { %5097 = vmatmul.mubr.msk.bf16.vlgmr.msra.gmra.mrb[84].mxu1 %vm1357_vm5, %v4125_v29  ;;  %5101 = vmatpush3.bf16.msra.mxu0 %v4184_v30 }
 0xa61   : > { %5107 = vmatpush3.bf16.msra.mxu1 %v5216_v27  ;;  %5102 = vmatprep.mubr.msk.bf16.mxu0 %vm5274_vm1, %v5273_v1 }
 0xa62   : > { %5108 = vmatprep.subr.bf16.mxu1 %v5273_v1  ;;  %5110 = vmatprep.mubr.msk.bf16.mxu1 %vm5274_vm1, %v5273_v1 }
 0xa63   : > { %5114 = vmatprep.subr.bf16.mxu0 %v5273_v1 }
 0xa65   : > { %5109 = vmatpush3.bf16.msra.mxu1 %v4277_v32 }
 0xa67   : > { %5103 = vmatmul.mubr.msk.bf16.vlgmr.msra.gmra.mrb[88].mxu0 %vm1357_vm5, %v4179_v35 }
 0xa68   : > { %5111 = vmatmul.mubr.msk.bf16.vlgmr.msra.gmra.mrb[88].mxu1 %vm2147_vm14, %v5840_v28  ;;  %5118 = vmatprep.mubr.msk.bf16.mxu0 %vm5274_vm1, %v5273_v1 }
 0xa69   : > { %5115 = vmatpush3.bf16.msra.mxu0 %v5218_v3 }
 0xa6a   : > { %5116 = vmatprep.subr.bf16.mxu0 %v5273_v1 }
 0xa6d   : > { %5117 = vmatpush3.bf16.msra.mxu0 %v5219_v8 }
 0xb2a   : > { %v4013_v36 = vpop.f32.mrb[80].mxu0 }
 0xb2b   : > { %v4060_v37 = vpop.f32.mrb[80].mxu1  ;;  %v5080_v39 = vpop.f32.mrb[81].mxu0 }
 0xb2c   : > { %v4061_v38 = vadd.f32 %v4060_v37, %v4013_v36  ;;  %v5086_v40 = vpop.f32.mrb[81].mxu1  ;;  %v4016_v41 = vpop.f32.mrb[82].mxu0 }
 0xb2d   : > { %v4063_v42 = vpop.f32.mrb[82].mxu1  ;;  %v5081_v44 = vpop.f32.mrb[83].mxu0 }
 0xb2e   : > { %v4064_v43 = vadd.f32 %v4063_v42, %v4016_v41  ;;  %v5087_v45 = vpop.f32.mrb[83].mxu1 }
 0xb32   : > { %v4112_v46 = vpop.f32.mrb[84].mxu0 }
 0xb33   : > { %v4166_v47 = vpop.f32.mrb[84].mxu1  ;;  %v4119_v48 = vadd.f32 %v4112_v46, %v4061_v38  ;;  %v5092_v49 = vpop.f32.mrb[85].mxu0 }
 0xb34   : > { %v5098_v28 = vpop.f32.mrb[85].mxu1  ;;  %v4115_v50 = vpop.f32.mrb[86].mxu0 }
 0xb35   : > { %v4169_v51 = vpop.f32.mrb[86].mxu1  ;;  %v4173_v52 = vadd.f32 %v4166_v47, %v4119_v48  ;;  %v4120_v53 = vadd.f32 %v4115_v50, %v4064_v43  ;;  %v5093_v54 = vpop.f32.mrb[87].mxu0 }
 0xb36   : > { %v5099_v55 = vpop.f32.mrb[87].mxu1 }
 0xb37   : > { %v4174_v56 = vadd.f32 %v4169_v51, %v4120_v53 }
 0xb3a   : > { %v4220_v57 = vpop.f32.mrb[88].mxu0 }
 0xb3b   : > { %v4313_v59 = vpop.f32.mrb[88].mxu1  ;;  %v4227_v60 = vadd.f32 %v4220_v57, %v4173_v52  ;;  %v5104_v61 = vpop.f32.mrb[89].mxu0 }
 0xb3c   : > { %v5112_v62 = vpop.f32.mrb[89].mxu1  ;;  %v4223_v0 = vpop.f32.mrb[90].mxu0  ;;  %v4314_v11 = vadd.f32 %v4691_v4, %v4313_v59 }
 0xb3d   : > { %v4316_v2 = vpop.f32.mrb[90].mxu1  ;;  %v4236_v33 = vadd.f32 %v4689_v58, %v4227_v60  ;;  %v4228_v5 = vadd.f32 %v4223_v0, %v4174_v56  ;;  %v5105_v6 = vpop.f32.mrb[91].mxu0 }
 0xb3e   : > { %v5113_v7 = vpop.f32.mrb[91].mxu1  ;;  %v4317_v17 = vadd.f32 %v4691_v4, %v4316_v2 }
 0xb3f   : > { %v4247_v9 = vmul.f32 %v4690_v63, %v4236_v33  ;;  %vm4239_vm1 = vcmp.gt.f32.partialorder %v4236_v33, 0.0  ;;  %v4237_v10 = vadd.f32 %v4689_v58, %v4228_v5 }
 0xb41   : > { %v4249_v13 = vsel %vm4239_vm1, %v4236_v33, %v4247_v9  ;;  %v4248_v14 = vmul.f32 %v4690_v63, %v4237_v10  ;;  %vm4240_vm5 = vcmp.gt.f32.partialorder %v4237_v10, 0.0 }
 0xb42   : > { %v4320_v16 = vadd.f32 %v4314_v11, %v4249_v13 }
 0xb43   : > { %v4250_v18 = vsel %vm4240_vm5, %v4237_v10, %v4248_v14 }
 0xb44   : > { %v4321_v19 = vadd.f32 %v4317_v17, %v4250_v18  ;;  %vm4323_vm6 = vcmp.gt.f32.partialorder %v4320_v16, 0.0  ;;  %v4331_v20 = vmul.f32 %v4695_v15, %v4320_v16 }
 0xb46   : > { %v4333_v21 = vsel %vm4323_vm6, %v4320_v16, %v4331_v20  ;;  %vm4324_vm14 = vcmp.gt.f32.partialorder %v4321_v19, 0.0  ;;  %v4332_v22 = vmul.f32 %v4695_v15, %v4321_v19 }
 0xb47   : > { %4337 = vrot.lane.b32.xlu0 %v4333_v21, %s5985_s1 }
 0xb48   : > { %v4334_v1 = vsel %vm4324_vm14, %v4321_v19, %v4332_v22 }
 0xb49   : > { %4339 = vrot.lane.b32.xlu1 %v4334_v1, %s5985_s1 }
 0xbb9   : > { %v4338_v23 = vpop.permute.xlu0 %4337 }
 0xbba   : > { %4343 = vst.msk [vmem:[#allocation2 + $0x8] sm:$0xff] %vm2849_vm10, %v4338_v23 }
 0xbbb   : > { %v4340_v24 = vpop.permute.xlu1 %4339 }
 0xbbc   : > { %4344 = vst.msk [vmem:[#allocation2 + $0x10] sm:$0xff] %vm2849_vm10, %v4340_v24 }
 0xbc1   : > { %v4345_v25 = vld [vmem:[#allocation2 + $0x8] sm:$0xff] }
 0xbc3   : > { %v4346_v26 = vld [vmem:[#allocation2 + $0x10] sm:$0xff] }
 0xbc4   : > { %v4351_v27 = vpack.c.bf16 %v4346_v26, %v4345_v25 }
 0xbc6   : > { %5119 = vmatmul.mubr.msk.bf16.vlgmr.msra.gmra.mrb[92].mxu0 %vm1352_vm0, %v4351_v27 }
 0xc99   : > { %v4408_v29 = vpop.f32.mrb[92].mxu0 }
 0xc9a   : > { %v4409_v30 = vadd.f32 %v4696_v12, %v4408_v29  ;;  %v5120_v31 = vpop.f32.mrb[93].mxu0 }
 0xc9b   : > { %v4411_v32 = vpop.f32.mrb[94].mxu0 }
 0xc9c   : > { %4416 = vst.msk [vmem:[%s1350_s15] sm:$0xff] %vm4415_vm11, %v4409_v30  ;;  %v4412_v34 = vadd.f32 %v4696_v12, %v4411_v32  ;;  %v5121_v35 = vpop.f32.mrb[95].mxu0 }
 0xc9e   : > { %4417 = vst.msk [vmem:[%s1350_s15 + $0x8] sm:$0xff] %vm4415_vm11, %v4412_v34 }
 0xc9f PF: > { %s101_s7 = sadd.s32 1, %s5226_s7  }
 0xca0   : > { %p98_p4 = scmp.ge.s32.totalorder %s101_s7, 4  }
 0xca2   :  { %100 = sbr.rel (!%p98_p4) target bundleno = 77 (0x4d), region = 307 }

</bundles_post_ra>
